<compile_context>
chip_gen: v6e
topology: v6e:2x2x1
jax: 0.10.0
libtpu: 0.0.40
codegen_flags: <defaults>
</compile_context>

<pallas_src>
import jax
import jax.numpy as jnp
from jax.experimental import pallas as pl

BN_EPS = 1e-5
KSIZE = 4
LANE = 128


# ----------------------------- Pallas kernels -------------------------------

def _mm_kernel(x_ref, w_ref, o_ref):
    # bf16 x bf16 -> f32 accumulation on the MXU (layer 0: no BN prologue).
    o_ref[...] = jnp.dot(x_ref[...].astype(jnp.bfloat16), w_ref[...],
                         preferred_element_type=jnp.float32)


def _bn_relu_mm_kernel(x_ref, sc_ref, sh_ref, w_ref, o_ref):
    # Fused prologue: training-mode BatchNorm apply (per-C_in scale/shift rows)
    # + ReLU + bf16 cast, then the layer's ConvTranspose-as-matmul on the MXU.
    a = jnp.maximum(x_ref[...] * sc_ref[...] + sh_ref[...], 0.0)
    o_ref[...] = jnp.dot(a.astype(jnp.bfloat16), w_ref[...],
                         preferred_element_type=jnp.float32)


# ----------------------------- kernel wrappers ------------------------------

def mm_pallas(x, w):
    """(M, K) f32 @ (K, N) bf16 -> (M, N) f32, single whole-array block."""
    m, k = x.shape
    n = w.shape[1]
    return pl.pallas_call(
        _mm_kernel,
        out_shape=jax.ShapeDtypeStruct((m, n), jnp.float32),
        grid=(1,),
        in_specs=[pl.BlockSpec((m, k), lambda i: (0, 0)),
                  pl.BlockSpec((k, n), lambda i: (0, 0))],
        out_specs=pl.BlockSpec((m, n), lambda i: (0, 0)),
    )(x, w)


def bn_relu_mm_pallas(x, scale_row, shift_row, w):
    """max(x*scale + shift, 0) -> bf16 -> matmul, all in one kernel."""
    m, k = x.shape
    n = w.shape[1]
    return pl.pallas_call(
        _bn_relu_mm_kernel,
        out_shape=jax.ShapeDtypeStruct((m, n), jnp.float32),
        grid=(1,),
        in_specs=[pl.BlockSpec((m, k), lambda i: (0, 0)),
                  pl.BlockSpec((1, k), lambda i: (0, 0)),
                  pl.BlockSpec((1, k), lambda i: (0, 0)),
                  pl.BlockSpec((k, n), lambda i: (0, 0))],
        out_specs=pl.BlockSpec((m, n), lambda i: (0, 0)),
    )(x, scale_row, shift_row, w)


# --------------------------- ConvTranspose glue ------------------------------

def _col2im_s2p1k4(y6):
    """Overlap-add for ConvTranspose2d(k=4, stride=2, pad=1), NHWC.

    y6: (n, h, w, 4, 4, c) per-input-pixel contributions, [kh, kw] tap order,
    where tap (kh, kw) of input pixel (ih, iw) lands at output
    (2*ih + kh - 1, 2*iw + kw - 1).  Built with the even/odd parity trick:
    4 contiguous adds + 2 interleaving reshapes (no strided scatter-adds).
    Returns (n, 2h, 2w, c).
    """
    n, h, w, _, _, c = y6.shape
    # Height pass: even output rows get kh in {1,3}; odd rows get kh in {0,2}.
    even_h = y6[:, :, :, 1] + jnp.pad(
        y6[:, :h - 1, :, 3], ((0, 0), (1, 0), (0, 0), (0, 0), (0, 0)))
    odd_h = y6[:, :, :, 2] + jnp.pad(
        y6[:, 1:, :, 0], ((0, 0), (0, 1), (0, 0), (0, 0), (0, 0)))
    z = jnp.stack([even_h, odd_h], axis=2).reshape(n, 2 * h, w, KSIZE, c)
    # Width pass: same decomposition over kw.
    even_w = z[:, :, :, 1] + jnp.pad(
        z[:, :, :w - 1, 3], ((0, 0), (0, 0), (1, 0), (0, 0)))
    odd_w = z[:, :, :, 2] + jnp.pad(
        z[:, :, 1:, 0], ((0, 0), (0, 0), (0, 1), (0, 0)))
    return jnp.stack([even_w, odd_w], axis=3).reshape(n, 2 * h, 2 * w, c)


# -------------------------------- Generator ---------------------------------

class Generator:
    """JAX/Pallas DCGAN Generator (training-mode BatchNorm, bias=False)."""

    def __init__(self, nz, ngf, nc, key):
        self.nz, self.ngf, self.nc = nz, ngf, nc
        dims = [(nz, ngf * 8), (ngf * 8, ngf * 4), (ngf * 4, ngf * 2),
                (ngf * 2, ngf), (ngf, nc)]
        self.c_outs = [co for _, co in dims]
        keys = jax.random.split(key, 3 * len(dims))
        self.w_mats, self.gammas, self.betas = [], [], []
        for idx, (ci, co) in enumerate(dims):
            kw_key, kg, kb = keys[3 * idx: 3 * idx + 3]
            # DCGAN-style N(0, 0.02) init; PyTorch layout (C_in, C_out, kH, kW).
            w = 0.02 * jax.random.normal(kw_key, (ci, co, KSIZE, KSIZE),
                                         jnp.float32)
            # Matmul weight: (C_in, kH, kW, C_out) -> (C_in, k*k*C_out), bf16.
            wm = jnp.transpose(w, (0, 2, 3, 1)).reshape(ci, KSIZE * KSIZE * co)
            # Lane-dense output stores: pad columns up to a multiple of 128
            # (only the last layer's 48 -> 128 actually pads).
            ncols = wm.shape[1]
            ncols_pad = -(-ncols // LANE) * LANE
            if ncols_pad != ncols:
                wm = jnp.pad(wm, ((0, 0), (0, ncols_pad - ncols)))
            self.w_mats.append(wm.astype(jnp.bfloat16))
            if idx < len(dims) - 1:
                self.gammas.append(
                    1.0 + 0.02 * jax.random.normal(kg, (co,), jnp.float32))
                self.betas.append(
                    0.02 * jax.random.normal(kb, (co,), jnp.float32))
        self._forward = jax.jit(self._forward_impl)

    def _forward_impl(self, z_nchw):
        n = z_nchw.shape[0]
        # Latent NCHW (n, nz, 1, 1) -> (n, nz).
        x2d = jnp.transpose(z_nchw, (0, 2, 3, 1)).reshape(n, self.nz)
        x2d = x2d.astype(jnp.float32)

        # Layer 0: ConvTranspose2d(nz, ngf*8, 4, 1, 0) on a 1x1 input == matmul,
        # and col2im is a pure reshape to (n, 4, 4, C_out).
        co = self.c_outs[0]
        y = mm_pallas(x2d, self.w_mats[0])
        a = y[:, :KSIZE * KSIZE * co].reshape(n, KSIZE, KSIZE, co)
        h = w = KSIZE

        # Layers 1..4: BN+ReLU fused into the matmul prologue, overlap-add glue.
        for i in range(1, len(self.w_mats)):
            ci = self.c_outs[i - 1]
            # Training-mode BatchNorm stats of the previous activation (tiny;
            # computed in jnp so they fuse with the col2im glue).
            mean = jnp.mean(a, axis=(0, 1, 2))
            var = jnp.mean(jnp.square(a - mean), axis=(0, 1, 2))  # biased var
            scale = self.gammas[i - 1] * jax.lax.rsqrt(var + BN_EPS)
            shift = self.betas[i - 1] - mean * scale
            y = bn_relu_mm_pallas(a.reshape(n * h * w, ci),
                                  scale.reshape(1, ci), shift.reshape(1, ci),
                                  self.w_mats[i])
            co = self.c_outs[i]
            y6 = y[:, :KSIZE * KSIZE * co].reshape(n, h, w, KSIZE, KSIZE, co)
            a = _col2im_s2p1k4(y6)
            h, w = 2 * h, 2 * w

        out = jnp.tanh(a)                        # tiny; fuses with col2im glue
        return jnp.transpose(out, (0, 3, 1, 2))  # NHWC -> NCHW

    def __call__(self, z_nchw):
        return self._forward(z_nchw)


# ---------------------------------- main -------------------------------------

if __name__ == "__main__":
    nz, ngf, nc = 32, 8, 3          # small DCGAN config
    key = jax.random.PRNGKey(0)
    k_z, k_params = jax.random.split(key)

    gen = Generator(nz, ngf, nc, k_params)
    z = jax.random.normal(k_z, (2, nz, 1, 1), jnp.float32)   # latent, NCHW

    out = gen(z)
    out = jax.block_until_ready(out)

    assert out.shape == (2, nc, 64, 64), out.shape
    assert bool(jnp.all(jnp.isfinite(out)))
    assert bool(jnp.all(jnp.abs(out) <= 1.0 + 1e-6))          # tanh range
    print("KERNEL_OK")
</pallas_src>

<mosaic_0001>
module attributes {stable_mosaic.version = 11 : i64} {
  func.func @_mm_kernel(%arg0: i32, %arg1: memref<2x32xf32, #tpu.memory_space<vmem>>, %arg2: memref<32x1024xbf16, #tpu.memory_space<vmem>>, %arg3: memref<2x1024xf32, #tpu.memory_space<vmem>>) attributes {dimension_semantics = [#tpu.dimension_semantics<arbitrary>], iteration_bounds = array<i64: 1>, scalar_prefetch = 0 : i64, scratch_operands = 0 : i64, tpu.core_type = #tpu.core_type<tc>, window_params = [{pipeline_mode = #tpu.pipeline_mode<synchronous>, transform_indices = @transform_0, window_bounds = array<i64: 2, 32>}, {pipeline_mode = #tpu.pipeline_mode<synchronous>, transform_indices = @transform_1, window_bounds = array<i64: 32, 1024>}, {pipeline_mode = #tpu.pipeline_mode<synchronous>, transform_indices = @transform_2, window_bounds = array<i64: 2, 1024>}]} {
    %c0 = arith.constant 0 : index
    %c0_0 = arith.constant 0 : index
    %0 = vector.load %arg1[%c0, %c0_0] : memref<2x32xf32, #tpu.memory_space<vmem>>, vector<2x32xf32>
    %1 = arith.truncf %0 : vector<2x32xf32> to vector<2x32xbf16>
    %c0_1 = arith.constant 0 : index
    %c0_2 = arith.constant 0 : index
    %2 = vector.load %arg2[%c0_1, %c0_2] : memref<32x1024xbf16, #tpu.memory_space<vmem>>, vector<32x1024xbf16>
    %cst = arith.constant dense<0.000000e+00> : vector<2x1024xf32>
    %3 = tpu.matmul %1, %2, %cst {dimension_numbers = #tpu.dot_dimension_numbers<[1], [0], [0], [1], [0, 0, 1, 1], [], []>} : vector<2x32xbf16>, vector<32x1024xbf16>, vector<2x1024xf32> -> vector<2x1024xf32>
    %c0_3 = arith.constant 0 : index
    %c0_4 = arith.constant 0 : index
    %4 = vector.load %arg3[%c0_3, %c0_4] : memref<2x1024xf32, #tpu.memory_space<vmem>>, vector<2x1024xf32>
    tpu.vector_store %arg3[%c0_3, %c0_4], %3 {strides = array<i32>} : memref<2x1024xf32, #tpu.memory_space<vmem>>, vector<2x1024xf32>,
    return
  }
  func.func @transform_0(%arg0: i32) -> (i32, i32) {
    %c0_i32 = arith.constant 0 : i32
    %c0_i32_0 = arith.constant 0 : i32
    %c0_i32_1 = arith.constant 0 : i32
    return %c0_i32, %c0_i32_0 : i32, i32
  }
  func.func @transform_1(%arg0: i32) -> (i32, i32) {
    %c0_i32 = arith.constant 0 : i32
    %c0_i32_0 = arith.constant 0 : i32
    %c0_i32_1 = arith.constant 0 : i32
    return %c0_i32, %c0_i32_0 : i32, i32
  }
  func.func @transform_2(%arg0: i32) -> (i32, i32) {
    %c0_i32 = arith.constant 0 : i32
    %c0_i32_0 = arith.constant 0 : i32
    %c0_i32_1 = arith.constant 0 : i32
    return %c0_i32, %c0_i32_0 : i32, i32
  }
}

module attributes {stable_mosaic.version = 11 : i64} {
  func.func @_bn_relu_mm_kernel(%arg0: i32, %arg1: memref<32x64xf32, #tpu.memory_space<vmem>>, %arg2: memref<1x64xf32, #tpu.memory_space<vmem>>, %arg3: memref<1x64xf32, #tpu.memory_space<vmem>>, %arg4: memref<64x512xbf16, #tpu.memory_space<vmem>>, %arg5: memref<32x512xf32, #tpu.memory_space<vmem>>) attributes {dimension_semantics = [#tpu.dimension_semantics<arbitrary>], iteration_bounds = array<i64: 1>, scalar_prefetch = 0 : i64, scratch_operands = 0 : i64, tpu.core_type = #tpu.core_type<tc>, window_params = [{pipeline_mode = #tpu.pipeline_mode<synchronous>, transform_indices = @transform_0, window_bounds = array<i64: 32, 64>}, {pipeline_mode = #tpu.pipeline_mode<synchronous>, transform_indices = @transform_1, window_bounds = array<i64: 1, 64>}, {pipeline_mode = #tpu.pipeline_mode<synchronous>, transform_indices = @transform_2, window_bounds = array<i64: 1, 64>}, {pipeline_mode = #tpu.pipeline_mode<synchronous>, transform_indices = @transform_3, window_bounds = array<i64: 64, 512>}, {pipeline_mode = #tpu.pipeline_mode<synchronous>, transform_indices = @transform_4, window_bounds = array<i64: 32, 512>}]} {
    %c0 = arith.constant 0 : index
    %c0_0 = arith.constant 0 : index
    %0 = vector.load %arg1[%c0, %c0_0] : memref<32x64xf32, #tpu.memory_space<vmem>>, vector<32x64xf32>
    %c0_1 = arith.constant 0 : index
    %c0_2 = arith.constant 0 : index
    %1 = vector.load %arg2[%c0_1, %c0_2] : memref<1x64xf32, #tpu.memory_space<vmem>>, vector<1x64xf32>
    %2 = vector.broadcast %1 : vector<1x64xf32> to vector<32x64xf32>
    %3 = arith.mulf %0, %2 : vector<32x64xf32>
    %c0_3 = arith.constant 0 : index
    %c0_4 = arith.constant 0 : index
    %4 = vector.load %arg3[%c0_3, %c0_4] : memref<1x64xf32, #tpu.memory_space<vmem>>, vector<1x64xf32>
    %5 = vector.broadcast %4 : vector<1x64xf32> to vector<32x64xf32>
    %6 = arith.addf %3, %5 : vector<32x64xf32>
    %cst = arith.constant 0.000000e+00 : f32
    %7 = vector.broadcast %cst : f32 to vector<32x64xf32>
    %8 = arith.maximumf %6, %7 : vector<32x64xf32>
    %9 = arith.truncf %8 : vector<32x64xf32> to vector<32x64xbf16>
    %c0_5 = arith.constant 0 : index
    %c0_6 = arith.constant 0 : index
    %10 = vector.load %arg4[%c0_5, %c0_6] : memref<64x512xbf16, #tpu.memory_space<vmem>>, vector<64x512xbf16>
    %cst_7 = arith.constant dense<0.000000e+00> : vector<32x512xf32>
    %11 = tpu.matmul %9, %10, %cst_7 {dimension_numbers = #tpu.dot_dimension_numbers<[1], [0], [0], [1], [0, 0, 1, 1], [], []>} : vector<32x64xbf16>, vector<64x512xbf16>, vector<32x512xf32> -> vector<32x512xf32>
    %c0_8 = arith.constant 0 : index
    %c0_9 = arith.constant 0 : index
    %12 = vector.load %arg5[%c0_8, %c0_9] : memref<32x512xf32, #tpu.memory_space<vmem>>, vector<32x512xf32>
    tpu.vector_store %arg5[%c0_8, %c0_9], %11 {strides = array<i32>} : memref<32x512xf32, #tpu.memory_space<vmem>>, vector<32x512xf32>,
    return
  }
  func.func @transform_0(%arg0: i32) -> (i32, i32) {
    %c0_i32 = arith.constant 0 : i32
    %c0_i32_0 = arith.constant 0 : i32
    %c0_i32_1 = arith.constant 0 : i32
    return %c0_i32, %c0_i32_0 : i32, i32
  }
  func.func @transform_1(%arg0: i32) -> (i32, i32) {
    %c0_i32 = arith.constant 0 : i32
    %c0_i32_0 = arith.constant 0 : i32
    %c0_i32_1 = arith.constant 0 : i32
    return %c0_i32, %c0_i32_0 : i32, i32
  }
  func.func @transform_2(%arg0: i32) -> (i32, i32) {
    %c0_i32 = arith.constant 0 : i32
    %c0_i32_0 = arith.constant 0 : i32
    %c0_i32_1 = arith.constant 0 : i32
    return %c0_i32, %c0_i32_0 : i32, i32
  }
  func.func @transform_3(%arg0: i32) -> (i32, i32) {
    %c0_i32 = arith.constant 0 : i32
    %c0_i32_0 = arith.constant 0 : i32
    %c0_i32_1 = arith.constant 0 : i32
    return %c0_i32, %c0_i32_0 : i32, i32
  }
  func.func @transform_4(%arg0: i32) -> (i32, i32) {
    %c0_i32 = arith.constant 0 : i32
    %c0_i32_0 = arith.constant 0 : i32
    %c0_i32_1 = arith.constant 0 : i32
    return %c0_i32, %c0_i32_0 : i32, i32
  }
}

module attributes {stable_mosaic.version = 11 : i64} {
  func.func @_bn_relu_mm_kernel(%arg0: i32, %arg1: memref<128x32xf32, #tpu.memory_space<vmem>>, %arg2: memref<1x32xf32, #tpu.memory_space<vmem>>, %arg3: memref<1x32xf32, #tpu.memory_space<vmem>>, %arg4: memref<32x256xbf16, #tpu.memory_space<vmem>>, %arg5: memref<128x256xf32, #tpu.memory_space<vmem>>) attributes {dimension_semantics = [#tpu.dimension_semantics<arbitrary>], iteration_bounds = array<i64: 1>, scalar_prefetch = 0 : i64, scratch_operands = 0 : i64, tpu.core_type = #tpu.core_type<tc>, window_params = [{pipeline_mode = #tpu.pipeline_mode<synchronous>, transform_indices = @transform_0, window_bounds = array<i64: 128, 32>}, {pipeline_mode = #tpu.pipeline_mode<synchronous>, transform_indices = @transform_1, window_bounds = array<i64: 1, 32>}, {pipeline_mode = #tpu.pipeline_mode<synchronous>, transform_indices = @transform_2, window_bounds = array<i64: 1, 32>}, {pipeline_mode = #tpu.pipeline_mode<synchronous>, transform_indices = @transform_3, window_bounds = array<i64: 32, 256>}, {pipeline_mode = #tpu.pipeline_mode<synchronous>, transform_indices = @transform_4, window_bounds = array<i64: 128, 256>}]} {
    %c0 = arith.constant 0 : index
    %c0_0 = arith.constant 0 : index
    %0 = vector.load %arg1[%c0, %c0_0] : memref<128x32xf32, #tpu.memory_space<vmem>>, vector<128x32xf32>
    %c0_1 = arith.constant 0 : index
    %c0_2 = arith.constant 0 : index
    %1 = vector.load %arg2[%c0_1, %c0_2] : memref<1x32xf32, #tpu.memory_space<vmem>>, vector<1x32xf32>
    %2 = vector.broadcast %1 : vector<1x32xf32> to vector<128x32xf32>
    %3 = arith.mulf %0, %2 : vector<128x32xf32>
    %c0_3 = arith.constant 0 : index
    %c0_4 = arith.constant 0 : index
    %4 = vector.load %arg3[%c0_3, %c0_4] : memref<1x32xf32, #tpu.memory_space<vmem>>, vector<1x32xf32>
    %5 = vector.broadcast %4 : vector<1x32xf32> to vector<128x32xf32>
    %6 = arith.addf %3, %5 : vector<128x32xf32>
    %cst = arith.constant 0.000000e+00 : f32
    %7 = vector.broadcast %cst : f32 to vector<128x32xf32>
    %8 = arith.maximumf %6, %7 : vector<128x32xf32>
    %9 = arith.truncf %8 : vector<128x32xf32> to vector<128x32xbf16>
    %c0_5 = arith.constant 0 : index
    %c0_6 = arith.constant 0 : index
    %10 = vector.load %arg4[%c0_5, %c0_6] : memref<32x256xbf16, #tpu.memory_space<vmem>>, vector<32x256xbf16>
    %cst_7 = arith.constant dense<0.000000e+00> : vector<128x256xf32>
    %11 = tpu.matmul %9, %10, %cst_7 {dimension_numbers = #tpu.dot_dimension_numbers<[1], [0], [0], [1], [0, 0, 1, 1], [], []>} : vector<128x32xbf16>, vector<32x256xbf16>, vector<128x256xf32> -> vector<128x256xf32>
    %c0_8 = arith.constant 0 : index
    %c0_9 = arith.constant 0 : index
    %12 = vector.load %arg5[%c0_8, %c0_9] : memref<128x256xf32, #tpu.memory_space<vmem>>, vector<128x256xf32>
    tpu.vector_store %arg5[%c0_8, %c0_9], %11 {strides = array<i32>} : memref<128x256xf32, #tpu.memory_space<vmem>>, vector<128x256xf32>,
    return
  }
  func.func @transform_0(%arg0: i32) -> (i32, i32) {
    %c0_i32 = arith.constant 0 : i32
    %c0_i32_0 = arith.constant 0 : i32
    %c0_i32_1 = arith.constant 0 : i32
    return %c0_i32, %c0_i32_0 : i32, i32
  }
  func.func @transform_1(%arg0: i32) -> (i32, i32) {
    %c0_i32 = arith.constant 0 : i32
    %c0_i32_0 = arith.constant 0 : i32
    %c0_i32_1 = arith.constant 0 : i32
    return %c0_i32, %c0_i32_0 : i32, i32
  }
  func.func @transform_2(%arg0: i32) -> (i32, i32) {
    %c0_i32 = arith.constant 0 : i32
    %c0_i32_0 = arith.constant 0 : i32
    %c0_i32_1 = arith.constant 0 : i32
    return %c0_i32, %c0_i32_0 : i32, i32
  }
  func.func @transform_3(%arg0: i32) -> (i32, i32) {
    %c0_i32 = arith.constant 0 : i32
    %c0_i32_0 = arith.constant 0 : i32
    %c0_i32_1 = arith.constant 0 : i32
    return %c0_i32, %c0_i32_0 : i32, i32
  }
  func.func @transform_4(%arg0: i32) -> (i32, i32) {
    %c0_i32 = arith.constant 0 : i32
    %c0_i32_0 = arith.constant 0 : i32
    %c0_i32_1 = arith.constant 0 : i32
    return %c0_i32, %c0_i32_0 : i32, i32
  }
}

module attributes {stable_mosaic.version = 11 : i64} {
  func.func @_bn_relu_mm_kernel(%arg0: i32, %arg1: memref<512x16xf32, #tpu.memory_space<vmem>>, %arg2: memref<1x16xf32, #tpu.memory_space<vmem>>, %arg3: memref<1x16xf32, #tpu.memory_space<vmem>>, %arg4: memref<16x128xbf16, #tpu.memory_space<vmem>>, %arg5: memref<512x128xf32, #tpu.memory_space<vmem>>) attributes {dimension_semantics = [#tpu.dimension_semantics<arbitrary>], iteration_bounds = array<i64: 1>, scalar_prefetch = 0 : i64, scratch_operands = 0 : i64, tpu.core_type = #tpu.core_type<tc>, window_params = [{pipeline_mode = #tpu.pipeline_mode<synchronous>, transform_indices = @transform_0, window_bounds = array<i64: 512, 16>}, {pipeline_mode = #tpu.pipeline_mode<synchronous>, transform_indices = @transform_1, window_bounds = array<i64: 1, 16>}, {pipeline_mode = #tpu.pipeline_mode<synchronous>, transform_indices = @transform_2, window_bounds = array<i64: 1, 16>}, {pipeline_mode = #tpu.pipeline_mode<synchronous>, transform_indices = @transform_3, window_bounds = array<i64: 16, 128>}, {pipeline_mode = #tpu.pipeline_mode<synchronous>, transform_indices = @transform_4, window_bounds = array<i64: 512, 128>}]} {
    %c0 = arith.constant 0 : index
    %c0_0 = arith.constant 0 : index
    %0 = vector.load %arg1[%c0, %c0_0] : memref<512x16xf32, #tpu.memory_space<vmem>>, vector<512x16xf32>
    %c0_1 = arith.constant 0 : index
    %c0_2 = arith.constant 0 : index
    %1 = vector.load %arg2[%c0_1, %c0_2] : memref<1x16xf32, #tpu.memory_space<vmem>>, vector<1x16xf32>
    %2 = vector.broadcast %1 : vector<1x16xf32> to vector<512x16xf32>
    %3 = arith.mulf %0, %2 : vector<512x16xf32>
    %c0_3 = arith.constant 0 : index
    %c0_4 = arith.constant 0 : index
    %4 = vector.load %arg3[%c0_3, %c0_4] : memref<1x16xf32, #tpu.memory_space<vmem>>, vector<1x16xf32>
    %5 = vector.broadcast %4 : vector<1x16xf32> to vector<512x16xf32>
    %6 = arith.addf %3, %5 : vector<512x16xf32>
    %cst = arith.constant 0.000000e+00 : f32
    %7 = vector.broadcast %cst : f32 to vector<512x16xf32>
    %8 = arith.maximumf %6, %7 : vector<512x16xf32>
    %9 = arith.truncf %8 : vector<512x16xf32> to vector<512x16xbf16>
    %c0_5 = arith.constant 0 : index
    %c0_6 = arith.constant 0 : index
    %10 = vector.load %arg4[%c0_5, %c0_6] : memref<16x128xbf16, #tpu.memory_space<vmem>>, vector<16x128xbf16>
    %cst_7 = arith.constant dense<0.000000e+00> : vector<512x128xf32>
    %11 = tpu.matmul %9, %10, %cst_7 {dimension_numbers = #tpu.dot_dimension_numbers<[1], [0], [0], [1], [0, 0, 1, 1], [], []>} : vector<512x16xbf16>, vector<16x128xbf16>, vector<512x128xf32> -> vector<512x128xf32>
    %c0_8 = arith.constant 0 : index
    %c0_9 = arith.constant 0 : index
    %12 = vector.load %arg5[%c0_8, %c0_9] : memref<512x128xf32, #tpu.memory_space<vmem>>, vector<512x128xf32>
    tpu.vector_store %arg5[%c0_8, %c0_9], %11 {strides = array<i32>} : memref<512x128xf32, #tpu.memory_space<vmem>>, vector<512x128xf32>,
    return
  }
  func.func @transform_0(%arg0: i32) -> (i32, i32) {
    %c0_i32 = arith.constant 0 : i32
    %c0_i32_0 = arith.constant 0 : i32
    %c0_i32_1 = arith.constant 0 : i32
    return %c0_i32, %c0_i32_0 : i32, i32
  }
  func.func @transform_1(%arg0: i32) -> (i32, i32) {
    %c0_i32 = arith.constant 0 : i32
    %c0_i32_0 = arith.constant 0 : i32
    %c0_i32_1 = arith.constant 0 : i32
    return %c0_i32, %c0_i32_0 : i32, i32
  }
  func.func @transform_2(%arg0: i32) -> (i32, i32) {
    %c0_i32 = arith.constant 0 : i32
    %c0_i32_0 = arith.constant 0 : i32
    %c0_i32_1 = arith.constant 0 : i32
    return %c0_i32, %c0_i32_0 : i32, i32
  }
  func.func @transform_3(%arg0: i32) -> (i32, i32) {
    %c0_i32 = arith.constant 0 : i32
    %c0_i32_0 = arith.constant 0 : i32
    %c0_i32_1 = arith.constant 0 : i32
    return %c0_i32, %c0_i32_0 : i32, i32
  }
  func.func @transform_4(%arg0: i32) -> (i32, i32) {
    %c0_i32 = arith.constant 0 : i32
    %c0_i32_0 = arith.constant 0 : i32
    %c0_i32_1 = arith.constant 0 : i32
    return %c0_i32, %c0_i32_0 : i32, i32
  }
}

module attributes {stable_mosaic.version = 11 : i64} {
  func.func @_bn_relu_mm_kernel(%arg0: i32, %arg1: memref<2048x8xf32, #tpu.memory_space<vmem>>, %arg2: memref<1x8xf32, #tpu.memory_space<vmem>>, %arg3: memref<1x8xf32, #tpu.memory_space<vmem>>, %arg4: memref<8x128xbf16, #tpu.memory_space<vmem>>, %arg5: memref<2048x128xf32, #tpu.memory_space<vmem>>) attributes {dimension_semantics = [#tpu.dimension_semantics<arbitrary>], iteration_bounds = array<i64: 1>, scalar_prefetch = 0 : i64, scratch_operands = 0 : i64, tpu.core_type = #tpu.core_type<tc>, window_params = [{pipeline_mode = #tpu.pipeline_mode<synchronous>, transform_indices = @transform_0, window_bounds = array<i64: 2048, 8>}, {pipeline_mode = #tpu.pipeline_mode<synchronous>, transform_indices = @transform_1, window_bounds = array<i64: 1, 8>}, {pipeline_mode = #tpu.pipeline_mode<synchronous>, transform_indices = @transform_2, window_bounds = array<i64: 1, 8>}, {pipeline_mode = #tpu.pipeline_mode<synchronous>, transform_indices = @transform_3, window_bounds = array<i64: 8, 128>}, {pipeline_mode = #tpu.pipeline_mode<synchronous>, transform_indices = @transform_4, window_bounds = array<i64: 2048, 128>}]} {
    %c0 = arith.constant 0 : index
    %c0_0 = arith.constant 0 : index
    %0 = vector.load %arg1[%c0, %c0_0] : memref<2048x8xf32, #tpu.memory_space<vmem>>, vector<2048x8xf32>
    %c0_1 = arith.constant 0 : index
    %c0_2 = arith.constant 0 : index
    %1 = vector.load %arg2[%c0_1, %c0_2] : memref<1x8xf32, #tpu.memory_space<vmem>>, vector<1x8xf32>
    %2 = vector.broadcast %1 : vector<1x8xf32> to vector<2048x8xf32>
    %3 = arith.mulf %0, %2 : vector<2048x8xf32>
    %c0_3 = arith.constant 0 : index
    %c0_4 = arith.constant 0 : index
    %4 = vector.load %arg3[%c0_3, %c0_4] : memref<1x8xf32, #tpu.memory_space<vmem>>, vector<1x8xf32>
    %5 = vector.broadcast %4 : vector<1x8xf32> to vector<2048x8xf32>
    %6 = arith.addf %3, %5 : vector<2048x8xf32>
    %cst = arith.constant 0.000000e+00 : f32
    %7 = vector.broadcast %cst : f32 to vector<2048x8xf32>
    %8 = arith.maximumf %6, %7 : vector<2048x8xf32>
    %9 = arith.truncf %8 : vector<2048x8xf32> to vector<2048x8xbf16>
    %c0_5 = arith.constant 0 : index
    %c0_6 = arith.constant 0 : index
    %10 = vector.load %arg4[%c0_5, %c0_6] : memref<8x128xbf16, #tpu.memory_space<vmem>>, vector<8x128xbf16>
    %cst_7 = arith.constant dense<0.000000e+00> : vector<2048x128xf32>
    %11 = tpu.matmul %9, %10, %cst_7 {dimension_numbers = #tpu.dot_dimension_numbers<[1], [0], [0], [1], [0, 0, 1, 1], [], []>} : vector<2048x8xbf16>, vector<8x128xbf16>, vector<2048x128xf32> -> vector<2048x128xf32>
    %c0_8 = arith.constant 0 : index
    %c0_9 = arith.constant 0 : index
    %12 = vector.load %arg5[%c0_8, %c0_9] : memref<2048x128xf32, #tpu.memory_space<vmem>>, vector<2048x128xf32>
    tpu.vector_store %arg5[%c0_8, %c0_9], %11 {strides = array<i32>} : memref<2048x128xf32, #tpu.memory_space<vmem>>, vector<2048x128xf32>,
    return
  }
  func.func @transform_0(%arg0: i32) -> (i32, i32) {
    %c0_i32 = arith.constant 0 : i32
    %c0_i32_0 = arith.constant 0 : i32
    %c0_i32_1 = arith.constant 0 : i32
    return %c0_i32, %c0_i32_0 : i32, i32
  }
  func.func @transform_1(%arg0: i32) -> (i32, i32) {
    %c0_i32 = arith.constant 0 : i32
    %c0_i32_0 = arith.constant 0 : i32
    %c0_i32_1 = arith.constant 0 : i32
    return %c0_i32, %c0_i32_0 : i32, i32
  }
  func.func @transform_2(%arg0: i32) -> (i32, i32) {
    %c0_i32 = arith.constant 0 : i32
    %c0_i32_0 = arith.constant 0 : i32
    %c0_i32_1 = arith.constant 0 : i32
    return %c0_i32, %c0_i32_0 : i32, i32
  }
  func.func @transform_3(%arg0: i32) -> (i32, i32) {
    %c0_i32 = arith.constant 0 : i32
    %c0_i32_0 = arith.constant 0 : i32
    %c0_i32_1 = arith.constant 0 : i32
    return %c0_i32, %c0_i32_0 : i32, i32
  }
  func.func @transform_4(%arg0: i32) -> (i32, i32) {
    %c0_i32 = arith.constant 0 : i32
    %c0_i32_0 = arith.constant 0 : i32
    %c0_i32_1 = arith.constant 0 : i32
    return %c0_i32, %c0_i32_0 : i32, i32
  }
}

</mosaic_0001>

<bundles_post_ra>
// kernel: _forward_impl.5
= control target key start
LH: loop header
LB: loop body
LE: loop exit
PB: predicated region body
PF: predicated region fallthrough
CT: control target
= control target key end

     0   :  { %7 = vsyncpa [#allocation3], 0  ;;  %s463_s0 = inlined_call_operand.hbm [shape: f32[2,32], index: 0, kind: input, shape index: {}]   ;;  %s464_s1 = inlined_call_operand.hbm [shape: bf16[32,1024], index: 1, kind: input, shape index: {}]   ;;  %s465_s2 = inlined_call_operand.vmem [shape: f32[2,1024], index: 2, kind: output, shape index: {}]  }
   0x1   :  { %8 = vsyncpa [#allocation5], 0  ;;  %s426_s9 = smov [#allocation2]   ;;  %s427_s11 = smov [#allocation4]  }
   0x2   :  { %s15_s10 = sshll.u32 %s426_s9, 4  ;;  %s24_s12 = sshll.u32 %s427_s11, 4  ;;  %s16_s10 = int_to_ptr.vmem [resolvable:$true] %s15_s10  ;;  %s25_s12 = int_to_ptr.vmem [resolvable:$true] %s24_s12 }
   0x3   :  { %s390_s13 = scalar_lea.vmem %s16_s10, 32  ;;  %p395_p1 = scmp.lt.s32.totalorder %s16_s10, %s16_s10 }
   0x4   :  { %p391_p0 = scmp.ne.s32.totalorder %s16_s10, %s390_s13  ;;  %p396_p2 = scmp.lt.s32.totalorder %s390_s13, %s390_s13 }
   0x6   :  { %p397_p3 = por %p396_p2, %p395_p1 }
   0x8   :  { %p398_p4 = pnand %p397_p3, %p391_p0 }
   0xa   :  { %401 = shalt.err (!%p398_p4)
}
   0xb   :  { %18 = dma.hbm_to_vmem [thread:$0]  %s463_s0, 32, %s16_s10, [#allocation3]  }
   0xc   :  { %s410_s16 = scalar_lea.vmem %s25_s12, 2048  ;;  %p415_p6 = scmp.lt.s32.totalorder %s25_s12, %s25_s12 }
   0xd   :  { %p411_p5 = scmp.ne.s32.totalorder %s25_s12, %s410_s16  ;;  %p416_p7 = scmp.lt.s32.totalorder %s410_s16, %s410_s16 }
   0xf   :  { %p417_p8 = por %p416_p7, %p415_p6 }
  0x11   :  { %p418_p9 = pnand %p417_p8, %p411_p5 }
  0x13   :  { %421 = shalt.err (!%p418_p9)
}
  0x14   :  { %s428_s17 = smov 512   ;;  %s429_s18 = smov 32  }
  0x15   :  { %30 = dma.hbm_to_vmem [thread:$0]  %s464_s1, 2048, %s25_s12, [#allocation5], %s428_s17, %s428_s17, %s429_s18  }
  0x16   :  { %422 = dma.done.wait [#allocation3], 32  }
  0x17   :  { %423 = vsyncadd [#allocation3], 4294967264 }
  0x18   :  { %424 = dma.done.wait [#allocation5], 2048  }
  0x19   :  { %425 = vsyncadd [#allocation5], 4294965248  ;;  %v430_v0 = vmov 0   ;;  %v48_v1 = vld [vmem:[#allocation4 + $0x40] sm:$0xff]  ;;  %v49_v3 = vld [vmem:[#allocation4 + $0x48] sm:$0xff]  ;;  %vm136_vm0 = vcmask 261120   ;;  %v317_v37 = vlaneseq }
  0x1a   :  { %172 = vmatprep.mubr.bf16.mxu0 %v430_v0  ;;  %213 = vmatprep.mubr.bf16.mxu1 %v430_v0  ;;  %v52_v2 = vld [vmem:[#allocation4 + $0x60] sm:$0xff]  ;;  %v53_v5 = vld [vmem:[#allocation4 + $0x68] sm:$0xff]  ;;  %v50_v15 = vld [vmem:[#allocation4 + $0x50] sm:$0xff]  ;;  %v431_v35 = vmov 1983009808  }
  0x1b   :  { %v365_v4 = vcombine.high %v48_v1, %v52_v2  ;;  %v364_v6 = vcombine.low %v48_v1, %v52_v2  ;;  %v40_v7 = vld [vmem:[#allocation4] sm:$0xff]  ;;  %v367_v9 = vcombine.high %v49_v3, %v53_v5  ;;  %v366_v10 = vcombine.low %v49_v3, %v53_v5  ;;  %v41_v12 = vld [vmem:[#allocation4 + $0x8] sm:$0xff]  ;;  %v54_v16 = vld [vmem:[#allocation4 + $0x70] sm:$0xff] }
  0x1c   :  { %v44_v8 = vld [vmem:[#allocation4 + $0x20] sm:$0xff]  ;;  %v45_v13 = vld [vmem:[#allocation4 + $0x28] sm:$0xff]  ;;  %v51_v17 = vld [vmem:[#allocation4 + $0x58] sm:$0xff]  ;;  %v369_v22 = vcombine.high %v50_v15, %v54_v16  ;;  %v368_v29 = vcombine.low %v50_v15, %v54_v16  ;;  %v315_v36 = vunpack.c.l.s4 %v431_v35  ;;  %v318_v39 = vshrl.u32 %v317_v37, 7 }
  0x1d   :  { %v357_v11 = vcombine.high %v40_v7, %v44_v8  ;;  %152 = vmatprep.subr.bf16.mxu0 %v365_v4  ;;  %v359_v14 = vcombine.high %v41_v12, %v45_v13  ;;  %193 = vmatprep.subr.bf16.mxu1 %v367_v9  ;;  %v356_v18 = vcombine.low %v40_v7, %v44_v8  ;;  %v38_v19 = vld [vmem:[#allocation2] sm:$0x3]  ;;  %v42_v24 = vld [vmem:[#allocation4 + $0x10] sm:$0xff] }
  0x1e   :  { %153 = vmatpush1.bf16.msra.mxu0 %v364_v6  ;;  %v55_v20 = vld [vmem:[#allocation4 + $0x78] sm:$0xff]  ;;  %194 = vmatpush1.bf16.msra.mxu1 %v366_v10  ;;  %v358_v21 = vcombine.low %v41_v12, %v45_v13  ;;  %v46_v25 = vld [vmem:[#allocation4 + $0x30] sm:$0xff]  ;;  %v39_v26 = vpack.c.bf16 %v38_v19, %v38_v19  ;;  %v316_v38 = vunpack.c.0.s8 %v315_v36 }
  0x1f   :  { %154 = vmatprep.subr.bf16.mxu0 %v357_v11  ;;  %195 = vmatprep.subr.bf16.mxu1 %v359_v14  ;;  %v371_v23 = vcombine.high %v51_v17, %v55_v20  ;;  %v43_v27 = vld [vmem:[#allocation4 + $0x18] sm:$0xff]  ;;  %v370_v30 = vcombine.low %v51_v17, %v55_v20  ;;  %v361_v31 = vcombine.high %v42_v24, %v46_v25 }
  0x20   :  { %v47_v28 = vld [vmem:[#allocation4 + $0x38] sm:$0xff]  ;;  %v360_v33 = vcombine.low %v42_v24, %v46_v25  ;;  %v319_v42 = vsub.s32 %v316_v38, %v318_v39 }
  0x21   :  { %v363_v32 = vcombine.high %v43_v27, %v47_v28  ;;  %v362_v34 = vcombine.low %v43_v27, %v47_v28 }
  0x22   :  { %155 = vmatpush1.bf16.msra.mxu0 %v356_v18  ;;  %196 = vmatpush1.bf16.msra.mxu1 %v358_v21 }
  0x23   :  { %234 = vmatprep.subr.bf16.mxu0 %v369_v22  ;;  %275 = vmatprep.subr.bf16.mxu1 %v371_v23 }
  0x25   :  { %372 = vmatmul.mubr.msk.bf16.vlgmr.msra.gmra.mxu0 %vm136_vm0, %v39_v26  ;;  %373 = vmatmul.mubr.msk.bf16.vlgmr.msra.gmra.mxu1 %vm136_vm0, %v39_v26 }
  0x26   :  { %235 = vmatpush1.bf16.msra.mxu0 %v368_v29  ;;  %276 = vmatpush1.bf16.msra.mxu1 %v370_v30 }
  0x27   :  { %236 = vmatprep.subr.bf16.mxu0 %v361_v31  ;;  %277 = vmatprep.subr.bf16.mxu1 %v363_v32 }
  0x28   :  { %254 = vmatprep.mubr.bf16.mxu0 %v430_v0  ;;  %295 = vmatprep.mubr.bf16.mxu1 %v430_v0 }
  0x2a   :  { %237 = vmatpush1.bf16.msra.mxu0 %v360_v33  ;;  %278 = vmatpush1.bf16.msra.mxu1 %v362_v34 }
  0x2d   :  { %374 = vmatmul.mubr.msk.bf16.vlgmr.msra.gmra.mxu0 %vm136_vm0, %v39_v26  ;;  %375 = vmatmul.mubr.msk.bf16.vlgmr.msra.gmra.mxu1 %vm136_vm0, %v39_v26 }
  0xe5   :  { %v174_v40 = vpop.f32.mrf.mxu0  ;;  %v215_v41 = vpop.f32.mrf.mxu1 }
  0xe7   :  { %v176_v43 = vpop.f32.mrf.mxu0  ;;  %v217_v45 = vpop.f32.mrf.mxu1 }
  0xe8   :  { %v312_v44 = vcombine.low %v174_v40, %v176_v43  ;;  %v313_v46 = vcombine.low %v215_v41, %v217_v45 }
  0xe9   :  { %v178_v47 = vpop.f32.mrf.mxu0  ;;  %v219_v49 = vpop.f32.mrf.mxu1 }
  0xea   :  { %v320_v48 = vrot.slane %v312_v44, %v319_v42  ;;  %v327_v50 = vrot.slane %v313_v46, %v319_v42 }
  0xeb   :  { %v179_v51 = vpop.f32.mrf.mxu0  ;;  %v220_v52 = vpop.f32.mrf.mxu1 }
  0xec   :  { %v328_v53 = vcombine.low %v320_v48, %v327_v50 }
  0xed   :  { %v256_v54 = vpop.f32.mrf.mxu0  ;;  %v297_v55 = vpop.f32.mrf.mxu1 }
  0xee   :  { %348 = vst [vmem:[%s465_s2] sm:$0xff] %v328_v53 }
  0xef   :  { %v258_v56 = vpop.f32.mrf.mxu0  ;;  %v299_v58 = vpop.f32.mrf.mxu1 }
  0xf0   :  { %v329_v57 = vcombine.low %v256_v54, %v258_v56  ;;  %v330_v59 = vcombine.low %v297_v55, %v299_v58 }
  0xf1   :  { %v260_v60 = vpop.f32.mrf.mxu0  ;;  %v301_v62 = vpop.f32.mrf.mxu1 }
  0xf2   :  { %v337_v61 = vrot.slane %v329_v57, %v319_v42  ;;  %v344_v63 = vrot.slane %v330_v59, %v319_v42 }
  0xf3   :  { %v261_v0 = vpop.f32.mrf.mxu0  ;;  %v302_v1 = vpop.f32.mrf.mxu1 }
  0xf4   :  { %v345_v2 = vcombine.low %v337_v61, %v344_v63 }
  0xf6   :  { %349 = vst [vmem:[%s465_s2 + $0x8] sm:$0xff] %v345_v2 }
  0xf7   :  { %354 = vsyncpa [#allocation3], 1 }
  0xf8   :  { %355 = vsyncpa [#allocation5], 1 }

// kernel: _forward_impl.6
= control target key start
LH: loop header
LB: loop body
LE: loop exit
PB: predicated region body
PF: predicated region fallthrough
CT: control target
= control target key end

     0   :  { %9 = vsyncpa [#allocation3], 0  ;;  %s366_s15 = smov [#allocation2]   ;;  %s464_s0 = inlined_call_operand.vmem [shape: f32[32,64], index: 0, kind: input, shape index: {}]   ;;  %s465_s1 = inlined_call_operand.vmem [shape: f32[1,64], index: 1, kind: input, shape index: {}]   ;;  %s466_s2 = inlined_call_operand.vmem [shape: f32[1,64], index: 2, kind: input, shape index: {}]   ;;  %s467_s3 = inlined_call_operand.hbm [shape: bf16[64,512], index: 3, kind: input, shape index: {}]   ;;  %s468_s4 = inlined_call_operand.vmem [shape: f32[32,512], index: 4, kind: output, shape index: {}]  }
   0x1   :  { %s21_s16 = sshll.u32 %s366_s15, 4  ;;  %s22_s16 = int_to_ptr.vmem [resolvable:$true] %s21_s16 }
   0x2   :  { %s352_s17 = scalar_lea.vmem %s22_s16, 2048  ;;  %p357_p1 = scmp.lt.s32.totalorder %s22_s16, %s22_s16 }
   0x3   :  { %p353_p0 = scmp.ne.s32.totalorder %s22_s16, %s352_s17  ;;  %p358_p2 = scmp.lt.s32.totalorder %s352_s17, %s352_s17 }
   0x5   :  { %p359_p3 = por %p358_p2, %p357_p1 }
   0x7   :  { %p360_p4 = pnand %p359_p3, %p353_p0 }
   0x9   :  { %363 = shalt.err (!%p360_p4)
}
   0xa   :  { %s367_s18 = smov 256   ;;  %s368_s19 = smov 16  }
   0xb   :  { %27 = dma.hbm_to_vmem [thread:$0]  %s467_s3, 2048, %s22_s16, [#allocation3], %s367_s18, %s367_s18, %s368_s19  }
   0xc   :  { %364 = dma.done.wait [#allocation3], 2048  }
   0xd   :  { %365 = vsyncadd [#allocation3], 4294965248  ;;  %v369_v0 = vmov 0   ;;  %v320_v1 = vld [vmem:[#allocation2 + $0x64] ss:$16 sps:$4 sm:$0xff]   ;;  %v33_v17 = vld [vmem:[%s464_s0 + $0x8] sm:$0xff] }
   0xe   :  { %199 = vmatprep.mubr.bf16.mxu0 %v369_v0  ;;  %252 = vmatprep.mubr.bf16.mxu1 %v369_v0  ;;  %v322_v2 = vld [vmem:[#allocation2 + $0x6c] ss:$16 sps:$4 sm:$0xff]   ;;  %v324_v3 = vld [vmem:[#allocation2 + $0x60] ss:$16 sps:$4 sm:$0xff]   ;;  %v325_v4 = vld [vmem:[#allocation2 + $0x68] ss:$16 sps:$4 sm:$0xff]  }
   0xf   :  { %175 = vmatprep.subr.bf16.mxu0 %v320_v1  ;;  %228 = vmatprep.subr.bf16.mxu1 %v322_v2  ;;  %v326_v5 = vld [vmem:[#allocation2 + $0x44] ss:$16 sps:$4 sm:$0xff]   ;;  %v328_v6 = vld [vmem:[#allocation2 + $0x4c] ss:$16 sps:$4 sm:$0xff]   ;;  %v330_v7 = vld [vmem:[#allocation2 + $0x40] ss:$16 sps:$4 sm:$0xff]  }
  0x10   :  { %176 = vmatpush1.bf16.msra.mxu0 %v324_v3  ;;  %229 = vmatpush1.bf16.msra.mxu1 %v325_v4  ;;  %v331_v8 = vld [vmem:[#allocation2 + $0x48] ss:$16 sps:$4 sm:$0xff]   ;;  %v332_v9 = vld [vmem:[#allocation2 + $0x24] ss:$16 sps:$4 sm:$0xff]   ;;  %v334_v10 = vld [vmem:[#allocation2 + $0x2c] ss:$16 sps:$4 sm:$0xff]  }
  0x11   :  { %177 = vmatprep.subr.bf16.mxu0 %v326_v5  ;;  %230 = vmatprep.subr.bf16.mxu1 %v328_v6  ;;  %v336_v11 = vld [vmem:[#allocation2 + $0x20] ss:$16 sps:$4 sm:$0xff]   ;;  %v337_v12 = vld [vmem:[#allocation2 + $0x28] ss:$16 sps:$4 sm:$0xff]   ;;  %v338_v13 = vld [vmem:[#allocation2 + $0x4] ss:$16 sps:$4 sm:$0xff]  }
  0x12   :  { %v340_v14 = vld [vmem:[#allocation2 + $0xc] ss:$16 sps:$4 sm:$0xff]   ;;  %v342_v15 = vld [vmem:[#allocation2] ss:$16 sps:$4 sm:$0xff]   ;;  %v343_v20 = vld [vmem:[#allocation2 + $0x8] ss:$16 sps:$4 sm:$0xff]  }
  0x13   :  { %v32_v16 = vld [vmem:[%s464_s0] sm:$0xff]  ;;  %v34_v23 = vld [vmem:[%s464_s0 + $0x10] sm:$0xff]  ;;  %v35_v24 = vld [vmem:[%s464_s0 + $0x18] sm:$0xff]  ;;  %vm160_vm0 = vcmask 523264  }
  0x14   :  { %178 = vmatpush1.bf16.msra.mxu0 %v330_v7  ;;  %231 = vmatpush1.bf16.msra.mxu1 %v331_v8  ;;  %v294_v18 = vld [vmem:[%s465_s1] ss:$0 sm:$0xff] }
  0x15   :  { %179 = vmatprep.subr.bf16.mxu0 %v332_v9  ;;  %232 = vmatprep.subr.bf16.mxu1 %v334_v10  ;;  %v295_v19 = vld [vmem:[%s466_s2] ss:$0 sm:$0xff]  ;;  %v43_v21 = vmul.f32 %v294_v18, %v32_v16  ;;  %v44_v22 = vmul.f32 %v294_v18, %v33_v17  ;;  %v45_v25 = vmul.f32 %v294_v18, %v34_v23 }
  0x16   :  { %v46_v26 = vmul.f32 %v294_v18, %v35_v24 }
  0x17   :  { %v54_v27 = vadd.f32 %v295_v19, %v43_v21  ;;  %v55_v28 = vadd.f32 %v295_v19, %v44_v22  ;;  %v56_v31 = vadd.f32 %v295_v19, %v45_v25 }
  0x18   :  { %180 = vmatpush1.bf16.msra.mxu0 %v336_v11  ;;  %233 = vmatpush1.bf16.msra.mxu1 %v337_v12  ;;  %v57_v32 = vadd.f32 %v295_v19, %v46_v26 }
  0x19   :  { %181 = vmatprep.subr.bf16.mxu0 %v338_v13  ;;  %234 = vmatprep.subr.bf16.mxu1 %v340_v14  ;;  %v58_v29 = vmax.f32 %v54_v27, 0.0  ;;  %v59_v30 = vmax.f32 %v55_v28, 0.0  ;;  %v60_v34 = vmax.f32 %v56_v31, 0.0 }
  0x1a   :  { %v61_v35 = vmax.f32 %v57_v32, 0.0 }
  0x1b   :  { %v62_v33 = vpack.c.bf16 %v59_v30, %v58_v29 }
  0x1c   :  { %182 = vmatpush1.bf16.msra.mxu0 %v342_v15  ;;  %235 = vmatpush1.bf16.msra.mxu1 %v343_v20  ;;  %v63_v36 = vpack.c.bf16 %v61_v35, %v60_v34 }
  0x1f   :  { %312 = vmatmul.mubr.msk.bf16.vlgmr.msra.gmra.mxu0 %vm160_vm0, %v62_v33  ;;  %314 = vmatmul.mubr.msk.bf16.vlgmr.msra.gmra.mxu1 %vm160_vm0, %v62_v33 }
  0x20   :  { %209 = vmatprep.mubr.bf16.mxu0 %v369_v0  ;;  %262 = vmatprep.mubr.bf16.mxu1 %v369_v0 }
  0x27   :  { %313 = vmatmul.mubr.msk.bf16.gmra.mxu0 %vm160_vm0, %v63_v36  ;;  %315 = vmatmul.mubr.msk.bf16.gmra.mxu1 %vm160_vm0, %v63_v36 }
  0xdf   :  { %v201_v37 = vpop.f32.mrf.mxu0  ;;  %v254_v38 = vpop.f32.mrf.mxu1 }
  0xe0   :  { %273 = vst [vmem:[%s468_s4] sm:$0xff] %v201_v37  ;;  %275 = vst [vmem:[%s468_s4 + $0x10] sm:$0xff] %v254_v38 }
  0xe1   :  { %v203_v39 = vpop.f32.mrf.mxu0  ;;  %v256_v40 = vpop.f32.mrf.mxu1 }
  0xe2   :  { %274 = vst [vmem:[%s468_s4 + $0x8] sm:$0xff] %v203_v39  ;;  %276 = vst [vmem:[%s468_s4 + $0x18] sm:$0xff] %v256_v40 }
  0xe3   :  { %v205_v41 = vpop.f32.mrf.mxu0  ;;  %v258_v42 = vpop.f32.mrf.mxu1 }
  0xe4   :  { %277 = vst [vmem:[%s468_s4 + $0x20] sm:$0xff] %v205_v41  ;;  %279 = vst [vmem:[%s468_s4 + $0x30] sm:$0xff] %v258_v42 }
  0xe5   :  { %v207_v43 = vpop.f32.mrf.mxu0  ;;  %v260_v44 = vpop.f32.mrf.mxu1 }
  0xe6   :  { %278 = vst [vmem:[%s468_s4 + $0x28] sm:$0xff] %v207_v43  ;;  %280 = vst [vmem:[%s468_s4 + $0x38] sm:$0xff] %v260_v44 }
  0xe7   :  { %v211_v45 = vpop.f32.mrf.mxu0  ;;  %v264_v46 = vpop.f32.mrf.mxu1 }
  0xe8   :  { %281 = vst [vmem:[%s468_s4 + $0x40] sm:$0xff] %v211_v45  ;;  %283 = vst [vmem:[%s468_s4 + $0x50] sm:$0xff] %v264_v46 }
  0xe9   :  { %v213_v47 = vpop.f32.mrf.mxu0  ;;  %v266_v48 = vpop.f32.mrf.mxu1 }
  0xea   :  { %282 = vst [vmem:[%s468_s4 + $0x48] sm:$0xff] %v213_v47  ;;  %284 = vst [vmem:[%s468_s4 + $0x58] sm:$0xff] %v266_v48 }
  0xeb   :  { %v215_v49 = vpop.f32.mrf.mxu0  ;;  %v268_v50 = vpop.f32.mrf.mxu1 }
  0xec   :  { %285 = vst [vmem:[%s468_s4 + $0x60] sm:$0xff] %v215_v49  ;;  %287 = vst [vmem:[%s468_s4 + $0x70] sm:$0xff] %v268_v50 }
  0xed   :  { %v217_v51 = vpop.f32.mrf.mxu0  ;;  %v270_v52 = vpop.f32.mrf.mxu1 }
  0xee   :  { %286 = vst [vmem:[%s468_s4 + $0x68] sm:$0xff] %v217_v51  ;;  %288 = vst [vmem:[%s468_s4 + $0x78] sm:$0xff] %v270_v52 }
  0xef   :  { %293 = vsyncpa [#allocation3], 1 }

// kernel: _forward_impl.7
= control target key start
LH: loop header
LB: loop body
LE: loop exit
PB: predicated region body
PF: predicated region fallthrough
CT: control target
= control target key end

     0   :  { %v327_v1 = vmov 0   ;;  %vm128_vm0 = vcmask 261120   ;;  %s567_s3 = inlined_call_operand.vmem [shape: bf16[32,256], index: 3, kind: input, shape index: {}]   ;;  %s568_s0 = inlined_call_operand.vmem [shape: f32[128,32], index: 0, kind: input, shape index: {}]   ;;  %s569_s1 = inlined_call_operand.vmem [shape: f32[1,32], index: 1, kind: input, shape index: {}]   ;;  %s570_s2 = inlined_call_operand.vmem [shape: f32[1,32], index: 2, kind: input, shape index: {}]   ;;  %s571_s4 = inlined_call_operand.vmem [shape: f32[128,256], index: 4, kind: output, shape index: {}]  }
   0x1   :  { %v321_v0 = vld [vmem:[%s567_s3 + $0x14] ss:$8 sps:$4 sm:$0xff]   ;;  %185 = vmatprep.mubr.bf16.mxu0 %v327_v1  ;;  %225 = vmatprep.mubr.bf16.mxu1 %v327_v1  ;;  %v323_v2 = vld [vmem:[%s567_s3 + $0x10] ss:$8 sps:$4 sm:$0xff]   ;;  %v324_v3 = vld [vmem:[%s567_s3 + $0x4] ss:$8 sps:$4 sm:$0xff]  }
   0x2   :  { %165 = vmatprep.subr.bf16.mxu0 %v321_v0  ;;  %316 = vmatprep.subr.bf16.mxu1 %v321_v0  ;;  %v326_v4 = vld [vmem:[%s567_s3] ss:$8 sps:$4 sm:$0xff]   ;;  %v20_v13 = vld [vmem:[%s568_s0 + $0x10] sm:$0xff]  ;;  %v21_v16 = vld [vmem:[%s568_s0 + $0x18] sm:$0xff] }
   0x3   :  { %v18_v5 = vld [vmem:[%s568_s0] sm:$0xff]  ;;  %166 = vmatpush1.bf16.msra.mxu0 %v323_v2  ;;  %318 = vmatpush1.bf16.msra.mxu1 %v323_v2  ;;  %v19_v6 = vld [vmem:[%s568_s0 + $0x8] sm:$0xff]  ;;  %v28_v18 = vld [vmem:[%s568_s0 + $0x50] sm:$0xff] }
   0x4   :  { %v376_v7 = vld [vmem:[%s569_s1] ss:$0 sm:$0xff]  ;;  %167 = vmatprep.subr.bf16.mxu0 %v324_v3  ;;  %317 = vmatprep.subr.bf16.mxu1 %v324_v3  ;;  %v27_v12 = vld [vmem:[%s568_s0 + $0x48] sm:$0xff]  ;;  %v29_v19 = vld [vmem:[%s568_s0 + $0x58] sm:$0xff] }
   0x5   :  { %v381_v8 = vld [vmem:[%s570_s2] ss:$0 sm:$0xff]  ;;  %v41_v9 = vmul.f32 %v376_v7, %v18_v5  ;;  %v42_v10 = vmul.f32 %v376_v7, %v19_v6  ;;  %v50_v15 = vmul.f32 %v376_v7, %v27_v12  ;;  %v43_v17 = vmul.f32 %v376_v7, %v20_v13  ;;  %v23_v35 = vld [vmem:[%s568_s0 + $0x28] sm:$0xff]  ;;  %v24_v55 = vld [vmem:[%s568_s0 + $0x30] sm:$0xff] }
   0x6   :  { %v26_v11 = vld [vmem:[%s568_s0 + $0x40] sm:$0xff]  ;;  %v44_v22 = vmul.f32 %v376_v7, %v21_v16  ;;  %v51_v23 = vmul.f32 %v376_v7, %v28_v18  ;;  %v52_v30 = vmul.f32 %v376_v7, %v29_v19  ;;  %v31_v39 = vld [vmem:[%s568_s0 + $0x68] sm:$0xff]  ;;  %v46_v44 = vmul.f32 %v376_v7, %v23_v35  ;;  %v25_v56 = vld [vmem:[%s568_s0 + $0x38] sm:$0xff] }
   0x7   :  { %v49_v14 = vmul.f32 %v376_v7, %v26_v11  ;;  %v64_v20 = vadd.f32 %v381_v8, %v41_v9  ;;  %v65_v21 = vadd.f32 %v381_v8, %v42_v10  ;;  %168 = vmatpush1.bf16.msra.mxu0 %v326_v4  ;;  %319 = vmatpush1.bf16.msra.mxu1 %v326_v4  ;;  %v22_v34 = vld [vmem:[%s568_s0 + $0x20] sm:$0xff]  ;;  %v32_v57 = vld [vmem:[%s568_s0 + $0x70] sm:$0xff]  ;;  %v33_v58 = vld [vmem:[%s568_s0 + $0x78] sm:$0xff] }
   0x8   :  { %v73_v25 = vadd.f32 %v381_v8, %v50_v15  ;;  %v66_v26 = vadd.f32 %v381_v8, %v43_v17  ;;  %v67_v29 = vadd.f32 %v381_v8, %v44_v22  ;;  %v74_v33 = vadd.f32 %v381_v8, %v51_v23  ;;  %v30_v38 = vld [vmem:[%s568_s0 + $0x60] sm:$0xff] }
   0x9   :  { %v72_v24 = vadd.f32 %v381_v8, %v49_v14  ;;  %v80_v27 = vmax.f32 %v64_v20, 0.0  ;;  %v81_v28 = vmax.f32 %v65_v21, 0.0  ;;  %v75_v37 = vadd.f32 %v381_v8, %v52_v30 }
   0xa   :  { %v89_v32 = vmax.f32 %v73_v25, 0.0  ;;  %v82_v41 = vmax.f32 %v66_v26, 0.0  ;;  %v83_v42 = vmax.f32 %v67_v29, 0.0  ;;  %v45_v43 = vmul.f32 %v376_v7, %v22_v34 }
   0xb   :  { %v88_v31 = vmax.f32 %v72_v24, 0.0  ;;  %v96_v36 = vpack.c.bf16 %v81_v28, %v80_v27  ;;  %v90_v45 = vmax.f32 %v74_v33, 0.0  ;;  %v91_v46 = vmax.f32 %v75_v37, 0.0 }
   0xc   :  { %v53_v47 = vmul.f32 %v376_v7, %v30_v38  ;;  %v54_v48 = vmul.f32 %v376_v7, %v31_v39  ;;  %v97_v49 = vpack.c.bf16 %v83_v42, %v82_v41  ;;  %v68_v50 = vadd.f32 %v381_v8, %v45_v43 }
   0xd   :  { %v100_v40 = vpack.c.bf16 %v89_v32, %v88_v31  ;;  %308 = vmatmul.mubr.msk.bf16.vlgmr.msra.gmra.mxu0 %vm128_vm0, %v96_v36  ;;  %v69_v51 = vadd.f32 %v381_v8, %v46_v44  ;;  %v101_v52 = vpack.c.bf16 %v91_v46, %v90_v45  ;;  %v47_v61 = vmul.f32 %v376_v7, %v24_v55 }
   0xe   :  { %195 = vmatprep.mubr.bf16.mxu0 %v327_v1  ;;  %v76_v53 = vadd.f32 %v381_v8, %v53_v47  ;;  %v77_v54 = vadd.f32 %v381_v8, %v54_v48  ;;  %v84_v59 = vmax.f32 %v68_v50, 0.0  ;;  %v48_v62 = vmul.f32 %v376_v7, %v25_v56 }
   0xf   :  { %312 = vmatmul.mubr.msk.bf16.vlgmr.msra.gmra.mxu1 %vm128_vm0, %v100_v40  ;;  %v85_v60 = vmax.f32 %v69_v51, 0.0  ;;  %v55_v2 = vmul.f32 %v376_v7, %v32_v57  ;;  %v56_v3 = vmul.f32 %v376_v7, %v33_v58  ;;  %v70_v5 = vadd.f32 %v381_v8, %v47_v61 }
  0x10   :  { %235 = vmatprep.mubr.bf16.mxu1 %v327_v1  ;;  %v92_v63 = vmax.f32 %v76_v53, 0.0  ;;  %v93_v0 = vmax.f32 %v77_v54, 0.0  ;;  %v71_v6 = vadd.f32 %v381_v8, %v48_v62 }
  0x11   :  { %v98_v4 = vpack.c.bf16 %v85_v60, %v84_v59  ;;  %v78_v10 = vadd.f32 %v381_v8, %v55_v2  ;;  %v79_v11 = vadd.f32 %v381_v8, %v56_v3  ;;  %v86_v12 = vmax.f32 %v70_v5, 0.0 }
  0x12   :  { %v102_v9 = vpack.c.bf16 %v93_v0, %v92_v63  ;;  %v87_v13 = vmax.f32 %v71_v6, 0.0 }
  0x13   :  { %v94_v7 = vmax.f32 %v78_v10, 0.0  ;;  %v95_v14 = vmax.f32 %v79_v11, 0.0 }
  0x14   :  { %v99_v15 = vpack.c.bf16 %v87_v13, %v86_v12 }
  0x15   :  { %309 = vmatmul.mubr.msk.bf16.gmra.mxu0 %vm128_vm0, %v97_v49  ;;  %v103_v16 = vpack.c.bf16 %v95_v14, %v94_v7 }
  0x16   :  { %205 = vmatprep.mubr.bf16.mxu0 %v327_v1 }
  0x17   :  { %313 = vmatmul.mubr.msk.bf16.gmra.mxu1 %vm128_vm0, %v101_v52 }
  0x18   :  { %245 = vmatprep.mubr.bf16.mxu1 %v327_v1 }
  0x1d   :  { %310 = vmatmul.mubr.msk.bf16.gmra.mxu0 %vm128_vm0, %v98_v4 }
  0x1e   :  { %215 = vmatprep.mubr.bf16.mxu0 %v327_v1 }
  0x1f   :  { %314 = vmatmul.mubr.msk.bf16.gmra.mxu1 %vm128_vm0, %v102_v9 }
  0x20   :  { %255 = vmatprep.mubr.bf16.mxu1 %v327_v1 }
  0x25   :  { %311 = vmatmul.mubr.msk.bf16.gmra.mxu0 %vm128_vm0, %v99_v15 }
  0x27   :  { %315 = vmatmul.mubr.msk.bf16.gmra.mxu1 %vm128_vm0, %v103_v16 }
  0xcd   :  { %v187_v17 = vpop.f32.mrf.mxu0 }
  0xce   :  { %266 = vst [vmem:[%s571_s4] sm:$0xff] %v187_v17 }
  0xcf   :  { %v227_v8 = vpop.f32.mrf.mxu1  ;;  %v189_v18 = vpop.f32.mrf.mxu0 }
  0xd0   :  { %282 = vst [vmem:[%s571_s4 + $0x80] sm:$0xff] %v227_v8  ;;  %267 = vst [vmem:[%s571_s4 + $0x8] sm:$0xff] %v189_v18 }
  0xd1   :  { %v229_v1 = vpop.f32.mrf.mxu1  ;;  %v191_v19 = vpop.f32.mrf.mxu0 }
  0xd2   :  { %283 = vst [vmem:[%s571_s4 + $0x88] sm:$0xff] %v229_v1  ;;  %268 = vst [vmem:[%s571_s4 + $0x10] sm:$0xff] %v191_v19 }
  0xd3   :  { %v231_v20 = vpop.f32.mrf.mxu1  ;;  %v193_v21 = vpop.f32.mrf.mxu0 }
  0xd4   :  { %284 = vst [vmem:[%s571_s4 + $0x90] sm:$0xff] %v231_v20  ;;  %269 = vst [vmem:[%s571_s4 + $0x18] sm:$0xff] %v193_v21 }
  0xd5   :  { %v233_v22 = vpop.f32.mrf.mxu1  ;;  %v197_v23 = vpop.f32.mrf.mxu0 }
  0xd6   :  { %285 = vst [vmem:[%s571_s4 + $0x98] sm:$0xff] %v233_v22  ;;  %270 = vst [vmem:[%s571_s4 + $0x20] sm:$0xff] %v197_v23 }
  0xd7   :  { %v237_v24 = vpop.f32.mrf.mxu1  ;;  %v199_v25 = vpop.f32.mrf.mxu0 }
  0xd8   :  { %286 = vst [vmem:[%s571_s4 + $0xa0] sm:$0xff] %v237_v24  ;;  %271 = vst [vmem:[%s571_s4 + $0x28] sm:$0xff] %v199_v25 }
  0xd9   :  { %v239_v26 = vpop.f32.mrf.mxu1  ;;  %v201_v27 = vpop.f32.mrf.mxu0 }
  0xda   :  { %287 = vst [vmem:[%s571_s4 + $0xa8] sm:$0xff] %v239_v26  ;;  %272 = vst [vmem:[%s571_s4 + $0x30] sm:$0xff] %v201_v27 }
  0xdb   :  { %v241_v28 = vpop.f32.mrf.mxu1  ;;  %v203_v29 = vpop.f32.mrf.mxu0 }
  0xdc   :  { %288 = vst [vmem:[%s571_s4 + $0xb0] sm:$0xff] %v241_v28  ;;  %273 = vst [vmem:[%s571_s4 + $0x38] sm:$0xff] %v203_v29 }
  0xdd   :  { %v243_v30 = vpop.f32.mrf.mxu1  ;;  %v207_v31 = vpop.f32.mrf.mxu0 }
  0xde   :  { %289 = vst [vmem:[%s571_s4 + $0xb8] sm:$0xff] %v243_v30  ;;  %274 = vst [vmem:[%s571_s4 + $0x40] sm:$0xff] %v207_v31 }
  0xdf   :  { %v247_v32 = vpop.f32.mrf.mxu1  ;;  %v209_v33 = vpop.f32.mrf.mxu0 }
  0xe0   :  { %290 = vst [vmem:[%s571_s4 + $0xc0] sm:$0xff] %v247_v32  ;;  %275 = vst [vmem:[%s571_s4 + $0x48] sm:$0xff] %v209_v33 }
  0xe1   :  { %v249_v34 = vpop.f32.mrf.mxu1  ;;  %v211_v35 = vpop.f32.mrf.mxu0 }
  0xe2   :  { %291 = vst [vmem:[%s571_s4 + $0xc8] sm:$0xff] %v249_v34  ;;  %276 = vst [vmem:[%s571_s4 + $0x50] sm:$0xff] %v211_v35 }
  0xe3   :  { %v251_v36 = vpop.f32.mrf.mxu1  ;;  %v213_v37 = vpop.f32.mrf.mxu0 }
  0xe4   :  { %292 = vst [vmem:[%s571_s4 + $0xd0] sm:$0xff] %v251_v36  ;;  %277 = vst [vmem:[%s571_s4 + $0x58] sm:$0xff] %v213_v37 }
  0xe5   :  { %v253_v38 = vpop.f32.mrf.mxu1  ;;  %v217_v39 = vpop.f32.mrf.mxu0 }
  0xe6   :  { %293 = vst [vmem:[%s571_s4 + $0xd8] sm:$0xff] %v253_v38  ;;  %278 = vst [vmem:[%s571_s4 + $0x60] sm:$0xff] %v217_v39 }
  0xe7   :  { %v257_v40 = vpop.f32.mrf.mxu1  ;;  %v219_v41 = vpop.f32.mrf.mxu0 }
  0xe8   :  { %294 = vst [vmem:[%s571_s4 + $0xe0] sm:$0xff] %v257_v40  ;;  %279 = vst [vmem:[%s571_s4 + $0x68] sm:$0xff] %v219_v41 }
  0xe9   :  { %v259_v42 = vpop.f32.mrf.mxu1  ;;  %v221_v43 = vpop.f32.mrf.mxu0 }
  0xea   :  { %295 = vst [vmem:[%s571_s4 + $0xe8] sm:$0xff] %v259_v42  ;;  %280 = vst [vmem:[%s571_s4 + $0x70] sm:$0xff] %v221_v43 }
  0xeb   :  { %v261_v44 = vpop.f32.mrf.mxu1  ;;  %v223_v45 = vpop.f32.mrf.mxu0 }
  0xec   :  { %296 = vst [vmem:[%s571_s4 + $0xf0] sm:$0xff] %v261_v44  ;;  %281 = vst [vmem:[%s571_s4 + $0x78] sm:$0xff] %v223_v45 }
  0xed   :  { %v263_v46 = vpop.f32.mrf.mxu1 }
  0xee   :  { %297 = vst [vmem:[%s571_s4 + $0xf8] sm:$0xff] %v263_v46 }

// kernel: _forward_impl.8
= control target key start
LH: loop header
LB: loop body
LE: loop exit
PB: predicated region body
PF: predicated region fallthrough
CT: control target
= control target key end

     0   :  { %vm328_vm0 = vcmask 130048   ;;  %s1501_s3 = inlined_call_operand.vmem [shape: bf16[16,128], index: 3, kind: input, shape index: {}]   ;;  %s1502_s0 = inlined_call_operand.vmem [shape: f32[512,16], index: 0, kind: input, shape index: {}]   ;;  %s1503_s1 = inlined_call_operand.vmem [shape: f32[1,16], index: 1, kind: input, shape index: {}]   ;;  %s1504_s2 = inlined_call_operand.vmem [shape: f32[1,16], index: 2, kind: input, shape index: {}]   ;;  %s1505_s4 = inlined_call_operand.vmem [shape: f32[512,128], index: 4, kind: output, shape index: {}]  }
   0x1   :  { %v918_v0 = vld [vmem:[%s1501_s3] sm:$0xff]   ;;  %v19_v2 = vld [vmem:[%s1502_s0 + $0x8] sm:$0xff]  ;;  %v20_v11 = vld [vmem:[%s1502_s0 + $0x10] sm:$0xff] }
   0x2   :  { %v18_v1 = vld [vmem:[%s1502_s0] sm:$0xff]  ;;  %850 = vmatprep.subr.bf16.mxu0 %v918_v0  ;;  %916 = vmatprep.subr.bf16.mxu1 %v918_v0  ;;  %v51_v8 = vld [vmem:[%s1502_s0 + $0x108] sm:$0xff]  ;;  %v21_v12 = vld [vmem:[%s1502_s0 + $0x18] sm:$0xff] }
   0x3   :  { %v956_v3 = vld [vmem:[%s1503_s1] ss:$0 sm:$0xff]  ;;  %851 = vmatpush3.bf16.msra.mxu0 %v918_v0  ;;  %917 = vmatpush3.bf16.msra.mxu1 %v918_v0  ;;  %v52_v13 = vld [vmem:[%s1502_s0 + $0x110] sm:$0xff]  ;;  %v53_v18 = vld [vmem:[%s1502_s0 + $0x118] sm:$0xff] }
   0x4   :  { %v89_v4 = vmul.f32 %v956_v3, %v18_v1  ;;  %v90_v5 = vmul.f32 %v956_v3, %v19_v2  ;;  %v963_v6 = vld [vmem:[%s1504_s2] ss:$0 sm:$0xff]  ;;  %v122_v10 = vmul.f32 %v956_v3, %v51_v8  ;;  %v91_v16 = vmul.f32 %v956_v3, %v20_v11  ;;  %v23_v28 = vld [vmem:[%s1502_s0 + $0x28] sm:$0xff]  ;;  %v24_v39 = vld [vmem:[%s1502_s0 + $0x30] sm:$0xff] }
   0x5   :  { %v50_v7 = vld [vmem:[%s1502_s0 + $0x100] sm:$0xff]  ;;  %v92_v17 = vmul.f32 %v956_v3, %v21_v12  ;;  %v123_v21 = vmul.f32 %v956_v3, %v52_v13  ;;  %v124_v22 = vmul.f32 %v956_v3, %v53_v18  ;;  %v55_v34 = vld [vmem:[%s1502_s0 + $0x128] sm:$0xff]  ;;  %v25_v40 = vld [vmem:[%s1502_s0 + $0x38] sm:$0xff]  ;;  %v94_v44 = vmul.f32 %v956_v3, %v23_v28 }
   0x6   :  { %v121_v9 = vmul.f32 %v956_v3, %v50_v7  ;;  %v160_v14 = vadd.f32 %v963_v6, %v89_v4  ;;  %v161_v15 = vadd.f32 %v963_v6, %v90_v5  ;;  %v193_v20 = vadd.f32 %v963_v6, %v122_v10  ;;  %v22_v23 = vld [vmem:[%s1502_s0 + $0x20] sm:$0xff]  ;;  %v56_v45 = vld [vmem:[%s1502_s0 + $0x130] sm:$0xff]  ;;  %v57_v50 = vld [vmem:[%s1502_s0 + $0x138] sm:$0xff] }
   0x7   :  { %v162_v26 = vadd.f32 %v963_v6, %v91_v16  ;;  %v163_v27 = vadd.f32 %v963_v6, %v92_v17  ;;  %v194_v31 = vadd.f32 %v963_v6, %v123_v21  ;;  %v195_v32 = vadd.f32 %v963_v6, %v124_v22  ;;  %v54_v33 = vld [vmem:[%s1502_s0 + $0x120] sm:$0xff]  ;;  %v27_v0 = vld [vmem:[%s1502_s0 + $0x48] sm:$0xff]  ;;  %v28_v13 = vld [vmem:[%s1502_s0 + $0x50] sm:$0xff] }
   0x8   :  { %v192_v19 = vadd.f32 %v963_v6, %v121_v9  ;;  %v224_v24 = vmax.f32 %v160_v14, 0.0  ;;  %v225_v25 = vmax.f32 %v161_v15, 0.0  ;;  %v257_v30 = vmax.f32 %v193_v20, 0.0  ;;  %v26_v55 = vld [vmem:[%s1502_s0 + $0x40] sm:$0xff]  ;;  %v59_v8 = vld [vmem:[%s1502_s0 + $0x148] sm:$0xff]  ;;  %v29_v14 = vld [vmem:[%s1502_s0 + $0x58] sm:$0xff] }
   0x9   :  { %v226_v36 = vmax.f32 %v162_v26, 0.0  ;;  %v227_v37 = vmax.f32 %v163_v27, 0.0  ;;  %v93_v38 = vmul.f32 %v956_v3, %v22_v23  ;;  %v258_v42 = vmax.f32 %v194_v31, 0.0  ;;  %v58_v7 = vld [vmem:[%s1502_s0 + $0x140] sm:$0xff] }
   0xa   :  { %v256_v29 = vmax.f32 %v192_v19, 0.0  ;;  %v288_v35 = vpack.c.bf16 %v225_v25, %v224_v24  ;;  %v259_v43 = vmax.f32 %v195_v32, 0.0  ;;  %v125_v48 = vmul.f32 %v956_v3, %v54_v33  ;;  %v60_v19 = vld [vmem:[%s1502_s0 + $0x150] sm:$0xff]  ;;  %v61_v24 = vld [vmem:[%s1502_s0 + $0x158] sm:$0xff] }
   0xb   :  { %v289_v46 = vpack.c.bf16 %v227_v37, %v226_v36  ;;  %v164_v47 = vadd.f32 %v963_v6, %v93_v38  ;;  %v126_v49 = vmul.f32 %v956_v3, %v55_v34  ;;  %v165_v52 = vadd.f32 %v963_v6, %v94_v44  ;;  %v31_v38 = vld [vmem:[%s1502_s0 + $0x68] sm:$0xff] }
   0xc   :  { %v304_v41 = vpack.c.bf16 %v257_v30, %v256_v29  ;;  %852 = vmatprep.mubr.msk.bf16.mxu0 %vm328_vm0, %v288_v35  ;;  %v305_v51 = vpack.c.bf16 %v259_v43, %v258_v42  ;;  %v95_v53 = vmul.f32 %v956_v3, %v24_v39  ;;  %v96_v54 = vmul.f32 %v956_v3, %v25_v40  ;;  %v30_v29 = vld [vmem:[%s1502_s0 + $0x60] sm:$0xff]  ;;  %v63_v44 = vld [vmem:[%s1502_s0 + $0x168] sm:$0xff] }
   0xd   :  { %853 = vmatmul.mubr.msk.bf16.vlgmr.msra.gmra.mxu0 %vm328_vm0, %v289_v46  ;;  %v228_v56 = vmax.f32 %v164_v47, 0.0  ;;  %v196_v57 = vadd.f32 %v963_v6, %v125_v48  ;;  %v197_v58 = vadd.f32 %v963_v6, %v126_v49  ;;  %v127_v59 = vmul.f32 %v956_v3, %v56_v45  ;;  %v62_v43 = vld [vmem:[%s1502_s0 + $0x160] sm:$0xff]  ;;  %v32_v49 = vld [vmem:[%s1502_s0 + $0x70] sm:$0xff] }
   0xe   :  { %884 = vmatprep.mubr.msk.bf16.mxu1 %vm328_vm0, %v304_v41  ;;  %v229_v60 = vmax.f32 %v165_v52, 0.0  ;;  %v166_v61 = vadd.f32 %v963_v6, %v95_v53  ;;  %v167_v62 = vadd.f32 %v963_v6, %v96_v54  ;;  %v128_v63 = vmul.f32 %v956_v3, %v57_v50  ;;  %v33_v50 = vld [vmem:[%s1502_s0 + $0x78] sm:$0xff] }
   0xf   :  { %885 = vmatmul.mubr.msk.bf16.vlgmr.msra.gmra.mxu1 %vm328_vm0, %v305_v51  ;;  %v260_v1 = vmax.f32 %v196_v57, 0.0  ;;  %v261_v2 = vmax.f32 %v197_v58, 0.0  ;;  %v198_v4 = vadd.f32 %v963_v6, %v127_v59  ;;  %v97_v5 = vmul.f32 %v956_v3, %v26_v55  ;;  %v64_v55 = vld [vmem:[%s1502_s0 + $0x170] sm:$0xff] }
  0x10   :  { %v290_v9 = vpack.c.bf16 %v229_v60, %v228_v56  ;;  %v230_v10 = vmax.f32 %v166_v61, 0.0  ;;  %v231_v11 = vmax.f32 %v167_v62, 0.0  ;;  %v199_v12 = vadd.f32 %v963_v6, %v128_v63  ;;  %v65_v60 = vld [vmem:[%s1502_s0 + $0x178] sm:$0xff] }
  0x11   :  { %v306_v15 = vpack.c.bf16 %v261_v2, %v260_v1  ;;  %v262_v16 = vmax.f32 %v198_v4, 0.0  ;;  %v98_v17 = vmul.f32 %v956_v3, %v27_v0  ;;  %v168_v18 = vadd.f32 %v963_v6, %v97_v5  ;;  %v34_v1 = vld [vmem:[%s1502_s0 + $0x80] sm:$0xff] }
  0x12   :  { %856 = vmatprep.mubr.msk.bf16.mxu0 %vm328_vm0, %v290_v9  ;;  %v291_v20 = vpack.c.bf16 %v231_v11, %v230_v10  ;;  %v263_v21 = vmax.f32 %v199_v12, 0.0  ;;  %v129_v22 = vmul.f32 %v956_v3, %v58_v7  ;;  %v130_v23 = vmul.f32 %v956_v3, %v59_v8  ;;  %v35_v12 = vld [vmem:[%s1502_s0 + $0x88] sm:$0xff] }
  0x13   :  { %888 = vmatprep.mubr.msk.bf16.mxu1 %vm328_vm0, %v306_v15  ;;  %v169_v25 = vadd.f32 %v963_v6, %v98_v17  ;;  %v232_v26 = vmax.f32 %v168_v18, 0.0  ;;  %v99_v27 = vmul.f32 %v956_v3, %v28_v13  ;;  %v100_v28 = vmul.f32 %v956_v3, %v29_v14  ;;  %v66_v17 = vld [vmem:[%s1502_s0 + $0x180] sm:$0xff]  ;;  %v67_v18 = vld [vmem:[%s1502_s0 + $0x188] sm:$0xff] }
  0x14   :  { %v307_v30 = vpack.c.bf16 %v263_v21, %v262_v16  ;;  %v200_v31 = vadd.f32 %v963_v6, %v129_v22  ;;  %v201_v32 = vadd.f32 %v963_v6, %v130_v23  ;;  %v131_v33 = vmul.f32 %v956_v3, %v60_v19  ;;  %v36_v23 = vld [vmem:[%s1502_s0 + $0x90] sm:$0xff] }
  0x15   :  { %857 = vmatmul.mubr.msk.bf16.gmra.mxu0 %vm328_vm0, %v291_v20  ;;  %v233_v34 = vmax.f32 %v169_v25, 0.0  ;;  %v170_v35 = vadd.f32 %v963_v6, %v99_v27  ;;  %v171_v36 = vadd.f32 %v963_v6, %v100_v28  ;;  %v132_v37 = vmul.f32 %v956_v3, %v61_v24  ;;  %v37_v24 = vld [vmem:[%s1502_s0 + $0x98] sm:$0xff] }
  0x16   :  { %v264_v39 = vmax.f32 %v200_v31, 0.0  ;;  %v265_v40 = vmax.f32 %v201_v32, 0.0  ;;  %v202_v41 = vadd.f32 %v963_v6, %v131_v33  ;;  %v101_v42 = vmul.f32 %v956_v3, %v30_v29  ;;  %v68_v29 = vld [vmem:[%s1502_s0 + $0x190] sm:$0xff] }
  0x17   :  { %889 = vmatmul.mubr.msk.bf16.gmra.mxu1 %vm328_vm0, %v307_v30  ;;  %v292_v45 = vpack.c.bf16 %v233_v34, %v232_v26  ;;  %v234_v46 = vmax.f32 %v170_v35, 0.0  ;;  %v235_v47 = vmax.f32 %v171_v36, 0.0  ;;  %v203_v48 = vadd.f32 %v963_v6, %v132_v37  ;;  %v69_v34 = vld [vmem:[%s1502_s0 + $0x198] sm:$0xff] }
  0x18   :  { %v308_v51 = vpack.c.bf16 %v265_v40, %v264_v39  ;;  %v266_v52 = vmax.f32 %v202_v41, 0.0  ;;  %v102_v53 = vmul.f32 %v956_v3, %v31_v38  ;;  %v172_v54 = vadd.f32 %v963_v6, %v101_v42  ;;  %v38_v39 = vld [vmem:[%s1502_s0 + $0xa0] sm:$0xff] }
  0x19   :  { %860 = vmatprep.mubr.msk.bf16.mxu0 %vm328_vm0, %v292_v45  ;;  %v293_v56 = vpack.c.bf16 %v235_v47, %v234_v46  ;;  %v267_v57 = vmax.f32 %v203_v48, 0.0  ;;  %v133_v58 = vmul.f32 %v956_v3, %v62_v43  ;;  %v134_v59 = vmul.f32 %v956_v3, %v63_v44  ;;  %v39_v48 = vld [vmem:[%s1502_s0 + $0xa8] sm:$0xff] }
  0x1a   :  { %892 = vmatprep.mubr.msk.bf16.mxu1 %vm328_vm0, %v308_v51  ;;  %v173_v61 = vadd.f32 %v963_v6, %v102_v53  ;;  %v236_v62 = vmax.f32 %v172_v54, 0.0  ;;  %v103_v63 = vmul.f32 %v956_v3, %v32_v49  ;;  %v104_v0 = vmul.f32 %v956_v3, %v33_v50  ;;  %v70_v53 = vld [vmem:[%s1502_s0 + $0x1a0] sm:$0xff]  ;;  %v71_v54 = vld [vmem:[%s1502_s0 + $0x1a8] sm:$0xff] }
  0x1b   :  { %v309_v2 = vpack.c.bf16 %v267_v57, %v266_v52  ;;  %v204_v4 = vadd.f32 %v963_v6, %v133_v58  ;;  %v205_v5 = vadd.f32 %v963_v6, %v134_v59  ;;  %v135_v7 = vmul.f32 %v956_v3, %v64_v55  ;;  %v40_v59 = vld [vmem:[%s1502_s0 + $0xb0] sm:$0xff] }
  0x1c   :  { %v237_v8 = vmax.f32 %v173_v61, 0.0  ;;  %v174_v9 = vadd.f32 %v963_v6, %v103_v63  ;;  %v175_v10 = vadd.f32 %v963_v6, %v104_v0  ;;  %v136_v11 = vmul.f32 %v956_v3, %v65_v60  ;;  %v41_v60 = vld [vmem:[%s1502_s0 + $0xb8] sm:$0xff] }
  0x1d   :  { %861 = vmatmul.mubr.msk.bf16.gmra.mxu0 %vm328_vm0, %v293_v56  ;;  %v268_v13 = vmax.f32 %v204_v4, 0.0  ;;  %v269_v14 = vmax.f32 %v205_v5, 0.0  ;;  %v206_v15 = vadd.f32 %v963_v6, %v135_v7  ;;  %v105_v16 = vmul.f32 %v956_v3, %v34_v1  ;;  %v72_v1 = vld [vmem:[%s1502_s0 + $0x1b0] sm:$0xff] }
  0x1e   :  { %v294_v19 = vpack.c.bf16 %v237_v8, %v236_v62  ;;  %v238_v20 = vmax.f32 %v174_v9, 0.0  ;;  %v239_v21 = vmax.f32 %v175_v10, 0.0  ;;  %v207_v22 = vadd.f32 %v963_v6, %v136_v11  ;;  %v73_v8 = vld [vmem:[%s1502_s0 + $0x1b8] sm:$0xff] }
  0x1f   :  { %893 = vmatmul.mubr.msk.bf16.gmra.mxu1 %vm328_vm0, %v309_v2  ;;  %v310_v25 = vpack.c.bf16 %v269_v14, %v268_v13  ;;  %v270_v26 = vmax.f32 %v206_v15, 0.0  ;;  %v106_v27 = vmul.f32 %v956_v3, %v35_v12  ;;  %v176_v28 = vadd.f32 %v963_v6, %v105_v16  ;;  %v42_v13 = vld [vmem:[%s1502_s0 + $0xc0] sm:$0xff] }
  0x20   :  { %864 = vmatprep.mubr.msk.bf16.mxu0 %vm328_vm0, %v294_v19  ;;  %v295_v30 = vpack.c.bf16 %v239_v21, %v238_v20  ;;  %v271_v31 = vmax.f32 %v207_v22, 0.0  ;;  %v137_v32 = vmul.f32 %v956_v3, %v66_v17  ;;  %v138_v33 = vmul.f32 %v956_v3, %v67_v18  ;;  %v43_v22 = vld [vmem:[%s1502_s0 + $0xc8] sm:$0xff] }
  0x21   :  { %896 = vmatprep.mubr.msk.bf16.mxu1 %vm328_vm0, %v310_v25  ;;  %v177_v35 = vadd.f32 %v963_v6, %v106_v27  ;;  %v240_v36 = vmax.f32 %v176_v28, 0.0  ;;  %v107_v37 = vmul.f32 %v956_v3, %v36_v23  ;;  %v108_v38 = vmul.f32 %v956_v3, %v37_v24  ;;  %v74_v27 = vld [vmem:[%s1502_s0 + $0x1c0] sm:$0xff]  ;;  %v75_v28 = vld [vmem:[%s1502_s0 + $0x1c8] sm:$0xff] }
  0x22   :  { %v311_v40 = vpack.c.bf16 %v271_v31, %v270_v26  ;;  %v208_v41 = vadd.f32 %v963_v6, %v137_v32  ;;  %v209_v42 = vadd.f32 %v963_v6, %v138_v33  ;;  %v139_v43 = vmul.f32 %v956_v3, %v68_v29  ;;  %v44_v33 = vld [vmem:[%s1502_s0 + $0xd0] sm:$0xff] }
  0x23   :  { %v241_v44 = vmax.f32 %v177_v35, 0.0  ;;  %v178_v45 = vadd.f32 %v963_v6, %v107_v37  ;;  %v179_v46 = vadd.f32 %v963_v6, %v108_v38  ;;  %v140_v47 = vmul.f32 %v956_v3, %v69_v34  ;;  %v45_v34 = vld [vmem:[%s1502_s0 + $0xd8] sm:$0xff] }
  0x24   :  { %v272_v49 = vmax.f32 %v208_v41, 0.0  ;;  %v273_v50 = vmax.f32 %v209_v42, 0.0  ;;  %v210_v51 = vadd.f32 %v963_v6, %v139_v43  ;;  %v109_v52 = vmul.f32 %v956_v3, %v38_v39  ;;  %v76_v39 = vld [vmem:[%s1502_s0 + $0x1d0] sm:$0xff] }
  0x25   :  { %865 = vmatmul.mubr.msk.bf16.gmra.mxu0 %vm328_vm0, %v295_v30  ;;  %v296_v55 = vpack.c.bf16 %v241_v44, %v240_v36  ;;  %v242_v56 = vmax.f32 %v178_v45, 0.0  ;;  %v243_v57 = vmax.f32 %v179_v46, 0.0  ;;  %v211_v58 = vadd.f32 %v963_v6, %v140_v47  ;;  %v77_v44 = vld [vmem:[%s1502_s0 + $0x1d8] sm:$0xff] }
  0x26   :  { %v312_v61 = vpack.c.bf16 %v273_v50, %v272_v49  ;;  %v274_v62 = vmax.f32 %v210_v51, 0.0  ;;  %v110_v63 = vmul.f32 %v956_v3, %v39_v48  ;;  %v180_v0 = vadd.f32 %v963_v6, %v109_v52  ;;  %v46_v49 = vld [vmem:[%s1502_s0 + $0xe0] sm:$0xff] }
  0x27   :  { %897 = vmatmul.mubr.msk.bf16.gmra.mxu1 %vm328_vm0, %v311_v40  ;;  %868 = vmatprep.mubr.msk.bf16.mxu0 %vm328_vm0, %v296_v55  ;;  %v297_v2 = vpack.c.bf16 %v243_v57, %v242_v56  ;;  %v275_v4 = vmax.f32 %v211_v58, 0.0  ;;  %v141_v5 = vmul.f32 %v956_v3, %v70_v53  ;;  %v142_v7 = vmul.f32 %v956_v3, %v71_v54  ;;  %v47_v58 = vld [vmem:[%s1502_s0 + $0xe8] sm:$0xff] }
  0x28   :  { %900 = vmatprep.mubr.msk.bf16.mxu1 %vm328_vm0, %v312_v61  ;;  %v181_v9 = vadd.f32 %v963_v6, %v110_v63  ;;  %v244_v10 = vmax.f32 %v180_v0, 0.0  ;;  %v111_v11 = vmul.f32 %v956_v3, %v40_v59  ;;  %v112_v12 = vmul.f32 %v956_v3, %v41_v60  ;;  %v78_v63 = vld [vmem:[%s1502_s0 + $0x1e0] sm:$0xff]  ;;  %v79_v0 = vld [vmem:[%s1502_s0 + $0x1e8] sm:$0xff] }
  0x29   :  { %v313_v14 = vpack.c.bf16 %v275_v4, %v274_v62  ;;  %v212_v15 = vadd.f32 %v963_v6, %v141_v5  ;;  %v213_v16 = vadd.f32 %v963_v6, %v142_v7  ;;  %v143_v17 = vmul.f32 %v956_v3, %v72_v1  ;;  %v48_v5 = vld [vmem:[%s1502_s0 + $0xf0] sm:$0xff]  ;;  %v49_v7 = vld [vmem:[%s1502_s0 + $0xf8] sm:$0xff] }
  0x2a   :  { %v245_v18 = vmax.f32 %v181_v9, 0.0  ;;  %v182_v19 = vadd.f32 %v963_v6, %v111_v11  ;;  %v183_v20 = vadd.f32 %v963_v6, %v112_v12  ;;  %v144_v21 = vmul.f32 %v956_v3, %v73_v8  ;;  %v80_v12 = vld [vmem:[%s1502_s0 + $0x1f0] sm:$0xff] }
  0x2b   :  { %v276_v23 = vmax.f32 %v212_v15, 0.0  ;;  %v277_v24 = vmax.f32 %v213_v16, 0.0  ;;  %v214_v25 = vadd.f32 %v963_v6, %v143_v17  ;;  %v113_v26 = vmul.f32 %v956_v3, %v42_v13  ;;  %v81_v17 = vld [vmem:[%s1502_s0 + $0x1f8] sm:$0xff] }
  0x2c   :  { %v298_v29 = vpack.c.bf16 %v245_v18, %v244_v10  ;;  %v246_v30 = vmax.f32 %v182_v19, 0.0  ;;  %v247_v31 = vmax.f32 %v183_v20, 0.0  ;;  %v215_v32 = vadd.f32 %v963_v6, %v144_v21 }
  0x2d   :  { %869 = vmatmul.mubr.msk.bf16.gmra.mxu0 %vm328_vm0, %v297_v2  ;;  %v314_v35 = vpack.c.bf16 %v277_v24, %v276_v23  ;;  %v278_v36 = vmax.f32 %v214_v25, 0.0  ;;  %v114_v37 = vmul.f32 %v956_v3, %v43_v22  ;;  %v184_v38 = vadd.f32 %v963_v6, %v113_v26 }
  0x2e   :  { %872 = vmatprep.mubr.msk.bf16.mxu0 %vm328_vm0, %v298_v29  ;;  %v299_v40 = vpack.c.bf16 %v247_v31, %v246_v30  ;;  %v279_v41 = vmax.f32 %v215_v32, 0.0  ;;  %v145_v42 = vmul.f32 %v956_v3, %v74_v27  ;;  %v146_v43 = vmul.f32 %v956_v3, %v75_v28 }
  0x2f   :  { %901 = vmatmul.mubr.msk.bf16.gmra.mxu1 %vm328_vm0, %v313_v14  ;;  %v185_v45 = vadd.f32 %v963_v6, %v114_v37  ;;  %v248_v46 = vmax.f32 %v184_v38, 0.0  ;;  %v115_v47 = vmul.f32 %v956_v3, %v44_v33  ;;  %v116_v48 = vmul.f32 %v956_v3, %v45_v34 }
  0x30   :  { %904 = vmatprep.mubr.msk.bf16.mxu1 %vm328_vm0, %v314_v35  ;;  %v315_v50 = vpack.c.bf16 %v279_v41, %v278_v36  ;;  %v216_v51 = vadd.f32 %v963_v6, %v145_v42  ;;  %v217_v52 = vadd.f32 %v963_v6, %v146_v43  ;;  %v147_v53 = vmul.f32 %v956_v3, %v76_v39 }
  0x31   :  { %v249_v54 = vmax.f32 %v185_v45, 0.0  ;;  %v186_v55 = vadd.f32 %v963_v6, %v115_v47  ;;  %v187_v56 = vadd.f32 %v963_v6, %v116_v48  ;;  %v148_v57 = vmul.f32 %v956_v3, %v77_v44 }
  0x32   :  { %v280_v59 = vmax.f32 %v216_v51, 0.0  ;;  %v281_v60 = vmax.f32 %v217_v52, 0.0  ;;  %v218_v61 = vadd.f32 %v963_v6, %v147_v53  ;;  %v117_v62 = vmul.f32 %v956_v3, %v46_v49 }
  0x33   :  { %v300_v1 = vpack.c.bf16 %v249_v54, %v248_v46  ;;  %v250_v2 = vmax.f32 %v186_v55, 0.0  ;;  %v219_v4 = vadd.f32 %v963_v6, %v148_v57  ;;  %v251_v9 = vmax.f32 %v187_v56, 0.0 }
  0x34   :  { %v316_v8 = vpack.c.bf16 %v281_v60, %v280_v59  ;;  %v118_v10 = vmul.f32 %v956_v3, %v47_v58  ;;  %v188_v11 = vadd.f32 %v963_v6, %v117_v62  ;;  %v282_v13 = vmax.f32 %v218_v61, 0.0 }
  0x35   :  { %873 = vmatmul.mubr.msk.bf16.gmra.mxu0 %vm328_vm0, %v299_v40  ;;  %v283_v14 = vmax.f32 %v219_v4, 0.0  ;;  %v149_v15 = vmul.f32 %v956_v3, %v78_v63  ;;  %v150_v16 = vmul.f32 %v956_v3, %v79_v0  ;;  %v119_v20 = vmul.f32 %v956_v3, %v48_v5 }
  0x36   :  { %876 = vmatprep.mubr.msk.bf16.mxu0 %vm328_vm0, %v300_v1  ;;  %v189_v18 = vadd.f32 %v963_v6, %v118_v10  ;;  %v252_v19 = vmax.f32 %v188_v11, 0.0  ;;  %v120_v21 = vmul.f32 %v956_v3, %v49_v7  ;;  %v151_v24 = vmul.f32 %v956_v3, %v80_v12 }
  0x37   :  { %905 = vmatmul.mubr.msk.bf16.gmra.mxu1 %vm328_vm0, %v315_v50  ;;  %v220_v22 = vadd.f32 %v963_v6, %v149_v15  ;;  %v221_v23 = vadd.f32 %v963_v6, %v150_v16  ;;  %v301_v25 = vpack.c.bf16 %v251_v9, %v250_v2  ;;  %v152_v27 = vmul.f32 %v956_v3, %v81_v17 }
  0x38   :  { %908 = vmatprep.mubr.msk.bf16.mxu1 %vm328_vm0, %v316_v8  ;;  %v253_v26 = vmax.f32 %v189_v18, 0.0  ;;  %v190_v30 = vadd.f32 %v963_v6, %v119_v20  ;;  %v191_v31 = vadd.f32 %v963_v6, %v120_v21  ;;  %v317_v32 = vpack.c.bf16 %v283_v14, %v282_v13 }
  0x39   :  { %v284_v28 = vmax.f32 %v220_v22, 0.0  ;;  %v285_v29 = vmax.f32 %v221_v23, 0.0  ;;  %v222_v34 = vadd.f32 %v963_v6, %v151_v24  ;;  %v223_v35 = vadd.f32 %v963_v6, %v152_v27 }
  0x3a   :  { %v302_v33 = vpack.c.bf16 %v253_v26, %v252_v19  ;;  %v254_v37 = vmax.f32 %v190_v30, 0.0  ;;  %v255_v38 = vmax.f32 %v191_v31, 0.0 }
  0x3b   :  { %v318_v36 = vpack.c.bf16 %v285_v29, %v284_v28  ;;  %v286_v3 = vmax.f32 %v222_v34, 0.0  ;;  %v287_v39 = vmax.f32 %v223_v35, 0.0 }
  0x3c   :  { %v303_v40 = vpack.c.bf16 %v255_v38, %v254_v37 }
  0x3d   :  { %877 = vmatmul.mubr.msk.bf16.gmra.mxu0 %vm328_vm0, %v301_v25  ;;  %v319_v41 = vpack.c.bf16 %v287_v39, %v286_v3 }
  0x3e   :  { %880 = vmatprep.mubr.msk.bf16.mxu0 %vm328_vm0, %v302_v33 }
  0x3f   :  { %909 = vmatmul.mubr.msk.bf16.gmra.mxu1 %vm328_vm0, %v317_v32 }
  0x40   :  { %912 = vmatprep.mubr.msk.bf16.mxu1 %vm328_vm0, %v318_v36 }
  0x45   :  { %881 = vmatmul.mubr.msk.bf16.gmra.mxu0 %vm328_vm0, %v303_v40 }
  0x47   :  { %913 = vmatmul.mubr.msk.bf16.gmra.mxu1 %vm328_vm0, %v319_v41 }
  0xcd   :  { %v854_v6 = vpop.f32.mrf.mxu0 }
  0xce   :  { %716 = vst [vmem:[%s1505_s4 + $0x10] sm:$0xff] %v854_v6 }
  0xcf   :  { %v886_v42 = vpop.f32.mrf.mxu1  ;;  %v459_v43 = vpop.f32.mrf.mxu0 }
  0xd0   :  { %748 = vst [vmem:[%s1505_s4 + $0x110] sm:$0xff] %v886_v42  ;;  %714 = vst [vmem:[%s1505_s4] sm:$0xff] %v459_v43 }
  0xd1   :  { %v587_v44 = vpop.f32.mrf.mxu1  ;;  %v855_v45 = vpop.f32.mrf.mxu0 }
  0xd2   :  { %746 = vst [vmem:[%s1505_s4 + $0x100] sm:$0xff] %v587_v44  ;;  %717 = vst [vmem:[%s1505_s4 + $0x18] sm:$0xff] %v855_v45 }
  0xd3   :  { %v887_v46 = vpop.f32.mrf.mxu1  ;;  %v462_v47 = vpop.f32.mrf.mxu0 }
  0xd4   :  { %749 = vst [vmem:[%s1505_s4 + $0x118] sm:$0xff] %v887_v46  ;;  %715 = vst [vmem:[%s1505_s4 + $0x8] sm:$0xff] %v462_v47 }
  0xd5   :  { %v590_v48 = vpop.f32.mrf.mxu1  ;;  %v858_v49 = vpop.f32.mrf.mxu0 }
  0xd6   :  { %747 = vst [vmem:[%s1505_s4 + $0x108] sm:$0xff] %v590_v48  ;;  %720 = vst [vmem:[%s1505_s4 + $0x30] sm:$0xff] %v858_v49 }
  0xd7   :  { %v890_v50 = vpop.f32.mrf.mxu1  ;;  %v475_v51 = vpop.f32.mrf.mxu0 }
  0xd8   :  { %752 = vst [vmem:[%s1505_s4 + $0x130] sm:$0xff] %v890_v50  ;;  %718 = vst [vmem:[%s1505_s4 + $0x20] sm:$0xff] %v475_v51 }
  0xd9   :  { %v603_v52 = vpop.f32.mrf.mxu1  ;;  %v859_v53 = vpop.f32.mrf.mxu0 }
  0xda   :  { %750 = vst [vmem:[%s1505_s4 + $0x120] sm:$0xff] %v603_v52  ;;  %721 = vst [vmem:[%s1505_s4 + $0x38] sm:$0xff] %v859_v53 }
  0xdb   :  { %v891_v54 = vpop.f32.mrf.mxu1  ;;  %v478_v55 = vpop.f32.mrf.mxu0 }
  0xdc   :  { %753 = vst [vmem:[%s1505_s4 + $0x138] sm:$0xff] %v891_v54  ;;  %719 = vst [vmem:[%s1505_s4 + $0x28] sm:$0xff] %v478_v55 }
  0xdd   :  { %v606_v56 = vpop.f32.mrf.mxu1  ;;  %v862_v57 = vpop.f32.mrf.mxu0 }
  0xde   :  { %751 = vst [vmem:[%s1505_s4 + $0x128] sm:$0xff] %v606_v56  ;;  %724 = vst [vmem:[%s1505_s4 + $0x50] sm:$0xff] %v862_v57 }
  0xdf   :  { %v894_v58 = vpop.f32.mrf.mxu1  ;;  %v491_v59 = vpop.f32.mrf.mxu0 }
  0xe0   :  { %756 = vst [vmem:[%s1505_s4 + $0x150] sm:$0xff] %v894_v58  ;;  %722 = vst [vmem:[%s1505_s4 + $0x40] sm:$0xff] %v491_v59 }
  0xe1   :  { %v619_v60 = vpop.f32.mrf.mxu1  ;;  %v863_v61 = vpop.f32.mrf.mxu0 }
  0xe2   :  { %754 = vst [vmem:[%s1505_s4 + $0x140] sm:$0xff] %v619_v60  ;;  %725 = vst [vmem:[%s1505_s4 + $0x58] sm:$0xff] %v863_v61 }
  0xe3   :  { %v895_v62 = vpop.f32.mrf.mxu1  ;;  %v494_v63 = vpop.f32.mrf.mxu0 }
  0xe4   :  { %757 = vst [vmem:[%s1505_s4 + $0x158] sm:$0xff] %v895_v62  ;;  %723 = vst [vmem:[%s1505_s4 + $0x48] sm:$0xff] %v494_v63 }
  0xe5   :  { %v622_v0 = vpop.f32.mrf.mxu1  ;;  %v866_v1 = vpop.f32.mrf.mxu0 }
  0xe6   :  { %755 = vst [vmem:[%s1505_s4 + $0x148] sm:$0xff] %v622_v0  ;;  %728 = vst [vmem:[%s1505_s4 + $0x70] sm:$0xff] %v866_v1 }
  0xe7   :  { %v898_v2 = vpop.f32.mrf.mxu1  ;;  %v507_v4 = vpop.f32.mrf.mxu0 }
  0xe8   :  { %760 = vst [vmem:[%s1505_s4 + $0x170] sm:$0xff] %v898_v2  ;;  %726 = vst [vmem:[%s1505_s4 + $0x60] sm:$0xff] %v507_v4 }
  0xe9   :  { %v635_v5 = vpop.f32.mrf.mxu1  ;;  %v867_v7 = vpop.f32.mrf.mxu0 }
  0xea   :  { %758 = vst [vmem:[%s1505_s4 + $0x160] sm:$0xff] %v635_v5  ;;  %729 = vst [vmem:[%s1505_s4 + $0x78] sm:$0xff] %v867_v7 }
  0xeb   :  { %v899_v8 = vpop.f32.mrf.mxu1  ;;  %v510_v9 = vpop.f32.mrf.mxu0 }
  0xec   :  { %761 = vst [vmem:[%s1505_s4 + $0x178] sm:$0xff] %v899_v8  ;;  %727 = vst [vmem:[%s1505_s4 + $0x68] sm:$0xff] %v510_v9 }
  0xed   :  { %v638_v10 = vpop.f32.mrf.mxu1  ;;  %v870_v11 = vpop.f32.mrf.mxu0 }
  0xee   :  { %759 = vst [vmem:[%s1505_s4 + $0x168] sm:$0xff] %v638_v10  ;;  %732 = vst [vmem:[%s1505_s4 + $0x90] sm:$0xff] %v870_v11 }
  0xef   :  { %v902_v12 = vpop.f32.mrf.mxu1  ;;  %v523_v13 = vpop.f32.mrf.mxu0 }
  0xf0   :  { %764 = vst [vmem:[%s1505_s4 + $0x190] sm:$0xff] %v902_v12  ;;  %730 = vst [vmem:[%s1505_s4 + $0x80] sm:$0xff] %v523_v13 }
  0xf1   :  { %v651_v14 = vpop.f32.mrf.mxu1  ;;  %v871_v15 = vpop.f32.mrf.mxu0 }
  0xf2   :  { %762 = vst [vmem:[%s1505_s4 + $0x180] sm:$0xff] %v651_v14  ;;  %733 = vst [vmem:[%s1505_s4 + $0x98] sm:$0xff] %v871_v15 }
  0xf3   :  { %v903_v16 = vpop.f32.mrf.mxu1  ;;  %v526_v17 = vpop.f32.mrf.mxu0 }
  0xf4   :  { %765 = vst [vmem:[%s1505_s4 + $0x198] sm:$0xff] %v903_v16  ;;  %731 = vst [vmem:[%s1505_s4 + $0x88] sm:$0xff] %v526_v17 }
  0xf5   :  { %v654_v18 = vpop.f32.mrf.mxu1  ;;  %v874_v19 = vpop.f32.mrf.mxu0 }
  0xf6   :  { %763 = vst [vmem:[%s1505_s4 + $0x188] sm:$0xff] %v654_v18  ;;  %736 = vst [vmem:[%s1505_s4 + $0xb0] sm:$0xff] %v874_v19 }
  0xf7   :  { %v906_v20 = vpop.f32.mrf.mxu1  ;;  %v539_v21 = vpop.f32.mrf.mxu0 }
  0xf8   :  { %768 = vst [vmem:[%s1505_s4 + $0x1b0] sm:$0xff] %v906_v20  ;;  %734 = vst [vmem:[%s1505_s4 + $0xa0] sm:$0xff] %v539_v21 }
  0xf9   :  { %v667_v22 = vpop.f32.mrf.mxu1  ;;  %v875_v23 = vpop.f32.mrf.mxu0 }
  0xfa   :  { %766 = vst [vmem:[%s1505_s4 + $0x1a0] sm:$0xff] %v667_v22  ;;  %737 = vst [vmem:[%s1505_s4 + $0xb8] sm:$0xff] %v875_v23 }
  0xfb   :  { %v907_v24 = vpop.f32.mrf.mxu1  ;;  %v542_v25 = vpop.f32.mrf.mxu0 }
  0xfc   :  { %769 = vst [vmem:[%s1505_s4 + $0x1b8] sm:$0xff] %v907_v24  ;;  %735 = vst [vmem:[%s1505_s4 + $0xa8] sm:$0xff] %v542_v25 }
  0xfd   :  { %v670_v26 = vpop.f32.mrf.mxu1  ;;  %v878_v27 = vpop.f32.mrf.mxu0 }
  0xfe   :  { %767 = vst [vmem:[%s1505_s4 + $0x1a8] sm:$0xff] %v670_v26  ;;  %740 = vst [vmem:[%s1505_s4 + $0xd0] sm:$0xff] %v878_v27 }
  0xff   :  { %v910_v28 = vpop.f32.mrf.mxu1  ;;  %v555_v29 = vpop.f32.mrf.mxu0 }
 0x100   :  { %772 = vst [vmem:[%s1505_s4 + $0x1d0] sm:$0xff] %v910_v28  ;;  %738 = vst [vmem:[%s1505_s4 + $0xc0] sm:$0xff] %v555_v29 }
 0x101   :  { %v683_v30 = vpop.f32.mrf.mxu1  ;;  %v879_v31 = vpop.f32.mrf.mxu0 }
 0x102   :  { %770 = vst [vmem:[%s1505_s4 + $0x1c0] sm:$0xff] %v683_v30  ;;  %741 = vst [vmem:[%s1505_s4 + $0xd8] sm:$0xff] %v879_v31 }
 0x103   :  { %v911_v32 = vpop.f32.mrf.mxu1  ;;  %v558_v33 = vpop.f32.mrf.mxu0 }
 0x104   :  { %773 = vst [vmem:[%s1505_s4 + $0x1d8] sm:$0xff] %v911_v32  ;;  %739 = vst [vmem:[%s1505_s4 + $0xc8] sm:$0xff] %v558_v33 }
 0x105   :  { %v686_v34 = vpop.f32.mrf.mxu1  ;;  %v882_v35 = vpop.f32.mrf.mxu0 }
 0x106   :  { %771 = vst [vmem:[%s1505_s4 + $0x1c8] sm:$0xff] %v686_v34  ;;  %744 = vst [vmem:[%s1505_s4 + $0xf0] sm:$0xff] %v882_v35 }
 0x107   :  { %v914_v36 = vpop.f32.mrf.mxu1  ;;  %v571_v37 = vpop.f32.mrf.mxu0 }
 0x108   :  { %776 = vst [vmem:[%s1505_s4 + $0x1f0] sm:$0xff] %v914_v36  ;;  %742 = vst [vmem:[%s1505_s4 + $0xe0] sm:$0xff] %v571_v37 }
 0x109   :  { %v699_v38 = vpop.f32.mrf.mxu1  ;;  %v883_v3 = vpop.f32.mrf.mxu0 }
 0x10a   :  { %774 = vst [vmem:[%s1505_s4 + $0x1e0] sm:$0xff] %v699_v38  ;;  %745 = vst [vmem:[%s1505_s4 + $0xf8] sm:$0xff] %v883_v3 }
 0x10b   :  { %v915_v39 = vpop.f32.mrf.mxu1  ;;  %v574_v40 = vpop.f32.mrf.mxu0 }
 0x10c   :  { %777 = vst [vmem:[%s1505_s4 + $0x1f8] sm:$0xff] %v915_v39  ;;  %743 = vst [vmem:[%s1505_s4 + $0xe8] sm:$0xff] %v574_v40 }
 0x10d   :  { %v702_v41 = vpop.f32.mrf.mxu1 }
 0x10e   :  { %775 = vst [vmem:[%s1505_s4 + $0x1e8] sm:$0xff] %v702_v41 }

// kernel: _forward_impl.9
= control target key start
LH: loop header
LB: loop body
LE: loop exit
PB: predicated region body
PF: predicated region fallthrough
CT: control target
= control target key end

     0   :  { %vm1570_vm0 = vcmask 1043456   ;;  %vm1185_vm1 = vcmask 64512   ;;  %s5650_s3 = inlined_call_operand.vmem [shape: bf16[8,128], index: 3, kind: input, shape index: {}]   ;;  %s5651_s0 = inlined_call_operand.vmem [shape: f32[2048,8], index: 0, kind: input, shape index: {}]   ;;  %s5652_s1 = inlined_call_operand.vmem [shape: f32[1,8], index: 1, kind: input, shape index: {}]   ;;  %s5653_s2 = inlined_call_operand.vmem [shape: f32[1,8], index: 2, kind: input, shape index: {}]   ;;  %s5654_s4 = inlined_call_operand.vmem [shape: f32[2048,128], index: 4, kind: output, shape index: {}]  }
   0x1   :  { %v1184_v0 = vld [vmem:[%s5650_s3] sm:$0xf]  ;;  %v19_v2 = vld [vmem:[%s5651_s0 + $0x8] sm:$0xff]  ;;  %v20_v11 = vld [vmem:[%s5651_s0 + $0x10] sm:$0xff] }
   0x2   :  { %v18_v1 = vld [vmem:[%s5651_s0] sm:$0xff]  ;;  %3410 = vmatprep.subr.msk.bf16.mxu0 %vm1570_vm0, %v1184_v0  ;;  %3411 = vmatprep.subr.msk.bf16.mxu1 %vm1570_vm0, %v1184_v0  ;;  %v1572_v3 = vsel %vm1570_vm0, %v1184_v0, 0  ;;  %v147_v9 = vld [vmem:[%s5651_s0 + $0x408] sm:$0xff]  ;;  %v21_v12 = vld [vmem:[%s5651_s0 + $0x18] sm:$0xff] }
   0x3   :  { %v3453_v4 = vld [vmem:[%s5652_s1] ss:$0 sm:$0xff]  ;;  %3151 = vmatpush3.bf16.msra.mxu0 %v1572_v3  ;;  %3409 = vmatpush3.bf16.msra.mxu1 %v1572_v3  ;;  %v148_v16 = vld [vmem:[%s5651_s0 + $0x410] sm:$0xff]  ;;  %v149_v17 = vld [vmem:[%s5651_s0 + $0x418] sm:$0xff] }
   0x4   :  { %v3458_v5 = vld [vmem:[%s5653_s2] ss:$0 sm:$0xff]  ;;  %v281_v7 = vmul.f32 %v3453_v4, %v18_v1  ;;  %v282_v8 = vmul.f32 %v3453_v4, %v19_v2  ;;  %v410_v13 = vmul.f32 %v3453_v4, %v147_v9  ;;  %v283_v14 = vmul.f32 %v3453_v4, %v20_v11  ;;  %v23_v27 = vld [vmem:[%s5651_s0 + $0x28] sm:$0xff]  ;;  %v24_v38 = vld [vmem:[%s5651_s0 + $0x30] sm:$0xff] }
   0x5   :  { %v146_v6 = vld [vmem:[%s5651_s0 + $0x400] sm:$0xff]  ;;  %v284_v15 = vmul.f32 %v3453_v4, %v21_v12  ;;  %v411_v21 = vmul.f32 %v3453_v4, %v148_v16  ;;  %v412_v25 = vmul.f32 %v3453_v4, %v149_v17  ;;  %v151_v37 = vld [vmem:[%s5651_s0 + $0x428] sm:$0xff]  ;;  %v286_v42 = vmul.f32 %v3453_v4, %v23_v27  ;;  %v25_v43 = vld [vmem:[%s5651_s0 + $0x38] sm:$0xff] }
   0x6   :  { %v409_v10 = vmul.f32 %v3453_v4, %v146_v6  ;;  %v544_v18 = vadd.f32 %v3458_v5, %v281_v7  ;;  %v545_v19 = vadd.f32 %v3458_v5, %v282_v8  ;;  %v673_v22 = vadd.f32 %v3458_v5, %v410_v13  ;;  %v22_v26 = vld [vmem:[%s5651_s0 + $0x20] sm:$0xff]  ;;  %v152_v52 = vld [vmem:[%s5651_s0 + $0x430] sm:$0xff]  ;;  %v153_v53 = vld [vmem:[%s5651_s0 + $0x438] sm:$0xff] }
   0x7   :  { %v546_v23 = vadd.f32 %v3458_v5, %v283_v14  ;;  %v547_v24 = vadd.f32 %v3458_v5, %v284_v15  ;;  %v674_v31 = vadd.f32 %v3458_v5, %v411_v21  ;;  %v150_v32 = vld [vmem:[%s5651_s0 + $0x420] sm:$0xff]  ;;  %v675_v36 = vadd.f32 %v3458_v5, %v412_v25  ;;  %v27_v62 = vld [vmem:[%s5651_s0 + $0x48] sm:$0xff]  ;;  %v28_v15 = vld [vmem:[%s5651_s0 + $0x50] sm:$0xff] }
   0x8   :  { %v672_v20 = vadd.f32 %v3458_v5, %v409_v10  ;;  %v800_v28 = vmax.f32 %v544_v18, 0.0  ;;  %v801_v29 = vmax.f32 %v545_v19, 0.0  ;;  %v929_v33 = vmax.f32 %v673_v22, 0.0  ;;  %v26_v57 = vld [vmem:[%s5651_s0 + $0x40] sm:$0xff]  ;;  %v155_v6 = vld [vmem:[%s5651_s0 + $0x448] sm:$0xff]  ;;  %v156_v21 = vld [vmem:[%s5651_s0 + $0x450] sm:$0xff] }
   0x9   :  { %v802_v34 = vmax.f32 %v546_v23, 0.0  ;;  %v803_v35 = vmax.f32 %v547_v24, 0.0  ;;  %v930_v40 = vmax.f32 %v674_v31, 0.0  ;;  %v285_v41 = vmul.f32 %v3453_v4, %v22_v26  ;;  %v154_v3 = vld [vmem:[%s5651_s0 + $0x440] sm:$0xff]  ;;  %v157_v26 = vld [vmem:[%s5651_s0 + $0x458] sm:$0xff] }
   0xa   :  { %v928_v30 = vmax.f32 %v672_v20, 0.0  ;;  %v1056_v39 = vpack.c.bf16 %v801_v29, %v800_v28  ;;  %v931_v46 = vmax.f32 %v675_v36, 0.0  ;;  %v413_v47 = vmul.f32 %v3453_v4, %v150_v32  ;;  %v29_v20 = vld [vmem:[%s5651_s0 + $0x58] sm:$0xff]  ;;  %v30_v31 = vld [vmem:[%s5651_s0 + $0x60] sm:$0xff]  ;;  %v31_v36 = vld [vmem:[%s5651_s0 + $0x68] sm:$0xff] }
   0xb   :  { %v1057_v45 = vpack.c.bf16 %v803_v35, %v802_v34  ;;  %v548_v48 = vadd.f32 %v3458_v5, %v285_v41  ;;  %v549_v49 = vadd.f32 %v3458_v5, %v286_v42  ;;  %v414_v50 = vmul.f32 %v3453_v4, %v151_v37  ;;  %v158_v41 = vld [vmem:[%s5651_s0 + $0x460] sm:$0xff] }
   0xc   :  { %v1120_v44 = vpack.c.bf16 %v929_v33, %v928_v30  ;;  %3152 = vmatprep.mubr.msk.bf16.mxu0 %vm1185_vm1, %v1056_v39  ;;  %v287_v51 = vmul.f32 %v3453_v4, %v24_v38  ;;  %v1121_v54 = vpack.c.bf16 %v931_v46, %v930_v40  ;;  %v676_v55 = vadd.f32 %v3458_v5, %v413_v47  ;;  %v159_v46 = vld [vmem:[%s5651_s0 + $0x468] sm:$0xff]  ;;  %v32_v47 = vld [vmem:[%s5651_s0 + $0x70] sm:$0xff] }
   0xd   :  { %3153 = vmatmul.mubr.msk.bf16.vlgmr.msra.gmra.mxu0 %vm1185_vm1, %v1057_v45  ;;  %v288_v56 = vmul.f32 %v3453_v4, %v25_v43  ;;  %v804_v58 = vmax.f32 %v548_v48, 0.0  ;;  %v805_v59 = vmax.f32 %v549_v49, 0.0  ;;  %v677_v60 = vadd.f32 %v3458_v5, %v414_v50 }
   0xe   :  { %3280 = vmatprep.mubr.msk.bf16.mxu1 %vm1185_vm1, %v1120_v44  ;;  %v550_v61 = vadd.f32 %v3458_v5, %v287_v51  ;;  %v932_v63 = vmax.f32 %v676_v55, 0.0  ;;  %v415_v1 = vmul.f32 %v3453_v4, %v152_v52  ;;  %v416_v2 = vmul.f32 %v3453_v4, %v153_v53  ;;  %v33_v52 = vld [vmem:[%s5651_s0 + $0x78] sm:$0xff] }
   0xf   :  { %3281 = vmatmul.mubr.msk.bf16.vlgmr.msra.gmra.mxu1 %vm1185_vm1, %v1121_v54  ;;  %v551_v0 = vadd.f32 %v3458_v5, %v288_v56  ;;  %v1058_v7 = vpack.c.bf16 %v805_v59, %v804_v58  ;;  %v933_v8 = vmax.f32 %v677_v60, 0.0  ;;  %v289_v10 = vmul.f32 %v3453_v4, %v26_v57 }
  0x10   :  { %v806_v9 = vmax.f32 %v550_v61, 0.0  ;;  %v678_v12 = vadd.f32 %v3458_v5, %v415_v1  ;;  %v679_v13 = vadd.f32 %v3458_v5, %v416_v2  ;;  %v290_v14 = vmul.f32 %v3453_v4, %v27_v62  ;;  %v160_v61 = vld [vmem:[%s5651_s0 + $0x470] sm:$0xff]  ;;  %v161_v62 = vld [vmem:[%s5651_s0 + $0x478] sm:$0xff] }
  0x11   :  { %v807_v11 = vmax.f32 %v551_v0, 0.0  ;;  %3156 = vmatprep.mubr.msk.bf16.mxu0 %vm1185_vm1, %v1058_v7  ;;  %v1122_v16 = vpack.c.bf16 %v933_v8, %v932_v63  ;;  %v552_v17 = vadd.f32 %v3458_v5, %v289_v10  ;;  %v417_v18 = vmul.f32 %v3453_v4, %v154_v3  ;;  %v34_v3 = vld [vmem:[%s5651_s0 + $0x80] sm:$0xff]  ;;  %v35_v10 = vld [vmem:[%s5651_s0 + $0x88] sm:$0xff] }
  0x12   :  { %v418_v19 = vmul.f32 %v3453_v4, %v155_v6  ;;  %v934_v23 = vmax.f32 %v678_v12, 0.0  ;;  %v935_v24 = vmax.f32 %v679_v13, 0.0  ;;  %v553_v25 = vadd.f32 %v3458_v5, %v290_v14 }
  0x13   :  { %v1059_v22 = vpack.c.bf16 %v807_v11, %v806_v9  ;;  %3284 = vmatprep.mubr.msk.bf16.mxu1 %vm1185_vm1, %v1122_v16  ;;  %v808_v27 = vmax.f32 %v552_v17, 0.0  ;;  %v680_v28 = vadd.f32 %v3458_v5, %v417_v18  ;;  %v291_v30 = vmul.f32 %v3453_v4, %v28_v15  ;;  %v162_v15 = vld [vmem:[%s5651_s0 + $0x480] sm:$0xff]  ;;  %v163_v16 = vld [vmem:[%s5651_s0 + $0x488] sm:$0xff] }
  0x14   :  { %v681_v29 = vadd.f32 %v3458_v5, %v418_v19  ;;  %v1123_v32 = vpack.c.bf16 %v935_v24, %v934_v23  ;;  %v809_v33 = vmax.f32 %v553_v25, 0.0  ;;  %v292_v34 = vmul.f32 %v3453_v4, %v29_v20  ;;  %v36_v25 = vld [vmem:[%s5651_s0 + $0x90] sm:$0xff] }
  0x15   :  { %3157 = vmatmul.mubr.msk.bf16.gmra.mxu0 %vm1185_vm1, %v1059_v22  ;;  %v419_v35 = vmul.f32 %v3453_v4, %v156_v21  ;;  %v936_v37 = vmax.f32 %v680_v28, 0.0  ;;  %v554_v39 = vadd.f32 %v3458_v5, %v291_v30  ;;  %v420_v40 = vmul.f32 %v3453_v4, %v157_v26  ;;  %v37_v30 = vld [vmem:[%s5651_s0 + $0x98] sm:$0xff] }
  0x16   :  { %v937_v38 = vmax.f32 %v681_v29, 0.0  ;;  %v1060_v42 = vpack.c.bf16 %v809_v33, %v808_v27  ;;  %v555_v43 = vadd.f32 %v3458_v5, %v292_v34  ;;  %v293_v45 = vmul.f32 %v3453_v4, %v30_v31  ;;  %v164_v31 = vld [vmem:[%s5651_s0 + $0x490] sm:$0xff] }
  0x17   :  { %3285 = vmatmul.mubr.msk.bf16.gmra.mxu1 %vm1185_vm1, %v1123_v32  ;;  %v682_v44 = vadd.f32 %v3458_v5, %v419_v35  ;;  %v810_v49 = vmax.f32 %v554_v39, 0.0  ;;  %v683_v50 = vadd.f32 %v3458_v5, %v420_v40  ;;  %v294_v51 = vmul.f32 %v3453_v4, %v31_v36  ;;  %v165_v36 = vld [vmem:[%s5651_s0 + $0x498] sm:$0xff] }
  0x18   :  { %v1124_v48 = vpack.c.bf16 %v937_v38, %v936_v37  ;;  %3160 = vmatprep.mubr.msk.bf16.mxu0 %vm1185_vm1, %v1060_v42  ;;  %v811_v53 = vmax.f32 %v555_v43, 0.0  ;;  %v556_v55 = vadd.f32 %v3458_v5, %v293_v45  ;;  %v421_v56 = vmul.f32 %v3453_v4, %v158_v41  ;;  %v38_v41 = vld [vmem:[%s5651_s0 + $0xa0] sm:$0xff] }
  0x19   :  { %v938_v54 = vmax.f32 %v682_v44, 0.0  ;;  %v939_v57 = vmax.f32 %v683_v50, 0.0  ;;  %v557_v58 = vadd.f32 %v3458_v5, %v294_v51  ;;  %v422_v59 = vmul.f32 %v3453_v4, %v159_v46  ;;  %v39_v46 = vld [vmem:[%s5651_s0 + $0xa8] sm:$0xff]  ;;  %v166_v51 = vld [vmem:[%s5651_s0 + $0x4a0] sm:$0xff] }
  0x1a   :  { %3288 = vmatprep.mubr.msk.bf16.mxu1 %vm1185_vm1, %v1124_v48  ;;  %v295_v60 = vmul.f32 %v3453_v4, %v32_v47  ;;  %v1061_v63 = vpack.c.bf16 %v811_v53, %v810_v49  ;;  %v812_v0 = vmax.f32 %v556_v55, 0.0  ;;  %v684_v1 = vadd.f32 %v3458_v5, %v421_v56  ;;  %v167_v56 = vld [vmem:[%s5651_s0 + $0x4a8] sm:$0xff] }
  0x1b   :  { %v296_v2 = vmul.f32 %v3453_v4, %v33_v52  ;;  %v1125_v6 = vpack.c.bf16 %v939_v57, %v938_v54  ;;  %v813_v7 = vmax.f32 %v557_v58, 0.0  ;;  %v685_v8 = vadd.f32 %v3458_v5, %v422_v59  ;;  %v40_v57 = vld [vmem:[%s5651_s0 + $0xb0] sm:$0xff] }
  0x1c   :  { %v558_v9 = vadd.f32 %v3458_v5, %v295_v60  ;;  %v940_v11 = vmax.f32 %v684_v1, 0.0  ;;  %v423_v13 = vmul.f32 %v3453_v4, %v160_v61  ;;  %v424_v14 = vmul.f32 %v3453_v4, %v161_v62  ;;  %v41_v62 = vld [vmem:[%s5651_s0 + $0xb8] sm:$0xff] }
  0x1d   :  { %3161 = vmatmul.mubr.msk.bf16.gmra.mxu0 %vm1185_vm1, %v1061_v63  ;;  %v559_v12 = vadd.f32 %v3458_v5, %v296_v2  ;;  %v1062_v17 = vpack.c.bf16 %v813_v7, %v812_v0  ;;  %v941_v18 = vmax.f32 %v685_v8, 0.0  ;;  %v297_v20 = vmul.f32 %v3453_v4, %v34_v3 }
  0x1e   :  { %v814_v19 = vmax.f32 %v558_v9, 0.0  ;;  %v686_v22 = vadd.f32 %v3458_v5, %v423_v13  ;;  %v687_v23 = vadd.f32 %v3458_v5, %v424_v14  ;;  %v298_v24 = vmul.f32 %v3453_v4, %v35_v10  ;;  %v168_v9 = vld [vmem:[%s5651_s0 + $0x4b0] sm:$0xff]  ;;  %v169_v10 = vld [vmem:[%s5651_s0 + $0x4b8] sm:$0xff] }
  0x1f   :  { %3289 = vmatmul.mubr.msk.bf16.gmra.mxu1 %vm1185_vm1, %v1125_v6  ;;  %v815_v21 = vmax.f32 %v559_v12, 0.0  ;;  %3164 = vmatprep.mubr.msk.bf16.mxu0 %vm1185_vm1, %v1062_v17  ;;  %v1126_v26 = vpack.c.bf16 %v941_v18, %v940_v11  ;;  %v560_v27 = vadd.f32 %v3458_v5, %v297_v20  ;;  %v425_v28 = vmul.f32 %v3453_v4, %v162_v15  ;;  %v42_v15 = vld [vmem:[%s5651_s0 + $0xc0] sm:$0xff]  ;;  %v43_v20 = vld [vmem:[%s5651_s0 + $0xc8] sm:$0xff] }
  0x20   :  { %v426_v29 = vmul.f32 %v3453_v4, %v163_v16  ;;  %v942_v33 = vmax.f32 %v686_v22, 0.0  ;;  %v943_v34 = vmax.f32 %v687_v23, 0.0  ;;  %v561_v35 = vadd.f32 %v3458_v5, %v298_v24 }
  0x21   :  { %v1063_v32 = vpack.c.bf16 %v815_v21, %v814_v19  ;;  %3292 = vmatprep.mubr.msk.bf16.mxu1 %vm1185_vm1, %v1126_v26  ;;  %v816_v37 = vmax.f32 %v560_v27, 0.0  ;;  %v688_v38 = vadd.f32 %v3458_v5, %v425_v28  ;;  %v299_v40 = vmul.f32 %v3453_v4, %v36_v25  ;;  %v170_v25 = vld [vmem:[%s5651_s0 + $0x4c0] sm:$0xff]  ;;  %v171_v26 = vld [vmem:[%s5651_s0 + $0x4c8] sm:$0xff] }
  0x22   :  { %v689_v39 = vadd.f32 %v3458_v5, %v426_v29  ;;  %v1127_v42 = vpack.c.bf16 %v943_v34, %v942_v33  ;;  %v817_v43 = vmax.f32 %v561_v35, 0.0  ;;  %v300_v44 = vmul.f32 %v3453_v4, %v37_v30  ;;  %v44_v35 = vld [vmem:[%s5651_s0 + $0xd0] sm:$0xff] }
  0x23   :  { %v427_v45 = vmul.f32 %v3453_v4, %v164_v31  ;;  %v944_v47 = vmax.f32 %v688_v38, 0.0  ;;  %v562_v49 = vadd.f32 %v3458_v5, %v299_v40  ;;  %v428_v50 = vmul.f32 %v3453_v4, %v165_v36  ;;  %v45_v40 = vld [vmem:[%s5651_s0 + $0xd8] sm:$0xff] }
  0x24   :  { %v945_v48 = vmax.f32 %v689_v39, 0.0  ;;  %v1064_v52 = vpack.c.bf16 %v817_v43, %v816_v37  ;;  %v563_v53 = vadd.f32 %v3458_v5, %v300_v44  ;;  %v301_v55 = vmul.f32 %v3453_v4, %v38_v41  ;;  %v172_v41 = vld [vmem:[%s5651_s0 + $0x4d0] sm:$0xff] }
  0x25   :  { %3165 = vmatmul.mubr.msk.bf16.gmra.mxu0 %vm1185_vm1, %v1063_v32  ;;  %v690_v54 = vadd.f32 %v3458_v5, %v427_v45  ;;  %v818_v59 = vmax.f32 %v562_v49, 0.0  ;;  %v691_v60 = vadd.f32 %v3458_v5, %v428_v50  ;;  %v302_v61 = vmul.f32 %v3453_v4, %v39_v46  ;;  %v173_v46 = vld [vmem:[%s5651_s0 + $0x4d8] sm:$0xff] }
  0x26   :  { %v1128_v58 = vpack.c.bf16 %v945_v48, %v944_v47  ;;  %3168 = vmatprep.mubr.msk.bf16.mxu0 %vm1185_vm1, %v1064_v52  ;;  %v819_v63 = vmax.f32 %v563_v53, 0.0  ;;  %v564_v1 = vadd.f32 %v3458_v5, %v301_v55  ;;  %v429_v2 = vmul.f32 %v3453_v4, %v166_v51  ;;  %v46_v51 = vld [vmem:[%s5651_s0 + $0xe0] sm:$0xff] }
  0x27   :  { %3293 = vmatmul.mubr.msk.bf16.gmra.mxu1 %vm1185_vm1, %v1127_v42  ;;  %v946_v0 = vmax.f32 %v690_v54, 0.0  ;;  %v947_v3 = vmax.f32 %v691_v60, 0.0  ;;  %v565_v6 = vadd.f32 %v3458_v5, %v302_v61  ;;  %v430_v7 = vmul.f32 %v3453_v4, %v167_v56  ;;  %v47_v56 = vld [vmem:[%s5651_s0 + $0xe8] sm:$0xff]  ;;  %v174_v61 = vld [vmem:[%s5651_s0 + $0x4e0] sm:$0xff] }
  0x28   :  { %3296 = vmatprep.mubr.msk.bf16.mxu1 %vm1185_vm1, %v1128_v58  ;;  %v303_v8 = vmul.f32 %v3453_v4, %v40_v57  ;;  %v1065_v11 = vpack.c.bf16 %v819_v63, %v818_v59  ;;  %v820_v12 = vmax.f32 %v564_v1, 0.0  ;;  %v692_v13 = vadd.f32 %v3458_v5, %v429_v2  ;;  %v175_v2 = vld [vmem:[%s5651_s0 + $0x4e8] sm:$0xff] }
  0x29   :  { %v304_v14 = vmul.f32 %v3453_v4, %v41_v62  ;;  %v1129_v16 = vpack.c.bf16 %v947_v3, %v946_v0  ;;  %v821_v17 = vmax.f32 %v565_v6, 0.0  ;;  %v693_v18 = vadd.f32 %v3458_v5, %v430_v7  ;;  %v48_v3 = vld [vmem:[%s5651_s0 + $0xf0] sm:$0xff] }
  0x2a   :  { %v566_v19 = vadd.f32 %v3458_v5, %v303_v8  ;;  %v948_v21 = vmax.f32 %v692_v13, 0.0  ;;  %v431_v23 = vmul.f32 %v3453_v4, %v168_v9  ;;  %v432_v24 = vmul.f32 %v3453_v4, %v169_v10  ;;  %v49_v10 = vld [vmem:[%s5651_s0 + $0xf8] sm:$0xff] }
  0x2b   :  { %v567_v22 = vadd.f32 %v3458_v5, %v304_v14  ;;  %v1066_v27 = vpack.c.bf16 %v821_v17, %v820_v12  ;;  %v949_v28 = vmax.f32 %v693_v18, 0.0  ;;  %v305_v30 = vmul.f32 %v3453_v4, %v42_v15 }
  0x2c   :  { %v822_v29 = vmax.f32 %v566_v19, 0.0  ;;  %v694_v32 = vadd.f32 %v3458_v5, %v431_v23  ;;  %v695_v33 = vadd.f32 %v3458_v5, %v432_v24  ;;  %v306_v34 = vmul.f32 %v3453_v4, %v43_v20  ;;  %v176_v19 = vld [vmem:[%s5651_s0 + $0x4f0] sm:$0xff]  ;;  %v177_v20 = vld [vmem:[%s5651_s0 + $0x4f8] sm:$0xff]  ;;  %v50_v24 = vld [vmem:[%s5651_s0 + $0x100] sm:$0xff] }
  0x2d   :  { %3169 = vmatmul.mubr.msk.bf16.gmra.mxu0 %vm1185_vm1, %v1065_v11  ;;  %v823_v31 = vmax.f32 %v567_v22, 0.0  ;;  %v1130_v36 = vpack.c.bf16 %v949_v28, %v948_v21  ;;  %v568_v37 = vadd.f32 %v3458_v5, %v305_v30  ;;  %v433_v38 = vmul.f32 %v3453_v4, %v170_v25 }
  0x2e   :  { %3172 = vmatprep.mubr.msk.bf16.mxu0 %vm1185_vm1, %v1066_v27  ;;  %v434_v39 = vmul.f32 %v3453_v4, %v171_v26  ;;  %v950_v43 = vmax.f32 %v694_v32, 0.0  ;;  %v951_v44 = vmax.f32 %v695_v33, 0.0  ;;  %v569_v45 = vadd.f32 %v3458_v5, %v306_v34  ;;  %v178_v34 = vld [vmem:[%s5651_s0 + $0x500] sm:$0xff] }
  0x2f   :  { %3297 = vmatmul.mubr.msk.bf16.gmra.mxu1 %vm1185_vm1, %v1129_v16  ;;  %v1067_v42 = vpack.c.bf16 %v823_v31, %v822_v29  ;;  %v824_v47 = vmax.f32 %v568_v37, 0.0  ;;  %v696_v48 = vadd.f32 %v3458_v5, %v433_v38  ;;  %v307_v50 = vmul.f32 %v3453_v4, %v44_v35  ;;  %v51_v29 = vld [vmem:[%s5651_s0 + $0x108] sm:$0xff] }
  0x30   :  { %3300 = vmatprep.mubr.msk.bf16.mxu1 %vm1185_vm1, %v1130_v36  ;;  %v697_v49 = vadd.f32 %v3458_v5, %v434_v39  ;;  %v1131_v52 = vpack.c.bf16 %v951_v44, %v950_v43  ;;  %v825_v53 = vmax.f32 %v569_v45, 0.0  ;;  %v308_v54 = vmul.f32 %v3453_v4, %v45_v40  ;;  %v179_v35 = vld [vmem:[%s5651_s0 + $0x508] sm:$0xff]  ;;  %v52_v44 = vld [vmem:[%s5651_s0 + $0x110] sm:$0xff] }
  0x31   :  { %v435_v55 = vmul.f32 %v3453_v4, %v172_v41  ;;  %v952_v57 = vmax.f32 %v696_v48, 0.0  ;;  %v570_v59 = vadd.f32 %v3458_v5, %v307_v50  ;;  %v436_v60 = vmul.f32 %v3453_v4, %v173_v46  ;;  %v180_v50 = vld [vmem:[%s5651_s0 + $0x510] sm:$0xff] }
  0x32   :  { %v953_v58 = vmax.f32 %v697_v49, 0.0  ;;  %v1068_v62 = vpack.c.bf16 %v825_v53, %v824_v47  ;;  %v571_v63 = vadd.f32 %v3458_v5, %v308_v54  ;;  %v309_v1 = vmul.f32 %v3453_v4, %v46_v51  ;;  %v53_v49 = vld [vmem:[%s5651_s0 + $0x118] sm:$0xff] }
  0x33   :  { %v698_v0 = vadd.f32 %v3458_v5, %v435_v55  ;;  %v826_v7 = vmax.f32 %v570_v59, 0.0  ;;  %v699_v8 = vadd.f32 %v3458_v5, %v436_v60  ;;  %v310_v9 = vmul.f32 %v3453_v4, %v47_v56  ;;  %v181_v55 = vld [vmem:[%s5651_s0 + $0x518] sm:$0xff]  ;;  %v54_v60 = vld [vmem:[%s5651_s0 + $0x120] sm:$0xff] }
  0x34   :  { %v1132_v6 = vpack.c.bf16 %v953_v58, %v952_v57  ;;  %v827_v11 = vmax.f32 %v571_v63, 0.0  ;;  %v572_v13 = vadd.f32 %v3458_v5, %v309_v1  ;;  %v437_v14 = vmul.f32 %v3453_v4, %v174_v61 }
  0x35   :  { %3173 = vmatmul.mubr.msk.bf16.gmra.mxu0 %vm1185_vm1, %v1067_v42  ;;  %v954_v12 = vmax.f32 %v698_v0, 0.0  ;;  %v955_v15 = vmax.f32 %v699_v8, 0.0  ;;  %v573_v16 = vadd.f32 %v3458_v5, %v310_v9  ;;  %v438_v17 = vmul.f32 %v3453_v4, %v175_v2  ;;  %v55_v0 = vld [vmem:[%s5651_s0 + $0x128] sm:$0xff] }
  0x36   :  { %3176 = vmatprep.mubr.msk.bf16.mxu0 %vm1185_vm1, %v1068_v62  ;;  %v311_v18 = vmul.f32 %v3453_v4, %v48_v3  ;;  %v828_v21 = vmax.f32 %v572_v13, 0.0  ;;  %v700_v22 = vadd.f32 %v3458_v5, %v437_v14  ;;  %v312_v23 = vmul.f32 %v3453_v4, %v49_v10  ;;  %v56_v13 = vld [vmem:[%s5651_s0 + $0x130] sm:$0xff] }
  0x37   :  { %3301 = vmatmul.mubr.msk.bf16.gmra.mxu1 %vm1185_vm1, %v1131_v52  ;;  %v1069_v25 = vpack.c.bf16 %v827_v11, %v826_v7  ;;  %v829_v26 = vmax.f32 %v573_v16, 0.0  ;;  %v701_v27 = vadd.f32 %v3458_v5, %v438_v17  ;;  %v439_v32 = vmul.f32 %v3453_v4, %v176_v19  ;;  %v182_v7 = vld [vmem:[%s5651_s0 + $0x520] sm:$0xff] }
  0x38   :  { %3304 = vmatprep.mubr.msk.bf16.mxu1 %vm1185_vm1, %v1132_v6  ;;  %v574_v28 = vadd.f32 %v3458_v5, %v311_v18  ;;  %v956_v30 = vmax.f32 %v700_v22, 0.0  ;;  %v575_v31 = vadd.f32 %v3458_v5, %v312_v23  ;;  %v440_v33 = vmul.f32 %v3453_v4, %v177_v20  ;;  %v57_v18 = vld [vmem:[%s5651_s0 + $0x138] sm:$0xff] }
  0x39   :  { %v1133_v36 = vpack.c.bf16 %v955_v15, %v954_v12  ;;  %v1070_v37 = vpack.c.bf16 %v829_v26, %v828_v21  ;;  %v957_v38 = vmax.f32 %v701_v27, 0.0  ;;  %v313_v39 = vmul.f32 %v3453_v4, %v50_v24  ;;  %v183_v12 = vld [vmem:[%s5651_s0 + $0x528] sm:$0xff]  ;;  %v184_v27 = vld [vmem:[%s5651_s0 + $0x530] sm:$0xff] }
  0x3a   :  { %v830_v40 = vmax.f32 %v574_v28, 0.0  ;;  %v702_v41 = vadd.f32 %v3458_v5, %v439_v32  ;;  %v703_v42 = vadd.f32 %v3458_v5, %v440_v33  ;;  %v314_v43 = vmul.f32 %v3453_v4, %v51_v29  ;;  %v185_v28 = vld [vmem:[%s5651_s0 + $0x538] sm:$0xff]  ;;  %v58_v33 = vld [vmem:[%s5651_s0 + $0x140] sm:$0xff] }
  0x3b   :  { %v1134_v45 = vpack.c.bf16 %v957_v38, %v956_v30  ;;  %v576_v46 = vadd.f32 %v3458_v5, %v313_v39  ;;  %v441_v47 = vmul.f32 %v3453_v4, %v178_v34  ;;  %v442_v48 = vmul.f32 %v3453_v4, %v179_v35 }
  0x3c   :  { %v831_v51 = vmax.f32 %v575_v31, 0.0  ;;  %v958_v52 = vmax.f32 %v702_v41, 0.0  ;;  %v959_v53 = vmax.f32 %v703_v42, 0.0  ;;  %v577_v54 = vadd.f32 %v3458_v5, %v314_v43  ;;  %v186_v41 = vld [vmem:[%s5651_s0 + $0x540] sm:$0xff]  ;;  %v187_v42 = vld [vmem:[%s5651_s0 + $0x548] sm:$0xff] }
  0x3d   :  { %3177 = vmatmul.mubr.msk.bf16.gmra.mxu0 %vm1185_vm1, %v1069_v25  ;;  %v832_v56 = vmax.f32 %v576_v46, 0.0  ;;  %v704_v57 = vadd.f32 %v3458_v5, %v441_v47  ;;  %v705_v58 = vadd.f32 %v3458_v5, %v442_v48  ;;  %v315_v59 = vmul.f32 %v3453_v4, %v52_v44 }
  0x3e   :  { %3180 = vmatprep.mubr.msk.bf16.mxu0 %vm1185_vm1, %v1070_v37  ;;  %v833_v61 = vmax.f32 %v577_v54, 0.0  ;;  %v316_v62 = vmul.f32 %v3453_v4, %v53_v49  ;;  %v443_v63 = vmul.f32 %v3453_v4, %v180_v50  ;;  %v444_v6 = vmul.f32 %v3453_v4, %v181_v55  ;;  %v59_v37 = vld [vmem:[%s5651_s0 + $0x148] sm:$0xff]  ;;  %v60_v54 = vld [vmem:[%s5651_s0 + $0x150] sm:$0xff]  ;;  %v61_v55 = vld [vmem:[%s5651_s0 + $0x158] sm:$0xff] }
  0x3f   :  { %3305 = vmatmul.mubr.msk.bf16.gmra.mxu1 %vm1185_vm1, %v1133_v36  ;;  %v960_v1 = vmax.f32 %v704_v57, 0.0  ;;  %v961_v2 = vmax.f32 %v705_v58, 0.0  ;;  %v578_v3 = vadd.f32 %v3458_v5, %v315_v59  ;;  %v1071_v8 = vpack.c.bf16 %v831_v51, %v830_v40 }
  0x40   :  { %3308 = vmatprep.mubr.msk.bf16.mxu1 %vm1185_vm1, %v1134_v45  ;;  %v579_v9 = vadd.f32 %v3458_v5, %v316_v62  ;;  %v706_v10 = vadd.f32 %v3458_v5, %v443_v63  ;;  %v317_v11 = vmul.f32 %v3453_v4, %v54_v60  ;;  %v1135_v14 = vpack.c.bf16 %v959_v53, %v958_v52  ;;  %v188_v60 = vld [vmem:[%s5651_s0 + $0x550] sm:$0xff] }
  0x41   :  { %v1072_v15 = vpack.c.bf16 %v833_v61, %v832_v56  ;;  %v707_v16 = vadd.f32 %v3458_v5, %v444_v6  ;;  %v318_v17 = vmul.f32 %v3453_v4, %v55_v0  ;;  %v1136_v19 = vpack.c.bf16 %v961_v2, %v960_v1  ;;  %v189_v1 = vld [vmem:[%s5651_s0 + $0x558] sm:$0xff]  ;;  %v62_v2 = vld [vmem:[%s5651_s0 + $0x160] sm:$0xff] }
  0x42   :  { %v834_v20 = vmax.f32 %v578_v3, 0.0  ;;  %v580_v21 = vadd.f32 %v3458_v5, %v317_v11  ;;  %v445_v22 = vmul.f32 %v3453_v4, %v182_v7  ;;  %v835_v23 = vmax.f32 %v579_v9, 0.0  ;;  %v63_v9 = vld [vmem:[%s5651_s0 + $0x168] sm:$0xff]  ;;  %v190_v11 = vld [vmem:[%s5651_s0 + $0x560] sm:$0xff] }
  0x43   :  { %v581_v24 = vadd.f32 %v3458_v5, %v318_v17  ;;  %v446_v25 = vmul.f32 %v3453_v4, %v183_v12  ;;  %v319_v26 = vmul.f32 %v3453_v4, %v56_v13  ;;  %v962_v29 = vmax.f32 %v706_v10, 0.0 }
  0x44   :  { %v963_v30 = vmax.f32 %v707_v16, 0.0  ;;  %v708_v31 = vadd.f32 %v3458_v5, %v445_v22  ;;  %v320_v32 = vmul.f32 %v3453_v4, %v57_v18  ;;  %v836_v34 = vmax.f32 %v580_v21, 0.0  ;;  %v191_v16 = vld [vmem:[%s5651_s0 + $0x568] sm:$0xff] }
  0x45   :  { %3181 = vmatmul.mubr.msk.bf16.gmra.mxu0 %vm1185_vm1, %v1071_v8  ;;  %v837_v35 = vmax.f32 %v581_v24, 0.0  ;;  %v709_v36 = vadd.f32 %v3458_v5, %v446_v25  ;;  %v582_v38 = vadd.f32 %v3458_v5, %v319_v26  ;;  %v447_v39 = vmul.f32 %v3453_v4, %v184_v27 }
  0x46   :  { %3184 = vmatprep.mubr.msk.bf16.mxu0 %vm1185_vm1, %v1072_v15  ;;  %v448_v40 = vmul.f32 %v3453_v4, %v185_v28  ;;  %v964_v43 = vmax.f32 %v708_v31, 0.0  ;;  %v583_v45 = vadd.f32 %v3458_v5, %v320_v32  ;;  %v321_v46 = vmul.f32 %v3453_v4, %v58_v33  ;;  %v66_v33 = vld [vmem:[%s5651_s0 + $0x180] sm:$0xff] }
  0x47   :  { %3309 = vmatmul.mubr.msk.bf16.gmra.mxu1 %vm1185_vm1, %v1135_v14  ;;  %v965_v44 = vmax.f32 %v709_v36, 0.0  ;;  %v1073_v47 = vpack.c.bf16 %v835_v23, %v834_v20  ;;  %v1137_v48 = vpack.c.bf16 %v963_v30, %v962_v29  ;;  %v322_v49 = vmul.f32 %v3453_v4, %v59_v37  ;;  %v64_v29 = vld [vmem:[%s5651_s0 + $0x170] sm:$0xff]  ;;  %v65_v30 = vld [vmem:[%s5651_s0 + $0x178] sm:$0xff] }
  0x48   :  { %3312 = vmatprep.mubr.msk.bf16.mxu1 %vm1185_vm1, %v1136_v19  ;;  %v1074_v50 = vpack.c.bf16 %v837_v35, %v836_v34  ;;  %v584_v51 = vadd.f32 %v3458_v5, %v321_v46  ;;  %v449_v52 = vmul.f32 %v3453_v4, %v186_v41  ;;  %v450_v53 = vmul.f32 %v3453_v4, %v187_v42  ;;  %v192_v37 = vld [vmem:[%s5651_s0 + $0x570] sm:$0xff] }
  0x49   :  { %v838_v56 = vmax.f32 %v582_v38, 0.0  ;;  %v710_v57 = vadd.f32 %v3458_v5, %v447_v39  ;;  %v711_v58 = vadd.f32 %v3458_v5, %v448_v40  ;;  %v585_v59 = vadd.f32 %v3458_v5, %v322_v49  ;;  %v193_v38 = vld [vmem:[%s5651_s0 + $0x578] sm:$0xff]  ;;  %v67_v39 = vld [vmem:[%s5651_s0 + $0x188] sm:$0xff] }
  0x4a   :  { %v1138_v61 = vpack.c.bf16 %v965_v44, %v964_v43  ;;  %v839_v62 = vmax.f32 %v583_v45, 0.0  ;;  %v712_v63 = vadd.f32 %v3458_v5, %v449_v52  ;;  %v713_v0 = vadd.f32 %v3458_v5, %v450_v53  ;;  %v194_v44 = vld [vmem:[%s5651_s0 + $0x580] sm:$0xff]  ;;  %v195_v45 = vld [vmem:[%s5651_s0 + $0x588] sm:$0xff] }
  0x4b   :  { %v840_v3 = vmax.f32 %v584_v51, 0.0  ;;  %v841_v6 = vmax.f32 %v585_v59, 0.0  ;;  %v323_v7 = vmul.f32 %v3453_v4, %v60_v54  ;;  %v324_v8 = vmul.f32 %v3453_v4, %v61_v55 }
  0x4c   :  { %v451_v10 = vmul.f32 %v3453_v4, %v188_v60  ;;  %v966_v12 = vmax.f32 %v710_v57, 0.0  ;;  %v967_v13 = vmax.f32 %v711_v58, 0.0  ;;  %v452_v14 = vmul.f32 %v3453_v4, %v189_v1  ;;  %v69_v1 = vld [vmem:[%s5651_s0 + $0x198] sm:$0xff] }
  0x4d   :  { %3185 = vmatmul.mubr.msk.bf16.gmra.mxu0 %vm1185_vm1, %v1073_v47  ;;  %v325_v15 = vmul.f32 %v3453_v4, %v62_v2  ;;  %v1075_v17 = vpack.c.bf16 %v839_v62, %v838_v56  ;;  %v968_v18 = vmax.f32 %v712_v63, 0.0  ;;  %v969_v19 = vmax.f32 %v713_v0, 0.0  ;;  %v68_v0 = vld [vmem:[%s5651_s0 + $0x190] sm:$0xff] }
  0x4e   :  { %3188 = vmatprep.mubr.msk.bf16.mxu0 %vm1185_vm1, %v1074_v50  ;;  %v326_v20 = vmul.f32 %v3453_v4, %v63_v9  ;;  %v1076_v21 = vpack.c.bf16 %v841_v6, %v840_v3  ;;  %v586_v22 = vadd.f32 %v3458_v5, %v323_v7  ;;  %v587_v23 = vadd.f32 %v3458_v5, %v324_v8  ;;  %v70_v7 = vld [vmem:[%s5651_s0 + $0x1a0] sm:$0xff]  ;;  %v71_v8 = vld [vmem:[%s5651_s0 + $0x1a8] sm:$0xff] }
  0x4f   :  { %3313 = vmatmul.mubr.msk.bf16.gmra.mxu1 %vm1185_vm1, %v1137_v48  ;;  %v453_v24 = vmul.f32 %v3453_v4, %v190_v11  ;;  %v714_v25 = vadd.f32 %v3458_v5, %v451_v10  ;;  %v588_v26 = vadd.f32 %v3458_v5, %v325_v15  ;;  %v454_v28 = vmul.f32 %v3453_v4, %v191_v16 }
  0x50   :  { %3316 = vmatprep.mubr.msk.bf16.mxu1 %vm1185_vm1, %v1138_v61  ;;  %v589_v27 = vadd.f32 %v3458_v5, %v326_v20  ;;  %v1139_v31 = vpack.c.bf16 %v967_v13, %v966_v12  ;;  %v715_v32 = vadd.f32 %v3458_v5, %v452_v14  ;;  %v1140_v34 = vpack.c.bf16 %v969_v19, %v968_v18  ;;  %v196_v12 = vld [vmem:[%s5651_s0 + $0x590] sm:$0xff]  ;;  %v197_v13 = vld [vmem:[%s5651_s0 + $0x598] sm:$0xff]  ;;  %v198_v18 = vld [vmem:[%s5651_s0 + $0x5a0] sm:$0xff] }
  0x51   :  { %v716_v35 = vadd.f32 %v3458_v5, %v453_v24  ;;  %v717_v36 = vadd.f32 %v3458_v5, %v454_v28  ;;  %v842_v40 = vmax.f32 %v586_v22, 0.0  ;;  %v843_v41 = vmax.f32 %v587_v23, 0.0  ;;  %v199_v19 = vld [vmem:[%s5651_s0 + $0x5a8] sm:$0xff] }
  0x52   :  { %v327_v42 = vmul.f32 %v3453_v4, %v64_v29  ;;  %v328_v43 = vmul.f32 %v3453_v4, %v65_v30  ;;  %v970_v46 = vmax.f32 %v714_v25, 0.0  ;;  %v844_v47 = vmax.f32 %v588_v26, 0.0 }
  0x53   :  { %v845_v48 = vmax.f32 %v589_v27, 0.0  ;;  %v329_v49 = vmul.f32 %v3453_v4, %v66_v33  ;;  %v971_v50 = vmax.f32 %v715_v32, 0.0  ;;  %v455_v51 = vmul.f32 %v3453_v4, %v192_v37 }
  0x54   :  { %v456_v52 = vmul.f32 %v3453_v4, %v193_v38  ;;  %v330_v53 = vmul.f32 %v3453_v4, %v67_v39  ;;  %v972_v54 = vmax.f32 %v716_v35, 0.0  ;;  %v973_v55 = vmax.f32 %v717_v36, 0.0  ;;  %v72_v39 = vld [vmem:[%s5651_s0 + $0x1b0] sm:$0xff] }
  0x55   :  { %3189 = vmatmul.mubr.msk.bf16.gmra.mxu0 %vm1185_vm1, %v1075_v17  ;;  %v457_v56 = vmul.f32 %v3453_v4, %v194_v44  ;;  %v458_v57 = vmul.f32 %v3453_v4, %v195_v45  ;;  %v1077_v58 = vpack.c.bf16 %v843_v41, %v842_v40  ;;  %v590_v59 = vadd.f32 %v3458_v5, %v327_v42  ;;  %v74_v42 = vld [vmem:[%s5651_s0 + $0x1c0] sm:$0xff] }
  0x56   :  { %3192 = vmatprep.mubr.msk.bf16.mxu0 %vm1185_vm1, %v1076_v21  ;;  %v591_v60 = vadd.f32 %v3458_v5, %v328_v43  ;;  %v1078_v61 = vpack.c.bf16 %v845_v48, %v844_v47  ;;  %v592_v62 = vadd.f32 %v3458_v5, %v329_v49  ;;  %v593_v63 = vadd.f32 %v3458_v5, %v330_v53  ;;  %v75_v43 = vld [vmem:[%s5651_s0 + $0x1c8] sm:$0xff]  ;;  %v200_v47 = vld [vmem:[%s5651_s0 + $0x5b0] sm:$0xff]  ;;  %v201_v48 = vld [vmem:[%s5651_s0 + $0x5b8] sm:$0xff] }
  0x57   :  { %3317 = vmatmul.mubr.msk.bf16.gmra.mxu1 %vm1185_vm1, %v1139_v31  ;;  %v1141_v2 = vpack.c.bf16 %v971_v50, %v970_v46  ;;  %v718_v3 = vadd.f32 %v3458_v5, %v455_v51  ;;  %v719_v6 = vadd.f32 %v3458_v5, %v456_v52  ;;  %v1142_v9 = vpack.c.bf16 %v973_v55, %v972_v54  ;;  %v4067_v51 = vld [vmem:[%s5652_s1] ss:$0 sm:$0xff]  ;;  %v203_v55 = vld [vmem:[%s5651_s0 + $0x5c8] sm:$0xff] }
  0x58   :  { %3320 = vmatprep.mubr.msk.bf16.mxu1 %vm1185_vm1, %v1140_v34  ;;  %v720_v10 = vadd.f32 %v3458_v5, %v457_v56  ;;  %v721_v11 = vadd.f32 %v3458_v5, %v458_v57  ;;  %v846_v14 = vmax.f32 %v590_v59, 0.0  ;;  %v847_v15 = vmax.f32 %v591_v60, 0.0  ;;  %v4036_v34 = vld [vmem:[%s5653_s2] ss:$0 sm:$0xff] }
  0x59   :  { %v331_v16 = vmul.f32 %v3453_v4, %v68_v0  ;;  %v332_v17 = vmul.f32 %v3453_v4, %v69_v1  ;;  %v848_v20 = vmax.f32 %v592_v62, 0.0  ;;  %v849_v21 = vmax.f32 %v593_v63, 0.0  ;;  %v202_v54 = vld [vmem:[%s5651_s0 + $0x5c0] sm:$0xff] }
  0x5a   :  { %v333_v22 = vmul.f32 %v3453_v4, %v70_v7  ;;  %v334_v23 = vmul.f32 %v3453_v4, %v71_v8  ;;  %v974_v24 = vmax.f32 %v718_v3, 0.0  ;;  %v975_v25 = vmax.f32 %v719_v6, 0.0 }
  0x5b   :  { %v459_v26 = vmul.f32 %v3453_v4, %v196_v12  ;;  %v460_v27 = vmul.f32 %v3453_v4, %v197_v13  ;;  %v976_v28 = vmax.f32 %v720_v10, 0.0  ;;  %v977_v29 = vmax.f32 %v721_v11, 0.0  ;;  %v76_v12 = vld [vmem:[%s5651_s0 + $0x1d0] sm:$0xff]  ;;  %v77_v13 = vld [vmem:[%s5651_s0 + $0x1d8] sm:$0xff] }
  0x5c   :  { %v461_v30 = vmul.f32 %v3453_v4, %v198_v18  ;;  %v462_v31 = vmul.f32 %v3453_v4, %v199_v19  ;;  %v1079_v32 = vpack.c.bf16 %v847_v15, %v846_v14  ;;  %v594_v33 = vadd.f32 %v3458_v5, %v331_v16  ;;  %v73_v4 = vld [vmem:[%s5651_s0 + $0x1b8] sm:$0xff]  ;;  %v79_v18 = vld [vmem:[%s5651_s0 + $0x1e8] sm:$0xff] }
  0x5d   :  { %3193 = vmatmul.mubr.msk.bf16.gmra.mxu0 %vm1185_vm1, %v1077_v58  ;;  %v595_v35 = vadd.f32 %v4036_v34, %v332_v17  ;;  %v1080_v36 = vpack.c.bf16 %v849_v21, %v848_v20  ;;  %v596_v37 = vadd.f32 %v4036_v34, %v333_v22  ;;  %v597_v38 = vadd.f32 %v4036_v34, %v334_v23  ;;  %v78_v17 = vld [vmem:[%s5651_s0 + $0x1e0] sm:$0xff]  ;;  %v204_v22 = vld [vmem:[%s5651_s0 + $0x5d0] sm:$0xff]  ;;  %v205_v23 = vld [vmem:[%s5651_s0 + $0x5d8] sm:$0xff] }
  0x5e   :  { %3196 = vmatprep.mubr.msk.bf16.mxu0 %vm1185_vm1, %v1078_v61  ;;  %v1143_v5 = vpack.c.bf16 %v975_v25, %v974_v24  ;;  %v722_v40 = vadd.f32 %v4036_v34, %v459_v26  ;;  %v723_v41 = vadd.f32 %v4036_v34, %v460_v27  ;;  %v1144_v44 = vpack.c.bf16 %v977_v29, %v976_v28  ;;  %v206_v28 = vld [vmem:[%s5651_s0 + $0x5e0] sm:$0xff]  ;;  %v207_v29 = vld [vmem:[%s5651_s0 + $0x5e8] sm:$0xff] }
  0x5f   :  { %3321 = vmatmul.mubr.msk.bf16.gmra.mxu1 %vm1185_vm1, %v1141_v2  ;;  %v724_v45 = vadd.f32 %v4036_v34, %v461_v30  ;;  %v725_v46 = vadd.f32 %v4036_v34, %v462_v31  ;;  %v850_v49 = vmax.f32 %v594_v33, 0.0  ;;  %v851_v50 = vmax.f32 %v595_v35, 0.0 }
  0x60   :  { %3324 = vmatprep.mubr.msk.bf16.mxu1 %vm1185_vm1, %v1142_v9  ;;  %v335_v52 = vmul.f32 %v4067_v51, %v72_v39  ;;  %v336_v53 = vmul.f32 %v4067_v51, %v73_v4  ;;  %v852_v56 = vmax.f32 %v596_v37, 0.0  ;;  %v853_v57 = vmax.f32 %v597_v38, 0.0 }
  0x61   :  { %v337_v58 = vmul.f32 %v4067_v51, %v74_v42  ;;  %v338_v59 = vmul.f32 %v4067_v51, %v75_v43  ;;  %v978_v60 = vmax.f32 %v722_v40, 0.0  ;;  %v979_v61 = vmax.f32 %v723_v41, 0.0 }
  0x62   :  { %v463_v62 = vmul.f32 %v4067_v51, %v200_v47  ;;  %v464_v63 = vmul.f32 %v4067_v51, %v201_v48  ;;  %v980_v0 = vmax.f32 %v724_v45, 0.0  ;;  %v981_v1 = vmax.f32 %v725_v46, 0.0  ;;  %v80_v47 = vld [vmem:[%s5651_s0 + $0x1f0] sm:$0xff]  ;;  %v81_v48 = vld [vmem:[%s5651_s0 + $0x1f8] sm:$0xff] }
  0x63   :  { %v465_v2 = vmul.f32 %v4067_v51, %v202_v54  ;;  %v466_v3 = vmul.f32 %v4067_v51, %v203_v55  ;;  %v1081_v6 = vpack.c.bf16 %v851_v50, %v850_v49  ;;  %v598_v7 = vadd.f32 %v4036_v34, %v335_v52  ;;  %v83_v54 = vld [vmem:[%s5651_s0 + $0x208] sm:$0xff] }
  0x64   :  { %v599_v8 = vadd.f32 %v4036_v34, %v336_v53  ;;  %v1082_v9 = vpack.c.bf16 %v853_v57, %v852_v56  ;;  %v600_v10 = vadd.f32 %v4036_v34, %v337_v58  ;;  %v601_v11 = vadd.f32 %v4036_v34, %v338_v59  ;;  %v82_v53 = vld [vmem:[%s5651_s0 + $0x200] sm:$0xff]  ;;  %v208_v58 = vld [vmem:[%s5651_s0 + $0x5f0] sm:$0xff]  ;;  %v209_v59 = vld [vmem:[%s5651_s0 + $0x5f8] sm:$0xff] }
  0x65   :  { %3197 = vmatmul.mubr.msk.bf16.gmra.mxu0 %vm1185_vm1, %v1079_v32  ;;  %v1145_v14 = vpack.c.bf16 %v979_v61, %v978_v60  ;;  %v726_v15 = vadd.f32 %v4036_v34, %v463_v62  ;;  %v727_v16 = vadd.f32 %v4036_v34, %v464_v63  ;;  %v1146_v19 = vpack.c.bf16 %v981_v1, %v980_v0  ;;  %v210_v0 = vld [vmem:[%s5651_s0 + $0x600] sm:$0xff]  ;;  %v211_v1 = vld [vmem:[%s5651_s0 + $0x608] sm:$0xff] }
  0x66   :  { %3200 = vmatprep.mubr.msk.bf16.mxu0 %vm1185_vm1, %v1080_v36  ;;  %v728_v20 = vadd.f32 %v4036_v34, %v465_v2  ;;  %v729_v21 = vadd.f32 %v4036_v34, %v466_v3  ;;  %v854_v24 = vmax.f32 %v598_v7, 0.0  ;;  %v855_v25 = vmax.f32 %v599_v8, 0.0 }
  0x67   :  { %3325 = vmatmul.mubr.msk.bf16.gmra.mxu1 %vm1185_vm1, %v1143_v5  ;;  %v339_v26 = vmul.f32 %v4067_v51, %v76_v12  ;;  %v340_v27 = vmul.f32 %v4067_v51, %v77_v13  ;;  %v856_v30 = vmax.f32 %v600_v10, 0.0  ;;  %v857_v31 = vmax.f32 %v601_v11, 0.0 }
  0x68   :  { %3328 = vmatprep.mubr.msk.bf16.mxu1 %vm1185_vm1, %v1144_v44  ;;  %v341_v32 = vmul.f32 %v4067_v51, %v78_v17  ;;  %v342_v33 = vmul.f32 %v4067_v51, %v79_v18  ;;  %v982_v35 = vmax.f32 %v726_v15, 0.0  ;;  %v983_v36 = vmax.f32 %v727_v16, 0.0 }
  0x69   :  { %v467_v37 = vmul.f32 %v4067_v51, %v204_v22  ;;  %v468_v38 = vmul.f32 %v4067_v51, %v205_v23  ;;  %v984_v39 = vmax.f32 %v728_v20, 0.0  ;;  %v985_v4 = vmax.f32 %v729_v21, 0.0  ;;  %v84_v22 = vld [vmem:[%s5651_s0 + $0x210] sm:$0xff]  ;;  %v85_v23 = vld [vmem:[%s5651_s0 + $0x218] sm:$0xff] }
  0x6a   :  { %v469_v5 = vmul.f32 %v4067_v51, %v206_v28  ;;  %v470_v40 = vmul.f32 %v4067_v51, %v207_v29  ;;  %v1083_v41 = vpack.c.bf16 %v855_v25, %v854_v24  ;;  %v602_v42 = vadd.f32 %v4036_v34, %v339_v26  ;;  %v87_v28 = vld [vmem:[%s5651_s0 + $0x228] sm:$0xff] }
  0x6b   :  { %v603_v43 = vadd.f32 %v4036_v34, %v340_v27  ;;  %v1084_v44 = vpack.c.bf16 %v857_v31, %v856_v30  ;;  %v604_v45 = vadd.f32 %v4036_v34, %v341_v32  ;;  %v605_v46 = vadd.f32 %v4036_v34, %v342_v33  ;;  %v86_v27 = vld [vmem:[%s5651_s0 + $0x220] sm:$0xff]  ;;  %v212_v32 = vld [vmem:[%s5651_s0 + $0x610] sm:$0xff]  ;;  %v213_v33 = vld [vmem:[%s5651_s0 + $0x618] sm:$0xff] }
  0x6c   :  { %v1147_v49 = vpack.c.bf16 %v983_v36, %v982_v35  ;;  %v730_v50 = vadd.f32 %v4036_v34, %v467_v37  ;;  %v731_v52 = vadd.f32 %v4036_v34, %v468_v38  ;;  %v1148_v55 = vpack.c.bf16 %v985_v4, %v984_v39  ;;  %v214_v39 = vld [vmem:[%s5651_s0 + $0x620] sm:$0xff]  ;;  %v215_v4 = vld [vmem:[%s5651_s0 + $0x628] sm:$0xff] }
  0x6d   :  { %3201 = vmatmul.mubr.msk.bf16.gmra.mxu0 %vm1185_vm1, %v1081_v6  ;;  %v732_v56 = vadd.f32 %v4036_v34, %v469_v5  ;;  %v733_v57 = vadd.f32 %v4036_v34, %v470_v40  ;;  %v858_v60 = vmax.f32 %v602_v42, 0.0  ;;  %v859_v61 = vmax.f32 %v603_v43, 0.0 }
  0x6e   :  { %3204 = vmatprep.mubr.msk.bf16.mxu0 %vm1185_vm1, %v1082_v9  ;;  %v343_v62 = vmul.f32 %v4067_v51, %v80_v47  ;;  %v344_v63 = vmul.f32 %v4067_v51, %v81_v48  ;;  %v860_v2 = vmax.f32 %v604_v45, 0.0  ;;  %v861_v3 = vmax.f32 %v605_v46, 0.0 }
  0x6f   :  { %3329 = vmatmul.mubr.msk.bf16.gmra.mxu1 %vm1185_vm1, %v1145_v14  ;;  %v345_v6 = vmul.f32 %v4067_v51, %v82_v53  ;;  %v346_v7 = vmul.f32 %v4067_v51, %v83_v54  ;;  %v986_v8 = vmax.f32 %v730_v50, 0.0  ;;  %v987_v9 = vmax.f32 %v731_v52, 0.0 }
  0x70   :  { %3332 = vmatprep.mubr.msk.bf16.mxu1 %vm1185_vm1, %v1146_v19  ;;  %v471_v10 = vmul.f32 %v4067_v51, %v208_v58  ;;  %v472_v11 = vmul.f32 %v4067_v51, %v209_v59  ;;  %v988_v12 = vmax.f32 %v732_v56, 0.0  ;;  %v989_v13 = vmax.f32 %v733_v57, 0.0  ;;  %v88_v58 = vld [vmem:[%s5651_s0 + $0x230] sm:$0xff]  ;;  %v89_v59 = vld [vmem:[%s5651_s0 + $0x238] sm:$0xff] }
  0x71   :  { %v473_v14 = vmul.f32 %v4067_v51, %v210_v0  ;;  %v474_v15 = vmul.f32 %v4067_v51, %v211_v1  ;;  %v1085_v16 = vpack.c.bf16 %v859_v61, %v858_v60  ;;  %v606_v17 = vadd.f32 %v4036_v34, %v343_v62  ;;  %v91_v0 = vld [vmem:[%s5651_s0 + $0x248] sm:$0xff] }
  0x72   :  { %v607_v18 = vadd.f32 %v4036_v34, %v344_v63  ;;  %v1086_v19 = vpack.c.bf16 %v861_v3, %v860_v2  ;;  %v608_v20 = vadd.f32 %v4036_v34, %v345_v6  ;;  %v609_v21 = vadd.f32 %v4036_v34, %v346_v7  ;;  %v90_v63 = vld [vmem:[%s5651_s0 + $0x240] sm:$0xff]  ;;  %v216_v6 = vld [vmem:[%s5651_s0 + $0x630] sm:$0xff]  ;;  %v217_v7 = vld [vmem:[%s5651_s0 + $0x638] sm:$0xff] }
  0x73   :  { %v1149_v24 = vpack.c.bf16 %v987_v9, %v986_v8  ;;  %v734_v25 = vadd.f32 %v4036_v34, %v471_v10  ;;  %v735_v26 = vadd.f32 %v4036_v34, %v472_v11  ;;  %v1150_v29 = vpack.c.bf16 %v989_v13, %v988_v12  ;;  %v218_v12 = vld [vmem:[%s5651_s0 + $0x640] sm:$0xff]  ;;  %v219_v13 = vld [vmem:[%s5651_s0 + $0x648] sm:$0xff] }
  0x74   :  { %v736_v30 = vadd.f32 %v4036_v34, %v473_v14  ;;  %v737_v31 = vadd.f32 %v4036_v34, %v474_v15  ;;  %v862_v35 = vmax.f32 %v606_v17, 0.0  ;;  %v863_v36 = vmax.f32 %v607_v18, 0.0 }
  0x75   :  { %3205 = vmatmul.mubr.msk.bf16.gmra.mxu0 %vm1185_vm1, %v1083_v41  ;;  %v347_v37 = vmul.f32 %v4067_v51, %v84_v22  ;;  %v348_v38 = vmul.f32 %v4067_v51, %v85_v23  ;;  %v864_v5 = vmax.f32 %v608_v20, 0.0  ;;  %v865_v40 = vmax.f32 %v609_v21, 0.0 }
  0x76   :  { %3208 = vmatprep.mubr.msk.bf16.mxu0 %vm1185_vm1, %v1084_v44  ;;  %v349_v41 = vmul.f32 %v4067_v51, %v86_v27  ;;  %v350_v42 = vmul.f32 %v4067_v51, %v87_v28  ;;  %v990_v43 = vmax.f32 %v734_v25, 0.0  ;;  %v991_v44 = vmax.f32 %v735_v26, 0.0 }
  0x77   :  { %3333 = vmatmul.mubr.msk.bf16.gmra.mxu1 %vm1185_vm1, %v1147_v49  ;;  %v475_v45 = vmul.f32 %v4067_v51, %v212_v32  ;;  %v476_v46 = vmul.f32 %v4067_v51, %v213_v33  ;;  %v992_v47 = vmax.f32 %v736_v30, 0.0  ;;  %v993_v48 = vmax.f32 %v737_v31, 0.0  ;;  %v92_v32 = vld [vmem:[%s5651_s0 + $0x250] sm:$0xff]  ;;  %v93_v33 = vld [vmem:[%s5651_s0 + $0x258] sm:$0xff] }
  0x78   :  { %3336 = vmatprep.mubr.msk.bf16.mxu1 %vm1185_vm1, %v1148_v55  ;;  %v477_v49 = vmul.f32 %v4067_v51, %v214_v39  ;;  %v478_v50 = vmul.f32 %v4067_v51, %v215_v4  ;;  %v1087_v52 = vpack.c.bf16 %v863_v36, %v862_v35  ;;  %v610_v53 = vadd.f32 %v4036_v34, %v347_v37  ;;  %v95_v39 = vld [vmem:[%s5651_s0 + $0x268] sm:$0xff] }
  0x79   :  { %v611_v54 = vadd.f32 %v4036_v34, %v348_v38  ;;  %v1088_v55 = vpack.c.bf16 %v865_v40, %v864_v5  ;;  %v612_v56 = vadd.f32 %v4036_v34, %v349_v41  ;;  %v613_v57 = vadd.f32 %v4036_v34, %v350_v42  ;;  %v94_v38 = vld [vmem:[%s5651_s0 + $0x260] sm:$0xff]  ;;  %v220_v41 = vld [vmem:[%s5651_s0 + $0x650] sm:$0xff]  ;;  %v221_v42 = vld [vmem:[%s5651_s0 + $0x658] sm:$0xff] }
  0x7a   :  { %v1151_v60 = vpack.c.bf16 %v991_v44, %v990_v43  ;;  %v738_v61 = vadd.f32 %v4036_v34, %v475_v45  ;;  %v739_v62 = vadd.f32 %v4036_v34, %v476_v46  ;;  %v1152_v1 = vpack.c.bf16 %v993_v48, %v992_v47  ;;  %v222_v47 = vld [vmem:[%s5651_s0 + $0x660] sm:$0xff]  ;;  %v223_v48 = vld [vmem:[%s5651_s0 + $0x668] sm:$0xff] }
  0x7b   :  { %v740_v2 = vadd.f32 %v4036_v34, %v477_v49  ;;  %v741_v3 = vadd.f32 %v4036_v34, %v478_v50  ;;  %v866_v8 = vmax.f32 %v610_v53, 0.0  ;;  %v867_v9 = vmax.f32 %v611_v54, 0.0 }
  0x7c   :  { %v351_v10 = vmul.f32 %v4067_v51, %v88_v58  ;;  %v352_v11 = vmul.f32 %v4067_v51, %v89_v59  ;;  %v868_v14 = vmax.f32 %v612_v56, 0.0  ;;  %v869_v15 = vmax.f32 %v613_v57, 0.0 }
  0x7d   :  { %3209 = vmatmul.mubr.msk.bf16.gmra.mxu0 %vm1185_vm1, %v1085_v16  ;;  %v353_v16 = vmul.f32 %v4067_v51, %v90_v63  ;;  %v354_v17 = vmul.f32 %v4067_v51, %v91_v0  ;;  %v994_v18 = vmax.f32 %v738_v61, 0.0  ;;  %v479_v20 = vmul.f32 %v4067_v51, %v216_v6  ;;  %v96_v6 = vld [vmem:[%s5651_s0 + $0x270] sm:$0xff] }
  0x7e   :  { %3212 = vmatprep.mubr.msk.bf16.mxu0 %vm1185_vm1, %v1086_v19  ;;  %v995_v19 = vmax.f32 %v739_v62, 0.0  ;;  %v480_v21 = vmul.f32 %v4067_v51, %v217_v7  ;;  %v996_v22 = vmax.f32 %v740_v2, 0.0  ;;  %v997_v23 = vmax.f32 %v741_v3, 0.0  ;;  %v97_v7 = vld [vmem:[%s5651_s0 + $0x278] sm:$0xff] }
  0x7f   :  { %3337 = vmatmul.mubr.msk.bf16.gmra.mxu1 %vm1185_vm1, %v1149_v24  ;;  %v481_v24 = vmul.f32 %v4067_v51, %v218_v12  ;;  %v482_v25 = vmul.f32 %v4067_v51, %v219_v13  ;;  %v1089_v26 = vpack.c.bf16 %v867_v9, %v866_v8  ;;  %v614_v27 = vadd.f32 %v4036_v34, %v351_v10  ;;  %v99_v12 = vld [vmem:[%s5651_s0 + $0x288] sm:$0xff] }
  0x80   :  { %3340 = vmatprep.mubr.msk.bf16.mxu1 %vm1185_vm1, %v1150_v29  ;;  %v615_v28 = vadd.f32 %v4036_v34, %v352_v11  ;;  %v1090_v29 = vpack.c.bf16 %v869_v15, %v868_v14  ;;  %v616_v30 = vadd.f32 %v4036_v34, %v353_v16  ;;  %v617_v31 = vadd.f32 %v4036_v34, %v354_v17  ;;  %v98_v11 = vld [vmem:[%s5651_s0 + $0x280] sm:$0xff]  ;;  %v224_v16 = vld [vmem:[%s5651_s0 + $0x670] sm:$0xff]  ;;  %v225_v17 = vld [vmem:[%s5651_s0 + $0x678] sm:$0xff] }
  0x81   :  { %v1153_v35 = vpack.c.bf16 %v995_v19, %v994_v18  ;;  %v742_v36 = vadd.f32 %v4036_v34, %v479_v20  ;;  %v743_v37 = vadd.f32 %v4036_v34, %v480_v21  ;;  %v1154_v4 = vpack.c.bf16 %v997_v23, %v996_v22  ;;  %v226_v22 = vld [vmem:[%s5651_s0 + $0x680] sm:$0xff]  ;;  %v227_v23 = vld [vmem:[%s5651_s0 + $0x688] sm:$0xff] }
  0x82   :  { %v744_v5 = vadd.f32 %v4036_v34, %v481_v24  ;;  %v745_v40 = vadd.f32 %v4036_v34, %v482_v25  ;;  %v870_v43 = vmax.f32 %v614_v27, 0.0  ;;  %v871_v44 = vmax.f32 %v615_v28, 0.0 }
  0x83   :  { %v355_v45 = vmul.f32 %v4067_v51, %v92_v32  ;;  %v356_v46 = vmul.f32 %v4067_v51, %v93_v33  ;;  %v872_v49 = vmax.f32 %v616_v30, 0.0  ;;  %v873_v50 = vmax.f32 %v617_v31, 0.0 }
  0x84   :  { %v358_v53 = vmul.f32 %v4067_v51, %v95_v39  ;;  %v998_v54 = vmax.f32 %v742_v36, 0.0  ;;  %v483_v56 = vmul.f32 %v4067_v51, %v220_v41  ;;  %v484_v57 = vmul.f32 %v4067_v51, %v221_v42  ;;  %v100_v41 = vld [vmem:[%s5651_s0 + $0x290] sm:$0xff]  ;;  %v101_v42 = vld [vmem:[%s5651_s0 + $0x298] sm:$0xff] }
  0x85   :  { %3213 = vmatmul.mubr.msk.bf16.gmra.mxu0 %vm1185_vm1, %v1087_v52  ;;  %v357_v52 = vmul.f32 %v4067_v51, %v94_v38  ;;  %v1000_v58 = vmax.f32 %v744_v5, 0.0  ;;  %v1001_v59 = vmax.f32 %v745_v40, 0.0  ;;  %v486_v61 = vmul.f32 %v4067_v51, %v223_v48 }
  0x86   :  { %3216 = vmatprep.mubr.msk.bf16.mxu0 %vm1185_vm1, %v1088_v55  ;;  %v999_v55 = vmax.f32 %v743_v37, 0.0  ;;  %v1091_v62 = vpack.c.bf16 %v871_v44, %v870_v43  ;;  %v618_v63 = vadd.f32 %v4036_v34, %v355_v45  ;;  %v619_v0 = vadd.f32 %v4036_v34, %v356_v46  ;;  %v102_v46 = vld [vmem:[%s5651_s0 + $0x2a0] sm:$0xff] }
  0x87   :  { %3341 = vmatmul.mubr.msk.bf16.gmra.mxu1 %vm1185_vm1, %v1151_v60  ;;  %v485_v60 = vmul.f32 %v4067_v51, %v222_v47  ;;  %v620_v2 = vadd.f32 %v4036_v34, %v357_v52  ;;  %v621_v3 = vadd.f32 %v4036_v34, %v358_v53  ;;  %v746_v9 = vadd.f32 %v4036_v34, %v483_v56  ;;  %v103_v47 = vld [vmem:[%s5651_s0 + $0x2a8] sm:$0xff]  ;;  %v228_v52 = vld [vmem:[%s5651_s0 + $0x690] sm:$0xff]  ;;  %v229_v53 = vld [vmem:[%s5651_s0 + $0x698] sm:$0xff] }
  0x88   :  { %3344 = vmatprep.mubr.msk.bf16.mxu1 %vm1185_vm1, %v1152_v1  ;;  %v1092_v1 = vpack.c.bf16 %v873_v50, %v872_v49  ;;  %v1155_v8 = vpack.c.bf16 %v999_v55, %v998_v54  ;;  %v747_v10 = vadd.f32 %v4036_v34, %v484_v57  ;;  %v1156_v13 = vpack.c.bf16 %v1001_v59, %v1000_v58  ;;  %v230_v58 = vld [vmem:[%s5651_s0 + $0x6a0] sm:$0xff]  ;;  %v231_v59 = vld [vmem:[%s5651_s0 + $0x6a8] sm:$0xff] }
  0x89   :  { %v748_v14 = vadd.f32 %v4036_v34, %v485_v60  ;;  %v749_v15 = vadd.f32 %v4036_v34, %v486_v61  ;;  %v874_v18 = vmax.f32 %v618_v63, 0.0  ;;  %v875_v19 = vmax.f32 %v619_v0, 0.0 }
  0x8a   :  { %v359_v20 = vmul.f32 %v4067_v51, %v96_v6  ;;  %v360_v21 = vmul.f32 %v4067_v51, %v97_v7  ;;  %v876_v24 = vmax.f32 %v620_v2, 0.0  ;;  %v877_v25 = vmax.f32 %v621_v3, 0.0 }
  0x8b   :  { %v362_v27 = vmul.f32 %v4067_v51, %v99_v12  ;;  %v1002_v28 = vmax.f32 %v746_v9, 0.0  ;;  %v487_v30 = vmul.f32 %v4067_v51, %v224_v16  ;;  %v488_v31 = vmul.f32 %v4067_v51, %v225_v17  ;;  %v104_v16 = vld [vmem:[%s5651_s0 + $0x2b0] sm:$0xff]  ;;  %v105_v17 = vld [vmem:[%s5651_s0 + $0x2b8] sm:$0xff] }
  0x8c   :  { %v1004_v32 = vmax.f32 %v748_v14, 0.0  ;;  %v1005_v33 = vmax.f32 %v749_v15, 0.0  ;;  %v490_v36 = vmul.f32 %v4067_v51, %v227_v23  ;;  %v1093_v37 = vpack.c.bf16 %v875_v19, %v874_v18 }
  0x8d   :  { %3217 = vmatmul.mubr.msk.bf16.gmra.mxu0 %vm1185_vm1, %v1089_v26  ;;  %v361_v26 = vmul.f32 %v4067_v51, %v98_v11  ;;  %v622_v38 = vadd.f32 %v4036_v34, %v359_v20  ;;  %v623_v39 = vadd.f32 %v4036_v34, %v360_v21  ;;  %v625_v40 = vadd.f32 %v4036_v34, %v362_v27  ;;  %v106_v21 = vld [vmem:[%s5651_s0 + $0x2c0] sm:$0xff]  ;;  %v233_v27 = vld [vmem:[%s5651_s0 + $0x6b8] sm:$0xff] }
  0x8e   :  { %3220 = vmatprep.mubr.msk.bf16.mxu0 %vm1185_vm1, %v1090_v29  ;;  %v1003_v29 = vmax.f32 %v747_v10, 0.0  ;;  %v750_v44 = vadd.f32 %v4036_v34, %v487_v30  ;;  %v751_v45 = vadd.f32 %v4036_v34, %v488_v31  ;;  %v1158_v48 = vpack.c.bf16 %v1005_v33, %v1004_v32  ;;  %v234_v32 = vld [vmem:[%s5651_s0 + $0x6c0] sm:$0xff]  ;;  %v235_v33 = vld [vmem:[%s5651_s0 + $0x6c8] sm:$0xff] }
  0x8f   :  { %3345 = vmatmul.mubr.msk.bf16.gmra.mxu1 %vm1185_vm1, %v1153_v35  ;;  %v489_v35 = vmul.f32 %v4067_v51, %v226_v22  ;;  %v624_v5 = vadd.f32 %v4036_v34, %v361_v26  ;;  %v753_v50 = vadd.f32 %v4036_v34, %v490_v36  ;;  %v878_v54 = vmax.f32 %v622_v38, 0.0  ;;  %v107_v22 = vld [vmem:[%s5651_s0 + $0x2c8] sm:$0xff]  ;;  %v232_v26 = vld [vmem:[%s5651_s0 + $0x6b0] sm:$0xff] }
  0x90   :  { %3348 = vmatprep.mubr.msk.bf16.mxu1 %vm1185_vm1, %v1154_v4  ;;  %v1094_v4 = vpack.c.bf16 %v877_v25, %v876_v24  ;;  %v1157_v43 = vpack.c.bf16 %v1003_v29, %v1002_v28  ;;  %v879_v55 = vmax.f32 %v623_v39, 0.0  ;;  %v363_v56 = vmul.f32 %v4067_v51, %v100_v41 }
  0x91   :  { %v752_v49 = vadd.f32 %v4036_v34, %v489_v35  ;;  %v364_v57 = vmul.f32 %v4067_v51, %v101_v42  ;;  %v880_v60 = vmax.f32 %v624_v5, 0.0  ;;  %v881_v61 = vmax.f32 %v625_v40, 0.0 }
  0x92   :  { %v366_v63 = vmul.f32 %v4067_v51, %v103_v47  ;;  %v1006_v0 = vmax.f32 %v750_v44, 0.0  ;;  %v491_v2 = vmul.f32 %v4067_v51, %v228_v52  ;;  %v492_v3 = vmul.f32 %v4067_v51, %v229_v53  ;;  %v108_v52 = vld [vmem:[%s5651_s0 + $0x2d0] sm:$0xff]  ;;  %v109_v53 = vld [vmem:[%s5651_s0 + $0x2d8] sm:$0xff] }
  0x93   :  { %v1008_v6 = vmax.f32 %v752_v49, 0.0  ;;  %v1009_v7 = vmax.f32 %v753_v50, 0.0  ;;  %v494_v9 = vmul.f32 %v4067_v51, %v231_v59  ;;  %v1095_v10 = vpack.c.bf16 %v879_v55, %v878_v54 }
  0x94   :  { %v626_v11 = vadd.f32 %v4036_v34, %v363_v56  ;;  %v627_v12 = vadd.f32 %v4036_v34, %v364_v57  ;;  %v629_v15 = vadd.f32 %v4036_v34, %v366_v63  ;;  %v754_v19 = vadd.f32 %v4036_v34, %v491_v2  ;;  %v110_v57 = vld [vmem:[%s5651_s0 + $0x2e0] sm:$0xff]  ;;  %v237_v63 = vld [vmem:[%s5651_s0 + $0x6d8] sm:$0xff] }
  0x95   :  { %3221 = vmatmul.mubr.msk.bf16.gmra.mxu0 %vm1185_vm1, %v1091_v62  ;;  %v365_v62 = vmul.f32 %v4067_v51, %v102_v46  ;;  %v755_v20 = vadd.f32 %v4036_v34, %v492_v3  ;;  %v1160_v23 = vpack.c.bf16 %v1009_v7, %v1008_v6  ;;  %v757_v25 = vadd.f32 %v4036_v34, %v494_v9  ;;  %v238_v6 = vld [vmem:[%s5651_s0 + $0x6e0] sm:$0xff]  ;;  %v239_v7 = vld [vmem:[%s5651_s0 + $0x6e8] sm:$0xff] }
  0x96   :  { %3224 = vmatprep.mubr.msk.bf16.mxu0 %vm1185_vm1, %v1092_v1  ;;  %v1007_v1 = vmax.f32 %v751_v45, 0.0  ;;  %v882_v28 = vmax.f32 %v626_v11, 0.0  ;;  %v883_v29 = vmax.f32 %v627_v12, 0.0  ;;  %v367_v30 = vmul.f32 %v4067_v51, %v104_v16 }
  0x97   :  { %3349 = vmatmul.mubr.msk.bf16.gmra.mxu1 %vm1185_vm1, %v1155_v8  ;;  %v493_v8 = vmul.f32 %v4067_v51, %v230_v58  ;;  %v628_v14 = vadd.f32 %v4036_v34, %v365_v62  ;;  %v368_v31 = vmul.f32 %v4067_v51, %v105_v17  ;;  %v885_v36 = vmax.f32 %v629_v15, 0.0  ;;  %v111_v58 = vld [vmem:[%s5651_s0 + $0x2e8] sm:$0xff]  ;;  %v236_v62 = vld [vmem:[%s5651_s0 + $0x6d0] sm:$0xff] }
  0x98   :  { %3352 = vmatprep.mubr.msk.bf16.mxu1 %vm1185_vm1, %v1156_v13  ;;  %v1096_v13 = vpack.c.bf16 %v881_v61, %v880_v60  ;;  %v1159_v18 = vpack.c.bf16 %v1007_v1, %v1006_v0  ;;  %v370_v38 = vmul.f32 %v4067_v51, %v107_v22  ;;  %v1010_v39 = vmax.f32 %v754_v19, 0.0 }
  0x99   :  { %v756_v24 = vadd.f32 %v4036_v34, %v493_v8  ;;  %v884_v35 = vmax.f32 %v628_v14, 0.0  ;;  %v495_v5 = vmul.f32 %v4067_v51, %v232_v26  ;;  %v496_v40 = vmul.f32 %v4067_v51, %v233_v27  ;;  %v112_v26 = vld [vmem:[%s5651_s0 + $0x2f0] sm:$0xff]  ;;  %v113_v27 = vld [vmem:[%s5651_s0 + $0x2f8] sm:$0xff] }
  0x9a   :  { %v1013_v42 = vmax.f32 %v757_v25, 0.0  ;;  %v498_v44 = vmul.f32 %v4067_v51, %v235_v33  ;;  %v1097_v45 = vpack.c.bf16 %v883_v29, %v882_v28  ;;  %v630_v46 = vadd.f32 %v4036_v34, %v367_v30 }
  0x9b   :  { %v1012_v41 = vmax.f32 %v756_v24, 0.0  ;;  %v631_v47 = vadd.f32 %v4036_v34, %v368_v31  ;;  %v633_v50 = vadd.f32 %v4036_v34, %v370_v38  ;;  %v758_v55 = vadd.f32 %v4036_v34, %v495_v5  ;;  %v114_v31 = vld [vmem:[%s5651_s0 + $0x300] sm:$0xff]  ;;  %v241_v38 = vld [vmem:[%s5651_s0 + $0x6f8] sm:$0xff] }
  0x9c   :  { %v759_v56 = vadd.f32 %v4036_v34, %v496_v40  ;;  %v761_v61 = vadd.f32 %v4036_v34, %v498_v44  ;;  %v886_v0 = vmax.f32 %v630_v46, 0.0  ;;  %v371_v2 = vmul.f32 %v4067_v51, %v108_v52 }
  0x9d   :  { %3225 = vmatmul.mubr.msk.bf16.gmra.mxu0 %vm1185_vm1, %v1093_v37  ;;  %v369_v37 = vmul.f32 %v4067_v51, %v106_v21  ;;  %v1162_v59 = vpack.c.bf16 %v1013_v42, %v1012_v41  ;;  %v887_v1 = vmax.f32 %v631_v47, 0.0  ;;  %v372_v3 = vmul.f32 %v4067_v51, %v109_v53  ;;  %v242_v41 = vld [vmem:[%s5651_s0 + $0x700] sm:$0xff]  ;;  %v243_v42 = vld [vmem:[%s5651_s0 + $0x708] sm:$0xff] }
  0x9e   :  { %3228 = vmatprep.mubr.msk.bf16.mxu0 %vm1185_vm1, %v1094_v4  ;;  %v1011_v4 = vmax.f32 %v755_v20, 0.0  ;;  %v889_v9 = vmax.f32 %v633_v50, 0.0  ;;  %v374_v11 = vmul.f32 %v4067_v51, %v111_v58  ;;  %v1014_v12 = vmax.f32 %v758_v55, 0.0 }
  0x9f   :  { %3353 = vmatmul.mubr.msk.bf16.gmra.mxu1 %vm1185_vm1, %v1157_v43  ;;  %v497_v43 = vmul.f32 %v4067_v51, %v234_v32  ;;  %v632_v49 = vadd.f32 %v4036_v34, %v369_v37  ;;  %v499_v14 = vmul.f32 %v4067_v51, %v236_v62  ;;  %v500_v15 = vmul.f32 %v4067_v51, %v237_v63  ;;  %v115_v32 = vld [vmem:[%s5651_s0 + $0x308] sm:$0xff]  ;;  %v240_v37 = vld [vmem:[%s5651_s0 + $0x6f0] sm:$0xff]  ;;  %v117_v63 = vld [vmem:[%s5651_s0 + $0x318] sm:$0xff] }
  0xa0   :  { %3356 = vmatprep.mubr.msk.bf16.mxu1 %vm1185_vm1, %v1158_v48  ;;  %v1098_v48 = vpack.c.bf16 %v885_v36, %v884_v35  ;;  %v1161_v54 = vpack.c.bf16 %v1011_v4, %v1010_v39  ;;  %v1017_v17 = vmax.f32 %v761_v61, 0.0  ;;  %v502_v19 = vmul.f32 %v4067_v51, %v239_v7  ;;  %v116_v62 = vld [vmem:[%s5651_s0 + $0x310] sm:$0xff] }
  0xa1   :  { %v760_v60 = vadd.f32 %v4036_v34, %v497_v43  ;;  %v888_v8 = vmax.f32 %v632_v49, 0.0  ;;  %v1099_v20 = vpack.c.bf16 %v887_v1, %v886_v0  ;;  %v634_v21 = vadd.f32 %v4036_v34, %v371_v2 }
  0xa2   :  { %v635_v22 = vadd.f32 %v4036_v34, %v372_v3  ;;  %v637_v25 = vadd.f32 %v4036_v34, %v374_v11  ;;  %v762_v29 = vadd.f32 %v4036_v34, %v499_v14  ;;  %v763_v30 = vadd.f32 %v4036_v34, %v500_v15  ;;  %v118_v3 = vld [vmem:[%s5651_s0 + $0x320] sm:$0xff]  ;;  %v245_v11 = vld [vmem:[%s5651_s0 + $0x718] sm:$0xff] }
  0xa3   :  { %v1016_v16 = vmax.f32 %v760_v60, 0.0  ;;  %v765_v36 = vadd.f32 %v4036_v34, %v502_v19  ;;  %v890_v39 = vmax.f32 %v634_v21, 0.0  ;;  %v375_v5 = vmul.f32 %v4067_v51, %v112_v26 }
  0xa4   :  { %v891_v4 = vmax.f32 %v635_v22, 0.0  ;;  %v376_v40 = vmul.f32 %v4067_v51, %v113_v27  ;;  %v893_v44 = vmax.f32 %v637_v25, 0.0  ;;  %v378_v46 = vmul.f32 %v4067_v51, %v115_v32 }
  0xa5   :  { %3229 = vmatmul.mubr.msk.bf16.gmra.mxu0 %vm1185_vm1, %v1095_v10  ;;  %v373_v10 = vmul.f32 %v4067_v51, %v110_v57  ;;  %v1164_v33 = vpack.c.bf16 %v1017_v17, %v1016_v16  ;;  %v1018_v47 = vmax.f32 %v762_v29, 0.0  ;;  %v503_v49 = vmul.f32 %v4067_v51, %v240_v37  ;;  %v246_v16 = vld [vmem:[%s5651_s0 + $0x720] sm:$0xff]  ;;  %v247_v17 = vld [vmem:[%s5651_s0 + $0x728] sm:$0xff]  ;;  %v120_v37 = vld [vmem:[%s5651_s0 + $0x330] sm:$0xff] }
  0xa6   :  { %3232 = vmatprep.mubr.msk.bf16.mxu0 %vm1185_vm1, %v1096_v13  ;;  %v1015_v13 = vmax.f32 %v759_v56, 0.0  ;;  %v504_v50 = vmul.f32 %v4067_v51, %v241_v38  ;;  %v1021_v53 = vmax.f32 %v765_v36, 0.0  ;;  %v506_v55 = vmul.f32 %v4067_v51, %v243_v42  ;;  %v121_v38 = vld [vmem:[%s5651_s0 + $0x338] sm:$0xff] }
  0xa7   :  { %3357 = vmatmul.mubr.msk.bf16.gmra.mxu1 %vm1185_vm1, %v1159_v18  ;;  %v501_v18 = vmul.f32 %v4067_v51, %v238_v6  ;;  %v636_v24 = vadd.f32 %v4036_v34, %v373_v10  ;;  %v1101_v56 = vpack.c.bf16 %v891_v4, %v890_v39  ;;  %v638_v57 = vadd.f32 %v4036_v34, %v375_v5  ;;  %v119_v6 = vld [vmem:[%s5651_s0 + $0x328] sm:$0xff]  ;;  %v244_v10 = vld [vmem:[%s5651_s0 + $0x710] sm:$0xff] }
  0xa8   :  { %3360 = vmatprep.mubr.msk.bf16.mxu1 %vm1185_vm1, %v1160_v23  ;;  %v1100_v23 = vpack.c.bf16 %v889_v9, %v888_v8  ;;  %v1163_v28 = vpack.c.bf16 %v1015_v13, %v1014_v12  ;;  %v639_v58 = vadd.f32 %v4036_v34, %v376_v40  ;;  %v641_v61 = vadd.f32 %v4036_v34, %v378_v46  ;;  %v122_v40 = vld [vmem:[%s5651_s0 + $0x340] sm:$0xff]  ;;  %v249_v46 = vld [vmem:[%s5651_s0 + $0x738] sm:$0xff] }
  0xa9   :  { %v764_v35 = vadd.f32 %v4036_v34, %v501_v18  ;;  %v892_v43 = vmax.f32 %v636_v24, 0.0  ;;  %v766_v1 = vadd.f32 %v4036_v34, %v503_v49  ;;  %v767_v2 = vadd.f32 %v4036_v34, %v504_v50 }
  0xaa   :  { %v769_v9 = vadd.f32 %v4036_v34, %v506_v55  ;;  %v894_v12 = vmax.f32 %v638_v57, 0.0  ;;  %v895_v13 = vmax.f32 %v639_v58, 0.0  ;;  %v379_v14 = vmul.f32 %v4067_v51, %v116_v62 }
  0xab   :  { %v1020_v52 = vmax.f32 %v764_v35, 0.0  ;;  %v380_v15 = vmul.f32 %v4067_v51, %v117_v63  ;;  %v897_v19 = vmax.f32 %v641_v61, 0.0  ;;  %v382_v21 = vmul.f32 %v4067_v51, %v119_v6 }
  0xac   :  { %v1022_v22 = vmax.f32 %v766_v1, 0.0  ;;  %v507_v24 = vmul.f32 %v4067_v51, %v244_v10  ;;  %v508_v25 = vmul.f32 %v4067_v51, %v245_v11  ;;  %v1025_v27 = vmax.f32 %v769_v9, 0.0  ;;  %v124_v10 = vld [vmem:[%s5651_s0 + $0x350] sm:$0xff] }
  0xad   :  { %3233 = vmatmul.mubr.msk.bf16.gmra.mxu0 %vm1185_vm1, %v1097_v45  ;;  %v377_v45 = vmul.f32 %v4067_v51, %v114_v31  ;;  %v1166_v7 = vpack.c.bf16 %v1021_v53, %v1020_v52  ;;  %v510_v29 = vmul.f32 %v4067_v51, %v247_v17  ;;  %v642_v31 = vadd.f32 %v4036_v34, %v379_v14  ;;  %v251_v52 = vld [vmem:[%s5651_s0 + $0x748] sm:$0xff]  ;;  %v126_v14 = vld [vmem:[%s5651_s0 + $0x360] sm:$0xff] }
  0xae   :  { %3236 = vmatprep.mubr.msk.bf16.mxu0 %vm1185_vm1, %v1098_v48  ;;  %v1019_v48 = vmax.f32 %v763_v30, 0.0  ;;  %v1103_v30 = vpack.c.bf16 %v895_v13, %v894_v12  ;;  %v643_v32 = vadd.f32 %v4036_v34, %v380_v15  ;;  %v645_v36 = vadd.f32 %v4036_v34, %v382_v21  ;;  %v127_v15 = vld [vmem:[%s5651_s0 + $0x368] sm:$0xff] }
  0xaf   :  { %3361 = vmatmul.mubr.msk.bf16.gmra.mxu1 %vm1185_vm1, %v1161_v54  ;;  %v505_v54 = vmul.f32 %v4067_v51, %v242_v41  ;;  %v640_v60 = vadd.f32 %v4036_v34, %v377_v45  ;;  %v770_v4 = vadd.f32 %v4036_v34, %v507_v24  ;;  %v771_v5 = vadd.f32 %v4036_v34, %v508_v25  ;;  %v123_v41 = vld [vmem:[%s5651_s0 + $0x348] sm:$0xff]  ;;  %v248_v45 = vld [vmem:[%s5651_s0 + $0x730] sm:$0xff]  ;;  %v4649_v24 = vld [vmem:[%s5652_s1] ss:$0 sm:$0xff] }
  0xb0   :  { %3364 = vmatprep.mubr.msk.bf16.mxu1 %vm1185_vm1, %v1162_v59  ;;  %v1102_v59 = vpack.c.bf16 %v893_v44, %v892_v43  ;;  %v1165_v0 = vpack.c.bf16 %v1019_v48, %v1018_v47  ;;  %v773_v44 = vadd.f32 %v4036_v34, %v510_v29  ;;  %v898_v47 = vmax.f32 %v642_v31, 0.0 }
  0xb1   :  { %v768_v8 = vadd.f32 %v4036_v34, %v505_v54  ;;  %v896_v18 = vmax.f32 %v640_v60, 0.0  ;;  %v899_v48 = vmax.f32 %v643_v32, 0.0  ;;  %v383_v49 = vmul.f32 %v4067_v51, %v120_v37 }
  0xb2   :  { %v384_v50 = vmul.f32 %v4067_v51, %v121_v38  ;;  %v901_v54 = vmax.f32 %v645_v36, 0.0  ;;  %v385_v55 = vmul.f32 %v4067_v51, %v122_v40  ;;  %v1026_v57 = vmax.f32 %v770_v4, 0.0 }
  0xb3   :  { %v1024_v26 = vmax.f32 %v768_v8, 0.0  ;;  %v1027_v58 = vmax.f32 %v771_v5, 0.0  ;;  %v512_v60 = vmul.f32 %v4067_v51, %v249_v46  ;;  %v1029_v62 = vmax.f32 %v773_v44, 0.0 }
  0xb4   :  { %v1105_v1 = vpack.c.bf16 %v899_v48, %v898_v47  ;;  %v387_v25 = vmul.f32 %v4649_v24, %v124_v10  ;;  %v389_v31 = vmul.f32 %v4649_v24, %v126_v14  ;;  %v390_v32 = vmul.f32 %v4649_v24, %v127_v15  ;;  %v259_v10 = vld [vmem:[%s5651_s0 + $0x788] sm:$0xff] }
  0xb5   :  { %3237 = vmatmul.mubr.msk.bf16.gmra.mxu0 %vm1185_vm1, %v1099_v20  ;;  %v381_v20 = vmul.f32 %v4067_v51, %v118_v3  ;;  %v1168_v42 = vpack.c.bf16 %v1025_v27, %v1024_v26  ;;  %v1169_v11 = vpack.c.bf16 %v1027_v58, %v1026_v57  ;;  %v254_v27 = vld [vmem:[%s5651_s0 + $0x760] sm:$0xff]  ;;  %v131_v58 = vld [vmem:[%s5651_s0 + $0x388] sm:$0xff] }
  0xb6   :  { %3240 = vmatprep.mubr.msk.bf16.mxu0 %vm1185_vm1, %v1100_v23  ;;  %v1023_v23 = vmax.f32 %v767_v2, 0.0  ;;  %v4617_v2 = vld [vmem:[%s5653_s2] ss:$0 sm:$0xff]  ;;  %v517_v40 = vmul.f32 %v4649_v24, %v254_v27 }
  0xb7   :  { %3365 = vmatmul.mubr.msk.bf16.gmra.mxu1 %vm1185_vm1, %v1163_v28  ;;  %v509_v28 = vmul.f32 %v4067_v51, %v246_v16  ;;  %v644_v35 = vadd.f32 %v4036_v34, %v381_v20  ;;  %v646_v3 = vadd.f32 %v4617_v2, %v383_v49  ;;  %v647_v6 = vadd.f32 %v4617_v2, %v384_v50  ;;  %v253_v20 = vld [vmem:[%s5651_s0 + $0x758] sm:$0xff]  ;;  %v128_v50 = vld [vmem:[%s5651_s0 + $0x370] sm:$0xff]  ;;  %v130_v57 = vld [vmem:[%s5651_s0 + $0x380] sm:$0xff] }
  0xb8   :  { %3368 = vmatprep.mubr.msk.bf16.mxu1 %vm1185_vm1, %v1164_v33  ;;  %v1104_v33 = vpack.c.bf16 %v897_v19, %v896_v18  ;;  %v1167_v39 = vpack.c.bf16 %v1023_v23, %v1022_v22  ;;  %v648_v8 = vadd.f32 %v4617_v2, %v385_v55  ;;  %v775_v13 = vadd.f32 %v4617_v2, %v512_v60  ;;  %v252_v19 = vld [vmem:[%s5651_s0 + $0x750] sm:$0xff] }
  0xb9   :  { %v772_v43 = vadd.f32 %v4036_v34, %v509_v28  ;;  %v250_v34 = vld [vmem:[%s5651_s0 + $0x740] sm:$0xff]  ;;  %v900_v53 = vmax.f32 %v644_v35, 0.0  ;;  %v902_v22 = vmax.f32 %v646_v3, 0.0  ;;  %v903_v23 = vmax.f32 %v647_v6, 0.0  ;;  %v255_v28 = vld [vmem:[%s5651_s0 + $0x768] sm:$0xff] }
  0xba   :  { %v513_v63 = vmul.f32 %v4067_v51, %v250_v34  ;;  %v904_v29 = vmax.f32 %v648_v8, 0.0  ;;  %v1031_v37 = vmax.f32 %v775_v13, 0.0  ;;  %v515_v38 = vmul.f32 %v4649_v24, %v252_v19  ;;  %v129_v34 = vld [vmem:[%s5651_s0 + $0x378] sm:$0xff] }
  0xbb   :  { %v1028_v61 = vmax.f32 %v772_v43, 0.0  ;;  %v1107_v44 = vpack.c.bf16 %v903_v23, %v902_v22  ;;  %v652_v48 = vadd.f32 %v4617_v2, %v389_v31  ;;  %v653_v49 = vadd.f32 %v4617_v2, %v390_v32 }
  0xbc   :  { %v776_v17 = vadd.f32 %v4617_v2, %v513_v63  ;;  %v778_v55 = vadd.f32 %v4617_v2, %v515_v38  ;;  %v780_v60 = vadd.f32 %v4617_v2, %v517_v40  ;;  %v257_v63 = vld [vmem:[%s5651_s0 + $0x778] sm:$0xff]  ;;  %v392_v8 = vmul.f32 %v4649_v24, %v129_v34  ;;  %v135_v40 = vld [vmem:[%s5651_s0 + $0x3a8] sm:$0xff] }
  0xbd   :  { %3241 = vmatmul.mubr.msk.bf16.gmra.mxu0 %vm1185_vm1, %v1101_v56  ;;  %v386_v56 = vmul.f32 %v4067_v51, %v123_v41  ;;  %v1170_v16 = vpack.c.bf16 %v1029_v62, %v1028_v61  ;;  %v518_v41 = vmul.f32 %v4649_v24, %v255_v28  ;;  %v256_v62 = vld [vmem:[%s5651_s0 + $0x770] sm:$0xff]  ;;  %v394_v13 = vmul.f32 %v4649_v24, %v131_v58 }
  0xbe   :  { %3244 = vmatprep.mubr.msk.bf16.mxu0 %vm1185_vm1, %v1102_v59  ;;  %v511_v59 = vmul.f32 %v4067_v51, %v248_v45  ;;  %v1032_v4 = vmax.f32 %v776_v17, 0.0  ;;  %v650_v45 = vadd.f32 %v4617_v2, %v387_v25  ;;  %v520_v19 = vmul.f32 %v4649_v24, %v257_v63 }
  0xbf   :  { %3369 = vmatmul.mubr.msk.bf16.gmra.mxu1 %vm1185_vm1, %v1165_v0  ;;  %v514_v0 = vmul.f32 %v4067_v51, %v251_v52  ;;  %v649_v9 = vadd.f32 %v4617_v2, %v386_v56  ;;  %v125_v51 = vld [vmem:[%s5651_s0 + $0x358] sm:$0xff]  ;;  %v781_v61 = vadd.f32 %v4617_v2, %v518_v41  ;;  %v522_v23 = vmul.f32 %v4649_v24, %v259_v10 }
  0xc0   :  { %3372 = vmatprep.mubr.msk.bf16.mxu1 %vm1185_vm1, %v1166_v7  ;;  %v1106_v7 = vpack.c.bf16 %v901_v54, %v900_v53  ;;  %v774_v12 = vadd.f32 %v4617_v2, %v511_v59  ;;  %v388_v26 = vmul.f32 %v4649_v24, %v125_v51  ;;  %v906_v3 = vmax.f32 %v650_v45, 0.0  ;;  %v261_v45 = vld [vmem:[%s5651_s0 + $0x798] sm:$0xff] }
  0xc1   :  { %v777_v18 = vadd.f32 %v4617_v2, %v514_v0  ;;  %v908_v51 = vmax.f32 %v652_v48, 0.0  ;;  %v657_v32 = vadd.f32 %v4617_v2, %v394_v13  ;;  %v524_v63 = vmul.f32 %v4649_v24, %v261_v45 }
  0xc2   :  { %v1030_v36 = vmax.f32 %v774_v12, 0.0  ;;  %v651_v46 = vadd.f32 %v4617_v2, %v388_v26  ;;  %v393_v12 = vmul.f32 %v4649_v24, %v130_v57  ;;  %v398_v57 = vmul.f32 %v4649_v24, %v135_v40 }
  0xc3   :  { %v1033_v5 = vmax.f32 %v777_v18, 0.0  ;;  %v519_v18 = vmul.f32 %v4649_v24, %v256_v62 }
  0xc4   :  { %v1171_v54 = vpack.c.bf16 %v1031_v37, %v1030_v36  ;;  %v907_v6 = vmax.f32 %v651_v46, 0.0  ;;  %v656_v31 = vadd.f32 %v4617_v2, %v393_v12  ;;  %v661_v13 = vadd.f32 %v4617_v2, %v398_v57 }
  0xc5   :  { %3245 = vmatmul.mubr.msk.bf16.gmra.mxu0 %vm1185_vm1, %v1103_v30  ;;  %v905_v30 = vmax.f32 %v649_v9, 0.0  ;;  %v1172_v59 = vpack.c.bf16 %v1033_v5, %v1032_v4  ;;  %v258_v9 = vld [vmem:[%s5651_s0 + $0x780] sm:$0xff]  ;;  %v783_v4 = vadd.f32 %v4617_v2, %v520_v19 }
  0xc6   :  { %3248 = vmatprep.mubr.msk.bf16.mxu0 %vm1185_vm1, %v1104_v33  ;;  %v521_v22 = vmul.f32 %v4649_v24, %v258_v9  ;;  %v1109_v27 = vpack.c.bf16 %v907_v6, %v906_v3  ;;  %v134_v5 = vld [vmem:[%s5651_s0 + $0x3a0] sm:$0xff] }
  0xc7   :  { %3373 = vmatmul.mubr.msk.bf16.gmra.mxu1 %vm1185_vm1, %v1167_v39  ;;  %v516_v39 = vmul.f32 %v4649_v24, %v253_v20  ;;  %v1108_v47 = vpack.c.bf16 %v905_v30, %v904_v29  ;;  %v1036_v20 = vmax.f32 %v780_v60, 0.0  ;;  %v655_v29 = vadd.f32 %v4617_v2, %v392_v8 }
  0xc8   :  { %3376 = vmatprep.mubr.msk.bf16.mxu1 %vm1185_vm1, %v1168_v42 }
  0xc9   :  { %v779_v56 = vadd.f32 %v4617_v2, %v516_v39  ;;  %v782_v39 = vadd.f32 %v4617_v2, %v519_v18 }
  0xcb   :  { %v1035_v17 = vmax.f32 %v779_v56, 0.0  ;;  %v397_v56 = vmul.f32 %v4649_v24, %v134_v5  ;;  %v1038_v60 = vmax.f32 %v782_v39, 0.0  ;;  %v917_v39 = vmax.f32 %v661_v13, 0.0 }
  0xcd   :  { %v3154_v21 = vpop.f32.mrf.mxu0  ;;  %3249 = vmatmul.mubr.msk.bf16.gmra.mxu0 %vm1185_vm1, %v1105_v1  ;;  %v660_v12 = vadd.f32 %v4617_v2, %v397_v56 }
  0xce   :  { %2633 = vst [vmem:[%s5654_s4 + $0x10] sm:$0xff] %v3154_v21  ;;  %3252 = vmatprep.mubr.msk.bf16.mxu0 %vm1185_vm1, %v1106_v7  ;;  %v391_v7 = vmul.f32 %v4649_v24, %v128_v50  ;;  %v1037_v21 = vmax.f32 %v781_v61, 0.0  ;;  %v1039_v61 = vmax.f32 %v783_v4, 0.0 }
  0xcf   :  { %v3282_v33 = vpop.f32.mrf.mxu1  ;;  %3377 = vmatmul.mubr.msk.bf16.gmra.mxu1 %vm1185_vm1, %v1169_v11  ;;  %v1608_v35 = vpop.f32.mrf.mxu0  ;;  %v909_v11 = vmax.f32 %v653_v49, 0.0  ;;  %v911_v49 = vmax.f32 %v655_v29, 0.0 }
  0xd0   :  { %2761 = vst [vmem:[%s5654_s4 + $0x410] sm:$0xff] %v3282_v33  ;;  %2631 = vst [vmem:[%s5654_s4] sm:$0xff] %v1608_v35  ;;  %3380 = vmatprep.mubr.msk.bf16.mxu1 %vm1185_vm1, %v1170_v16  ;;  %v1034_v16 = vmax.f32 %v778_v55, 0.0  ;;  %v654_v28 = vadd.f32 %v4617_v2, %v391_v7  ;;  %v132_v33 = vld [vmem:[%s5651_s0 + $0x390] sm:$0xff]  ;;  %v133_v35 = vld [vmem:[%s5651_s0 + $0x398] sm:$0xff]  ;;  %v1174_v41 = vpack.c.bf16 %v1037_v21, %v1036_v20  ;;  %v913_v55 = vmax.f32 %v657_v32, 0.0 }
  0xd1   :  { %v2120_v42 = vpop.f32.mrf.mxu1  ;;  %v3155_v43 = vpop.f32.mrf.mxu0  ;;  %v1110_v30 = vpack.c.bf16 %v909_v11, %v908_v51  ;;  %v395_v50 = vmul.f32 %v4649_v24, %v132_v33  ;;  %v396_v34 = vmul.f32 %v4649_v24, %v133_v35  ;;  %v1175_v18 = vpack.c.bf16 %v1039_v61, %v1038_v60  ;;  %v138_v21 = vld [vmem:[%s5651_s0 + $0x3c0] sm:$0xff] }
  0xd2   :  { %2759 = vst [vmem:[%s5654_s4 + $0x400] sm:$0xff] %v2120_v42  ;;  %2634 = vst [vmem:[%s5654_s4 + $0x18] sm:$0xff] %v3155_v43  ;;  %v1173_v38 = vpack.c.bf16 %v1035_v17, %v1034_v16  ;;  %v784_v42 = vadd.f32 %v4617_v2, %v521_v22  ;;  %v785_v43 = vadd.f32 %v4617_v2, %v522_v23  ;;  %v910_v48 = vmax.f32 %v654_v28, 0.0  ;;  %v139_v22 = vld [vmem:[%s5651_s0 + $0x3c8] sm:$0xff]  ;;  %v265_v28 = vld [vmem:[%s5651_s0 + $0x7b8] sm:$0xff] }
  0xd3   :  { %v3283_v52 = vpop.f32.mrf.mxu1  ;;  %v1611_v53 = vpop.f32.mrf.mxu0  ;;  %v658_v10 = vadd.f32 %v4617_v2, %v395_v50  ;;  %v659_v51 = vadd.f32 %v4617_v2, %v396_v34  ;;  %v787_v20 = vadd.f32 %v4617_v2, %v524_v63  ;;  %v401_v4 = vmul.f32 %v4649_v24, %v138_v21 }
  0xd4   :  { %2762 = vst [vmem:[%s5654_s4 + $0x418] sm:$0xff] %v3283_v52  ;;  %2632 = vst [vmem:[%s5654_s4 + $0x8] sm:$0xff] %v1611_v53  ;;  %v262_v52 = vld [vmem:[%s5651_s0 + $0x7a0] sm:$0xff]  ;;  %v263_v53 = vld [vmem:[%s5651_s0 + $0x7a8] sm:$0xff]  ;;  %v1111_v9 = vpack.c.bf16 %v911_v49, %v910_v48  ;;  %v402_v5 = vmul.f32 %v4649_v24, %v139_v22  ;;  %v528_v45 = vmul.f32 %v4649_v24, %v265_v28 }
  0xd5   :  { %v2123_v0 = vpop.f32.mrf.mxu1  ;;  %v3158_v1 = vpop.f32.mrf.mxu0  ;;  %3253 = vmatmul.mubr.msk.bf16.gmra.mxu0 %vm1185_vm1, %v1107_v44  ;;  %v260_v44 = vld [vmem:[%s5651_s0 + $0x790] sm:$0xff]  ;;  %v525_v3 = vmul.f32 %v4649_v24, %v262_v52  ;;  %v526_v6 = vmul.f32 %v4649_v24, %v263_v53  ;;  %v915_v32 = vmax.f32 %v659_v51, 0.0  ;;  %v664_v56 = vadd.f32 %v4617_v2, %v401_v4 }
  0xd6   :  { %2760 = vst [vmem:[%s5654_s4 + $0x408] sm:$0xff] %v2123_v0  ;;  %2637 = vst [vmem:[%s5654_s4 + $0x30] sm:$0xff] %v3158_v1  ;;  %3256 = vmatprep.mubr.msk.bf16.mxu0 %vm1185_vm1, %v1108_v47  ;;  %v523_v62 = vmul.f32 %v4649_v24, %v260_v44  ;;  %v1040_v0 = vmax.f32 %v784_v42, 0.0  ;;  %v1041_v1 = vmax.f32 %v785_v43, 0.0  ;;  %v1043_v43 = vmax.f32 %v787_v20, 0.0 }
  0xd7   :  { %v3286_v14 = vpop.f32.mrf.mxu1  ;;  %3381 = vmatmul.mubr.msk.bf16.gmra.mxu1 %vm1185_vm1, %v1171_v54  ;;  %v1624_v15 = vpop.f32.mrf.mxu0  ;;  %v912_v54 = vmax.f32 %v656_v31, 0.0  ;;  %v914_v31 = vmax.f32 %v658_v10, 0.0  ;;  %v665_v57 = vadd.f32 %v4617_v2, %v402_v5  ;;  %v269_v10 = vld [vmem:[%s5651_s0 + $0x7d8] sm:$0xff] }
  0xd8   :  { %2765 = vst [vmem:[%s5654_s4 + $0x430] sm:$0xff] %v3286_v14  ;;  %2635 = vst [vmem:[%s5654_s4 + $0x20] sm:$0xff] %v1624_v15  ;;  %3384 = vmatprep.mubr.msk.bf16.mxu1 %vm1185_vm1, %v1172_v59  ;;  %v136_v14 = vld [vmem:[%s5651_s0 + $0x3b0] sm:$0xff]  ;;  %v137_v15 = vld [vmem:[%s5651_s0 + $0x3b8] sm:$0xff]  ;;  %v786_v19 = vadd.f32 %v4617_v2, %v523_v62  ;;  %v1176_v23 = vpack.c.bf16 %v1041_v1, %v1040_v0  ;;  %v791_v0 = vadd.f32 %v4617_v2, %v528_v45 }
  0xd9   :  { %v2136_v25 = vpop.f32.mrf.mxu1  ;;  %v3159_v26 = vpop.f32.mrf.mxu0  ;;  %v1112_v11 = vpack.c.bf16 %v913_v55, %v912_v54  ;;  %v399_v33 = vmul.f32 %v4649_v24, %v136_v14  ;;  %v400_v35 = vmul.f32 %v4649_v24, %v137_v15  ;;  %v1113_v52 = vpack.c.bf16 %v915_v32, %v914_v31  ;;  %v142_v1 = vld [vmem:[%s5651_s0 + $0x3e0] sm:$0xff] }
  0xda   :  { %2763 = vst [vmem:[%s5654_s4 + $0x420] sm:$0xff] %v2136_v25  ;;  %2638 = vst [vmem:[%s5654_s4 + $0x38] sm:$0xff] %v3159_v26  ;;  %v788_v25 = vadd.f32 %v4617_v2, %v525_v3  ;;  %v789_v26 = vadd.f32 %v4617_v2, %v526_v6  ;;  %v1042_v42 = vmax.f32 %v786_v19, 0.0  ;;  %v143_v3 = vld [vmem:[%s5651_s0 + $0x3e8] sm:$0xff]  ;;  %v921_v19 = vmax.f32 %v665_v57, 0.0 }
  0xdb   :  { %v3287_v36 = vpop.f32.mrf.mxu1  ;;  %v1627_v37 = vpop.f32.mrf.mxu0  ;;  %v662_v53 = vadd.f32 %v4617_v2, %v399_v33  ;;  %v663_v54 = vadd.f32 %v4617_v2, %v400_v35  ;;  %v405_v20 = vmul.f32 %v4649_v24, %v142_v1  ;;  %v406_v21 = vmul.f32 %v4649_v24, %v143_v3 }
  0xdc   :  { %2766 = vst [vmem:[%s5654_s4 + $0x438] sm:$0xff] %v3287_v36  ;;  %2636 = vst [vmem:[%s5654_s4 + $0x28] sm:$0xff] %v1627_v37  ;;  %v266_v36 = vld [vmem:[%s5651_s0 + $0x7c0] sm:$0xff]  ;;  %v267_v37 = vld [vmem:[%s5651_s0 + $0x7c8] sm:$0xff]  ;;  %v1177_v62 = vpack.c.bf16 %v1043_v43, %v1042_v42  ;;  %v532_v28 = vmul.f32 %v4649_v24, %v269_v10 }
  0xdd   :  { %v2139_v46 = vpop.f32.mrf.mxu1  ;;  %v3162_v47 = vpop.f32.mrf.mxu0  ;;  %3257 = vmatmul.mubr.msk.bf16.gmra.mxu0 %vm1185_vm1, %v1109_v27  ;;  %v264_v27 = vld [vmem:[%s5651_s0 + $0x7b0] sm:$0xff]  ;;  %v529_v48 = vmul.f32 %v4649_v24, %v266_v36  ;;  %v530_v49 = vmul.f32 %v4649_v24, %v267_v37  ;;  %v919_v13 = vmax.f32 %v663_v54, 0.0  ;;  %v668_v4 = vadd.f32 %v4617_v2, %v405_v20 }
  0xde   :  { %2764 = vst [vmem:[%s5654_s4 + $0x428] sm:$0xff] %v2139_v46  ;;  %2641 = vst [vmem:[%s5654_s4 + $0x50] sm:$0xff] %v3162_v47  ;;  %3260 = vmatprep.mubr.msk.bf16.mxu0 %vm1185_vm1, %v1110_v30  ;;  %v527_v44 = vmul.f32 %v4649_v24, %v264_v27  ;;  %v1044_v46 = vmax.f32 %v788_v25, 0.0  ;;  %v1045_v47 = vmax.f32 %v789_v26, 0.0  ;;  %v1047_v26 = vmax.f32 %v791_v0, 0.0 }
  0xdf   :  { %v3290_v58 = vpop.f32.mrf.mxu1  ;;  %3385 = vmatmul.mubr.msk.bf16.gmra.mxu1 %vm1185_vm1, %v1173_v38  ;;  %v1640_v59 = vpop.f32.mrf.mxu0  ;;  %v916_v38 = vmax.f32 %v660_v12, 0.0  ;;  %v918_v12 = vmax.f32 %v662_v53, 0.0  ;;  %v669_v5 = vadd.f32 %v4617_v2, %v406_v21 }
  0xe0   :  { %2769 = vst [vmem:[%s5654_s4 + $0x450] sm:$0xff] %v3290_v58  ;;  %2639 = vst [vmem:[%s5654_s4 + $0x40] sm:$0xff] %v1640_v59  ;;  %3388 = vmatprep.mubr.msk.bf16.mxu1 %vm1185_vm1, %v1174_v41  ;;  %v140_v58 = vld [vmem:[%s5651_s0 + $0x3d0] sm:$0xff]  ;;  %v141_v59 = vld [vmem:[%s5651_s0 + $0x3d8] sm:$0xff]  ;;  %v790_v63 = vadd.f32 %v4617_v2, %v527_v44  ;;  %v1178_v6 = vpack.c.bf16 %v1045_v47, %v1044_v46  ;;  %v795_v46 = vadd.f32 %v4617_v2, %v532_v28 }
  0xe1   :  { %v2152_v7 = vpop.f32.mrf.mxu1  ;;  %v3163_v8 = vpop.f32.mrf.mxu0  ;;  %v1114_v55 = vpack.c.bf16 %v917_v39, %v916_v38  ;;  %v403_v14 = vmul.f32 %v4649_v24, %v140_v58  ;;  %v404_v15 = vmul.f32 %v4649_v24, %v141_v59  ;;  %v1115_v36 = vpack.c.bf16 %v919_v13, %v918_v12 }
  0xe2   :  { %2767 = vst [vmem:[%s5654_s4 + $0x440] sm:$0xff] %v2152_v7  ;;  %2642 = vst [vmem:[%s5654_s4 + $0x58] sm:$0xff] %v3163_v8  ;;  %v792_v7 = vadd.f32 %v4617_v2, %v529_v48  ;;  %v793_v8 = vadd.f32 %v4617_v2, %v530_v49  ;;  %v1046_v25 = vmax.f32 %v790_v63, 0.0  ;;  %v924_v58 = vmax.f32 %v668_v4, 0.0 }
  0xe3   :  { %v3291_v16 = vpop.f32.mrf.mxu1  ;;  %v1643_v17 = vpop.f32.mrf.mxu0  ;;  %v666_v37 = vadd.f32 %v4617_v2, %v403_v14  ;;  %v667_v38 = vadd.f32 %v4617_v2, %v404_v15  ;;  %v925_v59 = vmax.f32 %v669_v5, 0.0  ;;  %v1051_v63 = vmax.f32 %v795_v46, 0.0 }
  0xe4   :  { %2770 = vst [vmem:[%s5654_s4 + $0x458] sm:$0xff] %v3291_v16  ;;  %2640 = vst [vmem:[%s5654_s4 + $0x48] sm:$0xff] %v1643_v17  ;;  %v270_v16 = vld [vmem:[%s5651_s0 + $0x7e0] sm:$0xff]  ;;  %v271_v17 = vld [vmem:[%s5651_s0 + $0x7e8] sm:$0xff]  ;;  %v1179_v44 = vpack.c.bf16 %v1047_v26, %v1046_v25 }
  0xe5   :  { %v2155_v29 = vpop.f32.mrf.mxu1  ;;  %v3166_v30 = vpop.f32.mrf.mxu0  ;;  %3261 = vmatmul.mubr.msk.bf16.gmra.mxu0 %vm1185_vm1, %v1111_v9  ;;  %v268_v9 = vld [vmem:[%s5651_s0 + $0x7d0] sm:$0xff]  ;;  %v533_v31 = vmul.f32 %v4649_v24, %v270_v16  ;;  %v534_v32 = vmul.f32 %v4649_v24, %v271_v17  ;;  %v922_v54 = vmax.f32 %v666_v37, 0.0 }
  0xe6   :  { %2768 = vst [vmem:[%s5654_s4 + $0x448] sm:$0xff] %v2155_v29  ;;  %2645 = vst [vmem:[%s5654_s4 + $0x70] sm:$0xff] %v3166_v30  ;;  %3264 = vmatprep.mubr.msk.bf16.mxu0 %vm1185_vm1, %v1112_v11  ;;  %v531_v27 = vmul.f32 %v4649_v24, %v268_v9  ;;  %v1048_v29 = vmax.f32 %v792_v7, 0.0  ;;  %v1049_v30 = vmax.f32 %v793_v8, 0.0 }
  0xe7   :  { %v3294_v40 = vpop.f32.mrf.mxu1  ;;  %3389 = vmatmul.mubr.msk.bf16.gmra.mxu1 %vm1185_vm1, %v1175_v18  ;;  %v1656_v41 = vpop.f32.mrf.mxu0  ;;  %v920_v18 = vmax.f32 %v664_v56, 0.0  ;;  %v796_v48 = vadd.f32 %v4617_v2, %v533_v31  ;;  %v797_v49 = vadd.f32 %v4617_v2, %v534_v32 }
  0xe8   :  { %2773 = vst [vmem:[%s5654_s4 + $0x470] sm:$0xff] %v3294_v40  ;;  %2643 = vst [vmem:[%s5654_s4 + $0x60] sm:$0xff] %v1656_v41  ;;  %3392 = vmatprep.mubr.msk.bf16.mxu1 %vm1185_vm1, %v1176_v23  ;;  %v144_v40 = vld [vmem:[%s5651_s0 + $0x3f0] sm:$0xff]  ;;  %v145_v41 = vld [vmem:[%s5651_s0 + $0x3f8] sm:$0xff]  ;;  %v794_v45 = vadd.f32 %v4617_v2, %v531_v27  ;;  %v1180_v47 = vpack.c.bf16 %v1049_v30, %v1048_v29 }
  0xe9   :  { %v2168_v50 = vpop.f32.mrf.mxu1  ;;  %v3167_v34 = vpop.f32.mrf.mxu0  ;;  %v1116_v39 = vpack.c.bf16 %v921_v19, %v920_v18  ;;  %v407_v56 = vmul.f32 %v4649_v24, %v144_v40  ;;  %v408_v57 = vmul.f32 %v4649_v24, %v145_v41  ;;  %v1052_v3 = vmax.f32 %v796_v48, 0.0 }
  0xea   :  { %2771 = vst [vmem:[%s5654_s4 + $0x460] sm:$0xff] %v2168_v50  ;;  %2646 = vst [vmem:[%s5654_s4 + $0x78] sm:$0xff] %v3167_v34  ;;  %v272_v50 = vld [vmem:[%s5651_s0 + $0x7f0] sm:$0xff]  ;;  %v273_v34 = vld [vmem:[%s5651_s0 + $0x7f8] sm:$0xff] }
  0xeb   :  { %v3295_v60 = vpop.f32.mrf.mxu1  ;;  %v1659_v61 = vpop.f32.mrf.mxu0  ;;  %v535_v0 = vmul.f32 %v4649_v24, %v272_v50  ;;  %v536_v1 = vmul.f32 %v4649_v24, %v273_v34  ;;  %v670_v10 = vadd.f32 %v4617_v2, %v407_v56  ;;  %v1118_v24 = vpack.c.bf16 %v925_v59, %v924_v58 }
  0xec   :  { %2774 = vst [vmem:[%s5654_s4 + $0x478] sm:$0xff] %v3295_v60  ;;  %2644 = vst [vmem:[%s5654_s4 + $0x68] sm:$0xff] %v1659_v61 }
  0xed   :  { %v2171_v51 = vpop.f32.mrf.mxu1  ;;  %v3170_v11 = vpop.f32.mrf.mxu0  ;;  %3265 = vmatmul.mubr.msk.bf16.gmra.mxu0 %vm1185_vm1, %v1113_v52  ;;  %v798_v14 = vadd.f32 %v4617_v2, %v535_v0  ;;  %v799_v15 = vadd.f32 %v4617_v2, %v536_v1  ;;  %v926_v19 = vmax.f32 %v670_v10, 0.0 }
  0xee   :  { %2772 = vst [vmem:[%s5654_s4 + $0x468] sm:$0xff] %v2171_v51  ;;  %2649 = vst [vmem:[%s5654_s4 + $0x90] sm:$0xff] %v3170_v11  ;;  %3268 = vmatprep.mubr.msk.bf16.mxu0 %vm1185_vm1, %v1114_v55  ;;  %v923_v55 = vmax.f32 %v667_v38, 0.0  ;;  %v671_v51 = vadd.f32 %v4617_v2, %v408_v57 }
  0xef   :  { %v3298_v22 = vpop.f32.mrf.mxu1  ;;  %3393 = vmatmul.mubr.msk.bf16.gmra.mxu1 %vm1185_vm1, %v1177_v62  ;;  %v1672_v23 = vpop.f32.mrf.mxu0  ;;  %v1050_v62 = vmax.f32 %v794_v45, 0.0 }
  0xf0   :  { %2777 = vst [vmem:[%s5654_s4 + $0x490] sm:$0xff] %v3298_v22  ;;  %2647 = vst [vmem:[%s5654_s4 + $0x80] sm:$0xff] %v1672_v23  ;;  %3396 = vmatprep.mubr.msk.bf16.mxu1 %vm1185_vm1, %v1178_v6  ;;  %v1053_v6 = vmax.f32 %v797_v49, 0.0  ;;  %v1117_v9 = vpack.c.bf16 %v923_v55, %v922_v54  ;;  %v927_v20 = vmax.f32 %v671_v51, 0.0  ;;  %v1054_v22 = vmax.f32 %v798_v14, 0.0 }
  0xf1   :  { %v2184_v33 = vpop.f32.mrf.mxu1  ;;  %v3171_v35 = vpop.f32.mrf.mxu0  ;;  %v1181_v13 = vpack.c.bf16 %v1051_v63, %v1050_v62  ;;  %v1055_v23 = vmax.f32 %v799_v15, 0.0 }
  0xf2   :  { %2775 = vst [vmem:[%s5654_s4 + $0x480] sm:$0xff] %v2184_v33  ;;  %2650 = vst [vmem:[%s5654_s4 + $0x98] sm:$0xff] %v3171_v35  ;;  %v1182_v16 = vpack.c.bf16 %v1053_v6, %v1052_v3  ;;  %v1119_v27 = vpack.c.bf16 %v927_v20, %v926_v19 }
  0xf3   :  { %v3299_v42 = vpop.f32.mrf.mxu1  ;;  %v1675_v43 = vpop.f32.mrf.mxu0  ;;  %v1183_v30 = vpack.c.bf16 %v1055_v23, %v1054_v22 }
  0xf4   :  { %2778 = vst [vmem:[%s5654_s4 + $0x498] sm:$0xff] %v3299_v42  ;;  %2648 = vst [vmem:[%s5654_s4 + $0x88] sm:$0xff] %v1675_v43 }
  0xf5   :  { %v2187_v52 = vpop.f32.mrf.mxu1  ;;  %v3174_v53 = vpop.f32.mrf.mxu0  ;;  %3269 = vmatmul.mubr.msk.bf16.gmra.mxu0 %vm1185_vm1, %v1115_v36 }
  0xf6   :  { %2776 = vst [vmem:[%s5654_s4 + $0x488] sm:$0xff] %v2187_v52  ;;  %2653 = vst [vmem:[%s5654_s4 + $0xb0] sm:$0xff] %v3174_v53  ;;  %3272 = vmatprep.mubr.msk.bf16.mxu0 %vm1185_vm1, %v1116_v39 }
  0xf7   :  { %v3302_v60 = vpop.f32.mrf.mxu1  ;;  %3397 = vmatmul.mubr.msk.bf16.gmra.mxu1 %vm1185_vm1, %v1179_v44  ;;  %v1688_v61 = vpop.f32.mrf.mxu0 }
  0xf8   :  { %2781 = vst [vmem:[%s5654_s4 + $0x4b0] sm:$0xff] %v3302_v60  ;;  %2651 = vst [vmem:[%s5654_s4 + $0xa0] sm:$0xff] %v1688_v61  ;;  %3400 = vmatprep.mubr.msk.bf16.mxu1 %vm1185_vm1, %v1180_v47 }
  0xf9   :  { %v2200_v7 = vpop.f32.mrf.mxu1  ;;  %v3175_v8 = vpop.f32.mrf.mxu0 }
  0xfa   :  { %2779 = vst [vmem:[%s5654_s4 + $0x4a0] sm:$0xff] %v2200_v7  ;;  %2654 = vst [vmem:[%s5654_s4 + $0xb8] sm:$0xff] %v3175_v8 }
  0xfb   :  { %v3303_v11 = vpop.f32.mrf.mxu1  ;;  %v1691_v12 = vpop.f32.mrf.mxu0 }
  0xfc   :  { %2782 = vst [vmem:[%s5654_s4 + $0x4b8] sm:$0xff] %v3303_v11  ;;  %2652 = vst [vmem:[%s5654_s4 + $0xa8] sm:$0xff] %v1691_v12 }
  0xfd   :  { %v2203_v17 = vpop.f32.mrf.mxu1  ;;  %v3178_v18 = vpop.f32.mrf.mxu0  ;;  %3273 = vmatmul.mubr.msk.bf16.gmra.mxu0 %vm1185_vm1, %v1117_v9 }
  0xfe   :  { %2780 = vst [vmem:[%s5654_s4 + $0x4a8] sm:$0xff] %v2203_v17  ;;  %2657 = vst [vmem:[%s5654_s4 + $0xd0] sm:$0xff] %v3178_v18  ;;  %3276 = vmatprep.mubr.msk.bf16.mxu0 %vm1185_vm1, %v1118_v24 }
  0xff   :  { %v3306_v2 = vpop.f32.mrf.mxu1  ;;  %3401 = vmatmul.mubr.msk.bf16.gmra.mxu1 %vm1185_vm1, %v1181_v13  ;;  %v1704_v21 = vpop.f32.mrf.mxu0 }
 0x100   :  { %2785 = vst [vmem:[%s5654_s4 + $0x4d0] sm:$0xff] %v3306_v2  ;;  %2655 = vst [vmem:[%s5654_s4 + $0xc0] sm:$0xff] %v1704_v21  ;;  %3404 = vmatprep.mubr.msk.bf16.mxu1 %vm1185_vm1, %v1182_v16 }
 0x101   :  { %v2216_v25 = vpop.f32.mrf.mxu1  ;;  %v3179_v26 = vpop.f32.mrf.mxu0 }
 0x102   :  { %2783 = vst [vmem:[%s5654_s4 + $0x4c0] sm:$0xff] %v2216_v25  ;;  %2658 = vst [vmem:[%s5654_s4 + $0xd8] sm:$0xff] %v3179_v26 }
 0x103   :  { %v3307_v28 = vpop.f32.mrf.mxu1  ;;  %v1707_v29 = vpop.f32.mrf.mxu0 }
 0x104   :  { %2786 = vst [vmem:[%s5654_s4 + $0x4d8] sm:$0xff] %v3307_v28  ;;  %2656 = vst [vmem:[%s5654_s4 + $0xc8] sm:$0xff] %v1707_v29 }
 0x105   :  { %v2219_v31 = vpop.f32.mrf.mxu1  ;;  %v3182_v32 = vpop.f32.mrf.mxu0  ;;  %3277 = vmatmul.mubr.msk.bf16.gmra.mxu0 %vm1185_vm1, %v1119_v27 }
 0x106   :  { %2784 = vst [vmem:[%s5654_s4 + $0x4c8] sm:$0xff] %v2219_v31  ;;  %2661 = vst [vmem:[%s5654_s4 + $0xf0] sm:$0xff] %v3182_v32 }
 0x107   :  { %v3310_v33 = vpop.f32.mrf.mxu1  ;;  %3405 = vmatmul.mubr.msk.bf16.gmra.mxu1 %vm1185_vm1, %v1183_v30  ;;  %v1720_v35 = vpop.f32.mrf.mxu0 }
 0x108   :  { %2789 = vst [vmem:[%s5654_s4 + $0x4f0] sm:$0xff] %v3310_v33  ;;  %2659 = vst [vmem:[%s5654_s4 + $0xe0] sm:$0xff] %v1720_v35 }
 0x109   :  { %v2232_v36 = vpop.f32.mrf.mxu1  ;;  %v3183_v37 = vpop.f32.mrf.mxu0 }
 0x10a   :  { %2787 = vst [vmem:[%s5654_s4 + $0x4e0] sm:$0xff] %v2232_v36  ;;  %2662 = vst [vmem:[%s5654_s4 + $0xf8] sm:$0xff] %v3183_v37 }
 0x10b   :  { %v3311_v38 = vpop.f32.mrf.mxu1  ;;  %v1723_v39 = vpop.f32.mrf.mxu0 }
 0x10c   :  { %2790 = vst [vmem:[%s5654_s4 + $0x4f8] sm:$0xff] %v3311_v38  ;;  %2660 = vst [vmem:[%s5654_s4 + $0xe8] sm:$0xff] %v1723_v39 }
 0x10d   :  { %v2235_v4 = vpop.f32.mrf.mxu1  ;;  %v3186_v5 = vpop.f32.mrf.mxu0 }
 0x10e   :  { %2788 = vst [vmem:[%s5654_s4 + $0x4e8] sm:$0xff] %v2235_v4  ;;  %2665 = vst [vmem:[%s5654_s4 + $0x110] sm:$0xff] %v3186_v5 }
 0x10f   :  { %v3314_v40 = vpop.f32.mrf.mxu1  ;;  %v1736_v41 = vpop.f32.mrf.mxu0 }
 0x110   :  { %2793 = vst [vmem:[%s5654_s4 + $0x510] sm:$0xff] %v3314_v40  ;;  %2663 = vst [vmem:[%s5654_s4 + $0x100] sm:$0xff] %v1736_v41 }
 0x111   :  { %v2248_v42 = vpop.f32.mrf.mxu1  ;;  %v3187_v43 = vpop.f32.mrf.mxu0 }
 0x112   :  { %2791 = vst [vmem:[%s5654_s4 + $0x500] sm:$0xff] %v2248_v42  ;;  %2666 = vst [vmem:[%s5654_s4 + $0x118] sm:$0xff] %v3187_v43 }
 0x113   :  { %v3315_v44 = vpop.f32.mrf.mxu1  ;;  %v1739_v45 = vpop.f32.mrf.mxu0 }
 0x114   :  { %2794 = vst [vmem:[%s5654_s4 + $0x518] sm:$0xff] %v3315_v44  ;;  %2664 = vst [vmem:[%s5654_s4 + $0x108] sm:$0xff] %v1739_v45 }
 0x115   :  { %v2251_v46 = vpop.f32.mrf.mxu1  ;;  %v3190_v47 = vpop.f32.mrf.mxu0 }
 0x116   :  { %2792 = vst [vmem:[%s5654_s4 + $0x508] sm:$0xff] %v2251_v46  ;;  %2669 = vst [vmem:[%s5654_s4 + $0x130] sm:$0xff] %v3190_v47 }
 0x117   :  { %v3318_v48 = vpop.f32.mrf.mxu1  ;;  %v1752_v49 = vpop.f32.mrf.mxu0 }
 0x118   :  { %2797 = vst [vmem:[%s5654_s4 + $0x530] sm:$0xff] %v3318_v48  ;;  %2667 = vst [vmem:[%s5654_s4 + $0x120] sm:$0xff] %v1752_v49 }
 0x119   :  { %v2264_v50 = vpop.f32.mrf.mxu1  ;;  %v3191_v34 = vpop.f32.mrf.mxu0 }
 0x11a   :  { %2795 = vst [vmem:[%s5654_s4 + $0x520] sm:$0xff] %v2264_v50  ;;  %2670 = vst [vmem:[%s5654_s4 + $0x138] sm:$0xff] %v3191_v34 }
 0x11b   :  { %v3319_v52 = vpop.f32.mrf.mxu1  ;;  %v1755_v53 = vpop.f32.mrf.mxu0 }
 0x11c   :  { %2798 = vst [vmem:[%s5654_s4 + $0x538] sm:$0xff] %v3319_v52  ;;  %2668 = vst [vmem:[%s5654_s4 + $0x128] sm:$0xff] %v1755_v53 }
 0x11d   :  { %v2267_v54 = vpop.f32.mrf.mxu1  ;;  %v3194_v55 = vpop.f32.mrf.mxu0 }
 0x11e   :  { %2796 = vst [vmem:[%s5654_s4 + $0x528] sm:$0xff] %v2267_v54  ;;  %2673 = vst [vmem:[%s5654_s4 + $0x150] sm:$0xff] %v3194_v55 }
 0x11f   :  { %v3322_v56 = vpop.f32.mrf.mxu1  ;;  %v1768_v57 = vpop.f32.mrf.mxu0 }
 0x120   :  { %2801 = vst [vmem:[%s5654_s4 + $0x550] sm:$0xff] %v3322_v56  ;;  %2671 = vst [vmem:[%s5654_s4 + $0x140] sm:$0xff] %v1768_v57 }
 0x121   :  { %v2280_v58 = vpop.f32.mrf.mxu1  ;;  %v3195_v59 = vpop.f32.mrf.mxu0 }
 0x122   :  { %2799 = vst [vmem:[%s5654_s4 + $0x540] sm:$0xff] %v2280_v58  ;;  %2674 = vst [vmem:[%s5654_s4 + $0x158] sm:$0xff] %v3195_v59 }
 0x123   :  { %v3323_v60 = vpop.f32.mrf.mxu1  ;;  %v1771_v61 = vpop.f32.mrf.mxu0 }
 0x124   :  { %2802 = vst [vmem:[%s5654_s4 + $0x558] sm:$0xff] %v3323_v60  ;;  %2672 = vst [vmem:[%s5654_s4 + $0x148] sm:$0xff] %v1771_v61 }
 0x125   :  { %v2283_v62 = vpop.f32.mrf.mxu1  ;;  %v3198_v63 = vpop.f32.mrf.mxu0 }
 0x126   :  { %2800 = vst [vmem:[%s5654_s4 + $0x548] sm:$0xff] %v2283_v62  ;;  %2677 = vst [vmem:[%s5654_s4 + $0x170] sm:$0xff] %v3198_v63 }
 0x127   :  { %v3326_v0 = vpop.f32.mrf.mxu1  ;;  %v1784_v1 = vpop.f32.mrf.mxu0 }
 0x128   :  { %2805 = vst [vmem:[%s5654_s4 + $0x570] sm:$0xff] %v3326_v0  ;;  %2675 = vst [vmem:[%s5654_s4 + $0x160] sm:$0xff] %v1784_v1 }
 0x129   :  { %v2296_v3 = vpop.f32.mrf.mxu1  ;;  %v3199_v6 = vpop.f32.mrf.mxu0 }
 0x12a   :  { %2803 = vst [vmem:[%s5654_s4 + $0x560] sm:$0xff] %v2296_v3  ;;  %2678 = vst [vmem:[%s5654_s4 + $0x178] sm:$0xff] %v3199_v6 }
 0x12b   :  { %v3327_v7 = vpop.f32.mrf.mxu1  ;;  %v1787_v8 = vpop.f32.mrf.mxu0 }
 0x12c   :  { %2806 = vst [vmem:[%s5654_s4 + $0x578] sm:$0xff] %v3327_v7  ;;  %2676 = vst [vmem:[%s5654_s4 + $0x168] sm:$0xff] %v1787_v8 }
 0x12d   :  { %v2299_v9 = vpop.f32.mrf.mxu1  ;;  %v3202_v10 = vpop.f32.mrf.mxu0 }
 0x12e   :  { %2804 = vst [vmem:[%s5654_s4 + $0x568] sm:$0xff] %v2299_v9  ;;  %2681 = vst [vmem:[%s5654_s4 + $0x190] sm:$0xff] %v3202_v10 }
 0x12f   :  { %v3330_v51 = vpop.f32.mrf.mxu1  ;;  %v1800_v24 = vpop.f32.mrf.mxu0 }
 0x130   :  { %2809 = vst [vmem:[%s5654_s4 + $0x590] sm:$0xff] %v3330_v51  ;;  %2679 = vst [vmem:[%s5654_s4 + $0x180] sm:$0xff] %v1800_v24 }
 0x131   :  { %v2312_v11 = vpop.f32.mrf.mxu1  ;;  %v3203_v12 = vpop.f32.mrf.mxu0 }
 0x132   :  { %2807 = vst [vmem:[%s5654_s4 + $0x580] sm:$0xff] %v2312_v11  ;;  %2682 = vst [vmem:[%s5654_s4 + $0x198] sm:$0xff] %v3203_v12 }
 0x133   :  { %v3331_v13 = vpop.f32.mrf.mxu1  ;;  %v1803_v14 = vpop.f32.mrf.mxu0 }
 0x134   :  { %2810 = vst [vmem:[%s5654_s4 + $0x598] sm:$0xff] %v3331_v13  ;;  %2680 = vst [vmem:[%s5654_s4 + $0x188] sm:$0xff] %v1803_v14 }
 0x135   :  { %v2315_v15 = vpop.f32.mrf.mxu1  ;;  %v3206_v16 = vpop.f32.mrf.mxu0 }
 0x136   :  { %2808 = vst [vmem:[%s5654_s4 + $0x588] sm:$0xff] %v2315_v15  ;;  %2685 = vst [vmem:[%s5654_s4 + $0x1b0] sm:$0xff] %v3206_v16 }
 0x137   :  { %v3334_v17 = vpop.f32.mrf.mxu1  ;;  %v1816_v18 = vpop.f32.mrf.mxu0 }
 0x138   :  { %2813 = vst [vmem:[%s5654_s4 + $0x5b0] sm:$0xff] %v3334_v17  ;;  %2683 = vst [vmem:[%s5654_s4 + $0x1a0] sm:$0xff] %v1816_v18 }
 0x139   :  { %v2328_v19 = vpop.f32.mrf.mxu1  ;;  %v3207_v20 = vpop.f32.mrf.mxu0 }
 0x13a   :  { %2811 = vst [vmem:[%s5654_s4 + $0x5a0] sm:$0xff] %v2328_v19  ;;  %2686 = vst [vmem:[%s5654_s4 + $0x1b8] sm:$0xff] %v3207_v20 }
 0x13b   :  { %v3335_v2 = vpop.f32.mrf.mxu1  ;;  %v1819_v21 = vpop.f32.mrf.mxu0 }
 0x13c   :  { %2814 = vst [vmem:[%s5654_s4 + $0x5b8] sm:$0xff] %v3335_v2  ;;  %2684 = vst [vmem:[%s5654_s4 + $0x1a8] sm:$0xff] %v1819_v21 }
 0x13d   :  { %v2331_v22 = vpop.f32.mrf.mxu1  ;;  %v3210_v23 = vpop.f32.mrf.mxu0 }
 0x13e   :  { %2812 = vst [vmem:[%s5654_s4 + $0x5a8] sm:$0xff] %v2331_v22  ;;  %2689 = vst [vmem:[%s5654_s4 + $0x1d0] sm:$0xff] %v3210_v23 }
 0x13f   :  { %v3338_v25 = vpop.f32.mrf.mxu1  ;;  %v1832_v26 = vpop.f32.mrf.mxu0 }
 0x140   :  { %2817 = vst [vmem:[%s5654_s4 + $0x5d0] sm:$0xff] %v3338_v25  ;;  %2687 = vst [vmem:[%s5654_s4 + $0x1c0] sm:$0xff] %v1832_v26 }
 0x141   :  { %v2344_v27 = vpop.f32.mrf.mxu1  ;;  %v3211_v28 = vpop.f32.mrf.mxu0 }
 0x142   :  { %2815 = vst [vmem:[%s5654_s4 + $0x5c0] sm:$0xff] %v2344_v27  ;;  %2690 = vst [vmem:[%s5654_s4 + $0x1d8] sm:$0xff] %v3211_v28 }
 0x143   :  { %v3339_v29 = vpop.f32.mrf.mxu1  ;;  %v1835_v30 = vpop.f32.mrf.mxu0 }
 0x144   :  { %2818 = vst [vmem:[%s5654_s4 + $0x5d8] sm:$0xff] %v3339_v29  ;;  %2688 = vst [vmem:[%s5654_s4 + $0x1c8] sm:$0xff] %v1835_v30 }
 0x145   :  { %v2347_v31 = vpop.f32.mrf.mxu1  ;;  %v3214_v32 = vpop.f32.mrf.mxu0 }
 0x146   :  { %2816 = vst [vmem:[%s5654_s4 + $0x5c8] sm:$0xff] %v2347_v31  ;;  %2693 = vst [vmem:[%s5654_s4 + $0x1f0] sm:$0xff] %v3214_v32 }
 0x147   :  { %v3342_v33 = vpop.f32.mrf.mxu1  ;;  %v1848_v35 = vpop.f32.mrf.mxu0 }
 0x148   :  { %2821 = vst [vmem:[%s5654_s4 + $0x5f0] sm:$0xff] %v3342_v33  ;;  %2691 = vst [vmem:[%s5654_s4 + $0x1e0] sm:$0xff] %v1848_v35 }
 0x149   :  { %v2360_v36 = vpop.f32.mrf.mxu1  ;;  %v3215_v37 = vpop.f32.mrf.mxu0 }
 0x14a   :  { %2819 = vst [vmem:[%s5654_s4 + $0x5e0] sm:$0xff] %v2360_v36  ;;  %2694 = vst [vmem:[%s5654_s4 + $0x1f8] sm:$0xff] %v3215_v37 }
 0x14b   :  { %v3343_v38 = vpop.f32.mrf.mxu1  ;;  %v1851_v39 = vpop.f32.mrf.mxu0 }
 0x14c   :  { %2822 = vst [vmem:[%s5654_s4 + $0x5f8] sm:$0xff] %v3343_v38  ;;  %2692 = vst [vmem:[%s5654_s4 + $0x1e8] sm:$0xff] %v1851_v39 }
 0x14d   :  { %v2363_v4 = vpop.f32.mrf.mxu1  ;;  %v3218_v5 = vpop.f32.mrf.mxu0 }
 0x14e   :  { %2820 = vst [vmem:[%s5654_s4 + $0x5e8] sm:$0xff] %v2363_v4  ;;  %2697 = vst [vmem:[%s5654_s4 + $0x210] sm:$0xff] %v3218_v5 }
 0x14f   :  { %v3346_v40 = vpop.f32.mrf.mxu1  ;;  %v1864_v41 = vpop.f32.mrf.mxu0 }
 0x150   :  { %2825 = vst [vmem:[%s5654_s4 + $0x610] sm:$0xff] %v3346_v40  ;;  %2695 = vst [vmem:[%s5654_s4 + $0x200] sm:$0xff] %v1864_v41 }
 0x151   :  { %v2376_v42 = vpop.f32.mrf.mxu1  ;;  %v3219_v43 = vpop.f32.mrf.mxu0 }
 0x152   :  { %2823 = vst [vmem:[%s5654_s4 + $0x600] sm:$0xff] %v2376_v42  ;;  %2698 = vst [vmem:[%s5654_s4 + $0x218] sm:$0xff] %v3219_v43 }
 0x153   :  { %v3347_v44 = vpop.f32.mrf.mxu1  ;;  %v1867_v45 = vpop.f32.mrf.mxu0 }
 0x154   :  { %2826 = vst [vmem:[%s5654_s4 + $0x618] sm:$0xff] %v3347_v44  ;;  %2696 = vst [vmem:[%s5654_s4 + $0x208] sm:$0xff] %v1867_v45 }
 0x155   :  { %v2379_v46 = vpop.f32.mrf.mxu1  ;;  %v3222_v47 = vpop.f32.mrf.mxu0 }
 0x156   :  { %2824 = vst [vmem:[%s5654_s4 + $0x608] sm:$0xff] %v2379_v46  ;;  %2701 = vst [vmem:[%s5654_s4 + $0x230] sm:$0xff] %v3222_v47 }
 0x157   :  { %v3350_v48 = vpop.f32.mrf.mxu1  ;;  %v1880_v49 = vpop.f32.mrf.mxu0 }
 0x158   :  { %2829 = vst [vmem:[%s5654_s4 + $0x630] sm:$0xff] %v3350_v48  ;;  %2699 = vst [vmem:[%s5654_s4 + $0x220] sm:$0xff] %v1880_v49 }
 0x159   :  { %v2392_v50 = vpop.f32.mrf.mxu1  ;;  %v3223_v34 = vpop.f32.mrf.mxu0 }
 0x15a   :  { %2827 = vst [vmem:[%s5654_s4 + $0x620] sm:$0xff] %v2392_v50  ;;  %2702 = vst [vmem:[%s5654_s4 + $0x238] sm:$0xff] %v3223_v34 }
 0x15b   :  { %v3351_v52 = vpop.f32.mrf.mxu1  ;;  %v1883_v53 = vpop.f32.mrf.mxu0 }
 0x15c   :  { %2830 = vst [vmem:[%s5654_s4 + $0x638] sm:$0xff] %v3351_v52  ;;  %2700 = vst [vmem:[%s5654_s4 + $0x228] sm:$0xff] %v1883_v53 }
 0x15d   :  { %v2395_v54 = vpop.f32.mrf.mxu1  ;;  %v3226_v55 = vpop.f32.mrf.mxu0 }
 0x15e   :  { %2828 = vst [vmem:[%s5654_s4 + $0x628] sm:$0xff] %v2395_v54  ;;  %2705 = vst [vmem:[%s5654_s4 + $0x250] sm:$0xff] %v3226_v55 }
 0x15f   :  { %v3354_v56 = vpop.f32.mrf.mxu1  ;;  %v1896_v57 = vpop.f32.mrf.mxu0 }
 0x160   :  { %2833 = vst [vmem:[%s5654_s4 + $0x650] sm:$0xff] %v3354_v56  ;;  %2703 = vst [vmem:[%s5654_s4 + $0x240] sm:$0xff] %v1896_v57 }
 0x161   :  { %v2408_v58 = vpop.f32.mrf.mxu1  ;;  %v3227_v59 = vpop.f32.mrf.mxu0 }
 0x162   :  { %2831 = vst [vmem:[%s5654_s4 + $0x640] sm:$0xff] %v2408_v58  ;;  %2706 = vst [vmem:[%s5654_s4 + $0x258] sm:$0xff] %v3227_v59 }
 0x163   :  { %v3355_v60 = vpop.f32.mrf.mxu1  ;;  %v1899_v61 = vpop.f32.mrf.mxu0 }
 0x164   :  { %2834 = vst [vmem:[%s5654_s4 + $0x658] sm:$0xff] %v3355_v60  ;;  %2704 = vst [vmem:[%s5654_s4 + $0x248] sm:$0xff] %v1899_v61 }
 0x165   :  { %v2411_v62 = vpop.f32.mrf.mxu1  ;;  %v3230_v63 = vpop.f32.mrf.mxu0 }
 0x166   :  { %2832 = vst [vmem:[%s5654_s4 + $0x648] sm:$0xff] %v2411_v62  ;;  %2709 = vst [vmem:[%s5654_s4 + $0x270] sm:$0xff] %v3230_v63 }
 0x167   :  { %v3358_v0 = vpop.f32.mrf.mxu1  ;;  %v1912_v1 = vpop.f32.mrf.mxu0 }
 0x168   :  { %2837 = vst [vmem:[%s5654_s4 + $0x670] sm:$0xff] %v3358_v0  ;;  %2707 = vst [vmem:[%s5654_s4 + $0x260] sm:$0xff] %v1912_v1 }
 0x169   :  { %v2424_v3 = vpop.f32.mrf.mxu1  ;;  %v3231_v6 = vpop.f32.mrf.mxu0 }
 0x16a   :  { %2835 = vst [vmem:[%s5654_s4 + $0x660] sm:$0xff] %v2424_v3  ;;  %2710 = vst [vmem:[%s5654_s4 + $0x278] sm:$0xff] %v3231_v6 }
 0x16b   :  { %v3359_v7 = vpop.f32.mrf.mxu1  ;;  %v1915_v8 = vpop.f32.mrf.mxu0 }
 0x16c   :  { %2838 = vst [vmem:[%s5654_s4 + $0x678] sm:$0xff] %v3359_v7  ;;  %2708 = vst [vmem:[%s5654_s4 + $0x268] sm:$0xff] %v1915_v8 }
 0x16d   :  { %v2427_v9 = vpop.f32.mrf.mxu1  ;;  %v3234_v10 = vpop.f32.mrf.mxu0 }
 0x16e   :  { %2836 = vst [vmem:[%s5654_s4 + $0x668] sm:$0xff] %v2427_v9  ;;  %2713 = vst [vmem:[%s5654_s4 + $0x290] sm:$0xff] %v3234_v10 }
 0x16f   :  { %v3362_v51 = vpop.f32.mrf.mxu1  ;;  %v1928_v24 = vpop.f32.mrf.mxu0 }
 0x170   :  { %2841 = vst [vmem:[%s5654_s4 + $0x690] sm:$0xff] %v3362_v51  ;;  %2711 = vst [vmem:[%s5654_s4 + $0x280] sm:$0xff] %v1928_v24 }
 0x171   :  { %v2440_v11 = vpop.f32.mrf.mxu1  ;;  %v3235_v12 = vpop.f32.mrf.mxu0 }
 0x172   :  { %2839 = vst [vmem:[%s5654_s4 + $0x680] sm:$0xff] %v2440_v11  ;;  %2714 = vst [vmem:[%s5654_s4 + $0x298] sm:$0xff] %v3235_v12 }
 0x173   :  { %v3363_v13 = vpop.f32.mrf.mxu1  ;;  %v1931_v14 = vpop.f32.mrf.mxu0 }
 0x174   :  { %2842 = vst [vmem:[%s5654_s4 + $0x698] sm:$0xff] %v3363_v13  ;;  %2712 = vst [vmem:[%s5654_s4 + $0x288] sm:$0xff] %v1931_v14 }
 0x175   :  { %v2443_v15 = vpop.f32.mrf.mxu1  ;;  %v3238_v16 = vpop.f32.mrf.mxu0 }
 0x176   :  { %2840 = vst [vmem:[%s5654_s4 + $0x688] sm:$0xff] %v2443_v15  ;;  %2717 = vst [vmem:[%s5654_s4 + $0x2b0] sm:$0xff] %v3238_v16 }
 0x177   :  { %v3366_v17 = vpop.f32.mrf.mxu1  ;;  %v1944_v18 = vpop.f32.mrf.mxu0 }
 0x178   :  { %2845 = vst [vmem:[%s5654_s4 + $0x6b0] sm:$0xff] %v3366_v17  ;;  %2715 = vst [vmem:[%s5654_s4 + $0x2a0] sm:$0xff] %v1944_v18 }
 0x179   :  { %v2456_v19 = vpop.f32.mrf.mxu1  ;;  %v3239_v20 = vpop.f32.mrf.mxu0 }
 0x17a   :  { %2843 = vst [vmem:[%s5654_s4 + $0x6a0] sm:$0xff] %v2456_v19  ;;  %2718 = vst [vmem:[%s5654_s4 + $0x2b8] sm:$0xff] %v3239_v20 }
 0x17b   :  { %v3367_v2 = vpop.f32.mrf.mxu1  ;;  %v1947_v21 = vpop.f32.mrf.mxu0 }
 0x17c   :  { %2846 = vst [vmem:[%s5654_s4 + $0x6b8] sm:$0xff] %v3367_v2  ;;  %2716 = vst [vmem:[%s5654_s4 + $0x2a8] sm:$0xff] %v1947_v21 }
 0x17d   :  { %v2459_v22 = vpop.f32.mrf.mxu1  ;;  %v3242_v23 = vpop.f32.mrf.mxu0 }
 0x17e   :  { %2844 = vst [vmem:[%s5654_s4 + $0x6a8] sm:$0xff] %v2459_v22  ;;  %2721 = vst [vmem:[%s5654_s4 + $0x2d0] sm:$0xff] %v3242_v23 }
 0x17f   :  { %v3370_v25 = vpop.f32.mrf.mxu1  ;;  %v1960_v26 = vpop.f32.mrf.mxu0 }
 0x180   :  { %2849 = vst [vmem:[%s5654_s4 + $0x6d0] sm:$0xff] %v3370_v25  ;;  %2719 = vst [vmem:[%s5654_s4 + $0x2c0] sm:$0xff] %v1960_v26 }
 0x181   :  { %v2472_v27 = vpop.f32.mrf.mxu1  ;;  %v3243_v28 = vpop.f32.mrf.mxu0 }
 0x182   :  { %2847 = vst [vmem:[%s5654_s4 + $0x6c0] sm:$0xff] %v2472_v27  ;;  %2722 = vst [vmem:[%s5654_s4 + $0x2d8] sm:$0xff] %v3243_v28 }
 0x183   :  { %v3371_v29 = vpop.f32.mrf.mxu1  ;;  %v1963_v30 = vpop.f32.mrf.mxu0 }
 0x184   :  { %2850 = vst [vmem:[%s5654_s4 + $0x6d8] sm:$0xff] %v3371_v29  ;;  %2720 = vst [vmem:[%s5654_s4 + $0x2c8] sm:$0xff] %v1963_v30 }
 0x185   :  { %v2475_v31 = vpop.f32.mrf.mxu1  ;;  %v3246_v32 = vpop.f32.mrf.mxu0 }
 0x186   :  { %2848 = vst [vmem:[%s5654_s4 + $0x6c8] sm:$0xff] %v2475_v31  ;;  %2725 = vst [vmem:[%s5654_s4 + $0x2f0] sm:$0xff] %v3246_v32 }
 0x187   :  { %v3374_v33 = vpop.f32.mrf.mxu1  ;;  %v1976_v35 = vpop.f32.mrf.mxu0 }
 0x188   :  { %2853 = vst [vmem:[%s5654_s4 + $0x6f0] sm:$0xff] %v3374_v33  ;;  %2723 = vst [vmem:[%s5654_s4 + $0x2e0] sm:$0xff] %v1976_v35 }
 0x189   :  { %v2488_v36 = vpop.f32.mrf.mxu1  ;;  %v3247_v37 = vpop.f32.mrf.mxu0 }
 0x18a   :  { %2851 = vst [vmem:[%s5654_s4 + $0x6e0] sm:$0xff] %v2488_v36  ;;  %2726 = vst [vmem:[%s5654_s4 + $0x2f8] sm:$0xff] %v3247_v37 }
 0x18b   :  { %v3375_v38 = vpop.f32.mrf.mxu1  ;;  %v1979_v39 = vpop.f32.mrf.mxu0 }
 0x18c   :  { %2854 = vst [vmem:[%s5654_s4 + $0x6f8] sm:$0xff] %v3375_v38  ;;  %2724 = vst [vmem:[%s5654_s4 + $0x2e8] sm:$0xff] %v1979_v39 }
 0x18d   :  { %v2491_v4 = vpop.f32.mrf.mxu1  ;;  %v3250_v5 = vpop.f32.mrf.mxu0 }
 0x18e   :  { %2852 = vst [vmem:[%s5654_s4 + $0x6e8] sm:$0xff] %v2491_v4  ;;  %2729 = vst [vmem:[%s5654_s4 + $0x310] sm:$0xff] %v3250_v5 }
 0x18f   :  { %v3378_v40 = vpop.f32.mrf.mxu1  ;;  %v1992_v41 = vpop.f32.mrf.mxu0 }
 0x190   :  { %2857 = vst [vmem:[%s5654_s4 + $0x710] sm:$0xff] %v3378_v40  ;;  %2727 = vst [vmem:[%s5654_s4 + $0x300] sm:$0xff] %v1992_v41 }
 0x191   :  { %v2504_v42 = vpop.f32.mrf.mxu1  ;;  %v3251_v43 = vpop.f32.mrf.mxu0 }
 0x192   :  { %2855 = vst [vmem:[%s5654_s4 + $0x700] sm:$0xff] %v2504_v42  ;;  %2730 = vst [vmem:[%s5654_s4 + $0x318] sm:$0xff] %v3251_v43 }
 0x193   :  { %v3379_v44 = vpop.f32.mrf.mxu1  ;;  %v1995_v45 = vpop.f32.mrf.mxu0 }
 0x194   :  { %2858 = vst [vmem:[%s5654_s4 + $0x718] sm:$0xff] %v3379_v44  ;;  %2728 = vst [vmem:[%s5654_s4 + $0x308] sm:$0xff] %v1995_v45 }
 0x195   :  { %v2507_v46 = vpop.f32.mrf.mxu1  ;;  %v3254_v47 = vpop.f32.mrf.mxu0 }
 0x196   :  { %2856 = vst [vmem:[%s5654_s4 + $0x708] sm:$0xff] %v2507_v46  ;;  %2733 = vst [vmem:[%s5654_s4 + $0x330] sm:$0xff] %v3254_v47 }
 0x197   :  { %v3382_v48 = vpop.f32.mrf.mxu1  ;;  %v2008_v49 = vpop.f32.mrf.mxu0 }
 0x198   :  { %2861 = vst [vmem:[%s5654_s4 + $0x730] sm:$0xff] %v3382_v48  ;;  %2731 = vst [vmem:[%s5654_s4 + $0x320] sm:$0xff] %v2008_v49 }
 0x199   :  { %v2520_v50 = vpop.f32.mrf.mxu1  ;;  %v3255_v34 = vpop.f32.mrf.mxu0 }
 0x19a   :  { %2859 = vst [vmem:[%s5654_s4 + $0x720] sm:$0xff] %v2520_v50  ;;  %2734 = vst [vmem:[%s5654_s4 + $0x338] sm:$0xff] %v3255_v34 }
 0x19b   :  { %v3383_v52 = vpop.f32.mrf.mxu1  ;;  %v2011_v53 = vpop.f32.mrf.mxu0 }
 0x19c   :  { %2862 = vst [vmem:[%s5654_s4 + $0x738] sm:$0xff] %v3383_v52  ;;  %2732 = vst [vmem:[%s5654_s4 + $0x328] sm:$0xff] %v2011_v53 }
 0x19d   :  { %v2523_v54 = vpop.f32.mrf.mxu1  ;;  %v3258_v55 = vpop.f32.mrf.mxu0 }
 0x19e   :  { %2860 = vst [vmem:[%s5654_s4 + $0x728] sm:$0xff] %v2523_v54  ;;  %2737 = vst [vmem:[%s5654_s4 + $0x350] sm:$0xff] %v3258_v55 }
 0x19f   :  { %v3386_v56 = vpop.f32.mrf.mxu1  ;;  %v2024_v57 = vpop.f32.mrf.mxu0 }
 0x1a0   :  { %2865 = vst [vmem:[%s5654_s4 + $0x750] sm:$0xff] %v3386_v56  ;;  %2735 = vst [vmem:[%s5654_s4 + $0x340] sm:$0xff] %v2024_v57 }
 0x1a1   :  { %v2536_v58 = vpop.f32.mrf.mxu1  ;;  %v3259_v59 = vpop.f32.mrf.mxu0 }
 0x1a2   :  { %2863 = vst [vmem:[%s5654_s4 + $0x740] sm:$0xff] %v2536_v58  ;;  %2738 = vst [vmem:[%s5654_s4 + $0x358] sm:$0xff] %v3259_v59 }
 0x1a3   :  { %v3387_v60 = vpop.f32.mrf.mxu1  ;;  %v2027_v61 = vpop.f32.mrf.mxu0 }
 0x1a4   :  { %2866 = vst [vmem:[%s5654_s4 + $0x758] sm:$0xff] %v3387_v60  ;;  %2736 = vst [vmem:[%s5654_s4 + $0x348] sm:$0xff] %v2027_v61 }
 0x1a5   :  { %v2539_v62 = vpop.f32.mrf.mxu1  ;;  %v3262_v63 = vpop.f32.mrf.mxu0 }
 0x1a6   :  { %2864 = vst [vmem:[%s5654_s4 + $0x748] sm:$0xff] %v2539_v62  ;;  %2741 = vst [vmem:[%s5654_s4 + $0x370] sm:$0xff] %v3262_v63 }
 0x1a7   :  { %v3390_v0 = vpop.f32.mrf.mxu1  ;;  %v2040_v1 = vpop.f32.mrf.mxu0 }
 0x1a8   :  { %2869 = vst [vmem:[%s5654_s4 + $0x770] sm:$0xff] %v3390_v0  ;;  %2739 = vst [vmem:[%s5654_s4 + $0x360] sm:$0xff] %v2040_v1 }
 0x1a9   :  { %v2552_v3 = vpop.f32.mrf.mxu1  ;;  %v3263_v6 = vpop.f32.mrf.mxu0 }
 0x1aa   :  { %2867 = vst [vmem:[%s5654_s4 + $0x760] sm:$0xff] %v2552_v3  ;;  %2742 = vst [vmem:[%s5654_s4 + $0x378] sm:$0xff] %v3263_v6 }
 0x1ab   :  { %v3391_v7 = vpop.f32.mrf.mxu1  ;;  %v2043_v8 = vpop.f32.mrf.mxu0 }
 0x1ac   :  { %2870 = vst [vmem:[%s5654_s4 + $0x778] sm:$0xff] %v3391_v7  ;;  %2740 = vst [vmem:[%s5654_s4 + $0x368] sm:$0xff] %v2043_v8 }
 0x1ad   :  { %v2555_v9 = vpop.f32.mrf.mxu1  ;;  %v3266_v10 = vpop.f32.mrf.mxu0 }
 0x1ae   :  { %2868 = vst [vmem:[%s5654_s4 + $0x768] sm:$0xff] %v2555_v9  ;;  %2745 = vst [vmem:[%s5654_s4 + $0x390] sm:$0xff] %v3266_v10 }
 0x1af   :  { %v3394_v51 = vpop.f32.mrf.mxu1  ;;  %v2056_v24 = vpop.f32.mrf.mxu0 }
 0x1b0   :  { %2873 = vst [vmem:[%s5654_s4 + $0x790] sm:$0xff] %v3394_v51  ;;  %2743 = vst [vmem:[%s5654_s4 + $0x380] sm:$0xff] %v2056_v24 }
 0x1b1   :  { %v2568_v11 = vpop.f32.mrf.mxu1  ;;  %v3267_v12 = vpop.f32.mrf.mxu0 }
 0x1b2   :  { %2871 = vst [vmem:[%s5654_s4 + $0x780] sm:$0xff] %v2568_v11  ;;  %2746 = vst [vmem:[%s5654_s4 + $0x398] sm:$0xff] %v3267_v12 }
 0x1b3   :  { %v3395_v13 = vpop.f32.mrf.mxu1  ;;  %v2059_v14 = vpop.f32.mrf.mxu0 }
 0x1b4   :  { %2874 = vst [vmem:[%s5654_s4 + $0x798] sm:$0xff] %v3395_v13  ;;  %2744 = vst [vmem:[%s5654_s4 + $0x388] sm:$0xff] %v2059_v14 }
 0x1b5   :  { %v2571_v15 = vpop.f32.mrf.mxu1  ;;  %v3270_v16 = vpop.f32.mrf.mxu0 }
 0x1b6   :  { %2872 = vst [vmem:[%s5654_s4 + $0x788] sm:$0xff] %v2571_v15  ;;  %2749 = vst [vmem:[%s5654_s4 + $0x3b0] sm:$0xff] %v3270_v16 }
 0x1b7   :  { %v3398_v17 = vpop.f32.mrf.mxu1  ;;  %v2072_v18 = vpop.f32.mrf.mxu0 }
 0x1b8   :  { %2877 = vst [vmem:[%s5654_s4 + $0x7b0] sm:$0xff] %v3398_v17  ;;  %2747 = vst [vmem:[%s5654_s4 + $0x3a0] sm:$0xff] %v2072_v18 }
 0x1b9   :  { %v2584_v19 = vpop.f32.mrf.mxu1  ;;  %v3271_v20 = vpop.f32.mrf.mxu0 }
 0x1ba   :  { %2875 = vst [vmem:[%s5654_s4 + $0x7a0] sm:$0xff] %v2584_v19  ;;  %2750 = vst [vmem:[%s5654_s4 + $0x3b8] sm:$0xff] %v3271_v20 }
 0x1bb   :  { %v3399_v2 = vpop.f32.mrf.mxu1  ;;  %v2075_v21 = vpop.f32.mrf.mxu0 }
 0x1bc   :  { %2878 = vst [vmem:[%s5654_s4 + $0x7b8] sm:$0xff] %v3399_v2  ;;  %2748 = vst [vmem:[%s5654_s4 + $0x3a8] sm:$0xff] %v2075_v21 }
 0x1bd   :  { %v2587_v22 = vpop.f32.mrf.mxu1  ;;  %v3274_v23 = vpop.f32.mrf.mxu0 }
 0x1be   :  { %2876 = vst [vmem:[%s5654_s4 + $0x7a8] sm:$0xff] %v2587_v22  ;;  %2753 = vst [vmem:[%s5654_s4 + $0x3d0] sm:$0xff] %v3274_v23 }
 0x1bf   :  { %v3402_v25 = vpop.f32.mrf.mxu1  ;;  %v2088_v26 = vpop.f32.mrf.mxu0 }
 0x1c0   :  { %2881 = vst [vmem:[%s5654_s4 + $0x7d0] sm:$0xff] %v3402_v25  ;;  %2751 = vst [vmem:[%s5654_s4 + $0x3c0] sm:$0xff] %v2088_v26 }
 0x1c1   :  { %v2600_v27 = vpop.f32.mrf.mxu1  ;;  %v3275_v28 = vpop.f32.mrf.mxu0 }
 0x1c2   :  { %2879 = vst [vmem:[%s5654_s4 + $0x7c0] sm:$0xff] %v2600_v27  ;;  %2754 = vst [vmem:[%s5654_s4 + $0x3d8] sm:$0xff] %v3275_v28 }
 0x1c3   :  { %v3403_v29 = vpop.f32.mrf.mxu1  ;;  %v2091_v30 = vpop.f32.mrf.mxu0 }
 0x1c4   :  { %2882 = vst [vmem:[%s5654_s4 + $0x7d8] sm:$0xff] %v3403_v29  ;;  %2752 = vst [vmem:[%s5654_s4 + $0x3c8] sm:$0xff] %v2091_v30 }
 0x1c5   :  { %v2603_v31 = vpop.f32.mrf.mxu1  ;;  %v3278_v32 = vpop.f32.mrf.mxu0 }
 0x1c6   :  { %2880 = vst [vmem:[%s5654_s4 + $0x7c8] sm:$0xff] %v2603_v31  ;;  %2757 = vst [vmem:[%s5654_s4 + $0x3f0] sm:$0xff] %v3278_v32 }
 0x1c7   :  { %v3406_v33 = vpop.f32.mrf.mxu1  ;;  %v2104_v35 = vpop.f32.mrf.mxu0 }
 0x1c8   :  { %2885 = vst [vmem:[%s5654_s4 + $0x7f0] sm:$0xff] %v3406_v33  ;;  %2755 = vst [vmem:[%s5654_s4 + $0x3e0] sm:$0xff] %v2104_v35 }
 0x1c9   :  { %v2616_v36 = vpop.f32.mrf.mxu1  ;;  %v3279_v37 = vpop.f32.mrf.mxu0 }
 0x1ca   :  { %2883 = vst [vmem:[%s5654_s4 + $0x7e0] sm:$0xff] %v2616_v36  ;;  %2758 = vst [vmem:[%s5654_s4 + $0x3f8] sm:$0xff] %v3279_v37 }
 0x1cb   :  { %v3407_v38 = vpop.f32.mrf.mxu1  ;;  %v2107_v39 = vpop.f32.mrf.mxu0 }
 0x1cc   :  { %2886 = vst [vmem:[%s5654_s4 + $0x7f8] sm:$0xff] %v3407_v38  ;;  %2756 = vst [vmem:[%s5654_s4 + $0x3e8] sm:$0xff] %v2107_v39 }
 0x1cd   :  { %v2619_v4 = vpop.f32.mrf.mxu1 }
 0x1ce   :  { %2884 = vst [vmem:[%s5654_s4 + $0x7e8] sm:$0xff] %v2619_v4 }

</bundles_post_ra>
